<compile_context>
chip_gen: v7x
topology: tpu7x:2x2x1
jax: 0.10.0
libtpu: 0.0.40
codegen_flags: <defaults>
</compile_context>

<pallas_src>
import jax
import jax.numpy as jnp
from jax.experimental import pallas as pl
from jax.experimental.pallas import tpu as pltpu


# ----------------------------------------------------------------------------
# Kernel A: conv1 + bias + ReLU + fused 2x2 max-pool.
#   p00..p11 : (25, TB*144) phase-wise im2col patches (cols ordered (b, y, x))
#   w_ref    : (10, 25)   conv1 weight, torch (OC, IC*KH*KW) flatten
#   b_ref    : (10, 1)
#   o_ref    : (10, TB*144) pooled+ReLU'd conv1 activations
# ----------------------------------------------------------------------------
def _conv1_pool_kernel(p00, p01, p10, p11, w_ref, b_ref, o_ref):
    w = w_ref[...]
    z = jnp.maximum(
        jnp.maximum(jnp.dot(w, p00[...], preferred_element_type=jnp.float32),
                    jnp.dot(w, p01[...], preferred_element_type=jnp.float32)),
        jnp.maximum(jnp.dot(w, p10[...], preferred_element_type=jnp.float32),
                    jnp.dot(w, p11[...], preferred_element_type=jnp.float32)))
    o_ref[...] = jnp.maximum(z + b_ref[...], 0.0)      # bias + ReLU epilogue


# ----------------------------------------------------------------------------
# Kernel B: conv2 + bias + ReLU + fused 2x2 max-pool + flatten + fc1 + ReLU + fc2
#   p00..p11 : (250, 16*TB) phase-wise im2col patches (cols ordered (s, b))
#   w2_ref   : (20, 250), b2_ref: (20, 1)
#   fc1w_ref : (16, 50, 20)  fc1 weight regrouped per pooled spatial position
#   fc1b_ref : (50, 1)
#   fc2w_ref : (num_classes, 50), fc2b_ref: (num_classes, 1)
#   o_ref    : (num_classes, TB) logits for this batch tile
# ----------------------------------------------------------------------------
def _make_conv2_pool_fc_kernel(tb, n_pos, n_hidden):
    def kernel(p00, p01, p10, p11, w2_ref, b2_ref,
               fc1w_ref, fc1b_ref, fc2w_ref, fc2b_ref, o_ref):
        w2 = w2_ref[...]
        z = jnp.maximum(
            jnp.maximum(jnp.dot(w2, p00[...], preferred_element_type=jnp.float32),
                        jnp.dot(w2, p01[...], preferred_element_type=jnp.float32)),
            jnp.maximum(jnp.dot(w2, p10[...], preferred_element_type=jnp.float32),
                        jnp.dot(w2, p11[...], preferred_element_type=jnp.float32)))
        h2 = jnp.maximum(z + b2_ref[...], 0.0)          # (20, 16*TB), pooled

        # fc1: torch's x.view(B,-1) flatten folded into n_pos accumulated dots,
        # one per pooled spatial position s -> no in-kernel reshape/transpose.
        f1 = jnp.zeros((n_hidden, tb), jnp.float32)
        for s in range(n_pos):
            f1 = f1 + jnp.dot(fc1w_ref[s], h2[:, s * tb:(s + 1) * tb],
                              preferred_element_type=jnp.float32)
        f1 = jnp.maximum(f1 + fc1b_ref[...], 0.0)       # (50, TB)

        logits = jnp.dot(fc2w_ref[...], f1, preferred_element_type=jnp.float32)
        o_ref[...] = logits + fc2b_ref[...]             # (num_classes, TB)
    return kernel


# ----------------------------------------------------------------------------
# Parameter packing (done once, addresses "pre-transpose weights" feedback)
# ----------------------------------------------------------------------------
def init_params(key, num_classes=10):
    ks = jax.random.split(key, 8)
    scale = 0.05
    return {
        "conv1_w": scale * jax.random.normal(ks[0], (10, 1, 5, 5), jnp.float32),
        "conv1_b": scale * jax.random.normal(ks[1], (10,), jnp.float32),
        "conv2_w": scale * jax.random.normal(ks[2], (20, 10, 5, 5), jnp.float32),
        "conv2_b": scale * jax.random.normal(ks[3], (20,), jnp.float32),
        "fc1_w": scale * jax.random.normal(ks[4], (50, 320), jnp.float32),
        "fc1_b": scale * jax.random.normal(ks[5], (50,), jnp.float32),
        "fc2_w": scale * jax.random.normal(ks[6], (num_classes, 50), jnp.float32),
        "fc2_b": scale * jax.random.normal(ks[7], (num_classes,), jnp.float32),
    }


def prepare_params(params):
    """One-time repack of torch-layout params into the kernels' matmul layouts."""
    num_classes = params["fc2_w"].shape[0]
    return {
        "w1": params["conv1_w"].reshape(10, 25).astype(jnp.float32),
        "b1": params["conv1_b"].reshape(10, 1).astype(jnp.float32),
        "w2": params["conv2_w"].reshape(20, 250).astype(jnp.float32),
        "b2": params["conv2_b"].reshape(20, 1).astype(jnp.float32),
        # fc1w_pos[s, f, c] = fc1_w[f, c*16 + s]  (one (50,20) slab per position)
        "fc1w": params["fc1_w"].reshape(50, 20, 16).transpose(2, 0, 1)
                                .astype(jnp.float32),
        "fc1b": params["fc1_b"].reshape(50, 1).astype(jnp.float32),
        "fc2w": params["fc2_w"].astype(jnp.float32),
        "fc2b": params["fc2_b"].reshape(num_classes, 1).astype(jnp.float32),
    }


def _round_up(x, m):
    return (x + m - 1) // m * m


# ----------------------------------------------------------------------------
# Forward
# ----------------------------------------------------------------------------
def lenet_mnist_forward(x, kp, *, batch_tile=64):
    """x: (B, 1, 28, 28) float32 NCHW; kp: prepare_params(...) output."""
    B = x.shape[0]
    assert x.shape[1:] == (1, 28, 28), x.shape
    num_classes = kp["fc2w"].shape[0]

    TB = min(batch_tile, _round_up(B, 8))        # multiple of 8 -> aligned blocks
    n_tiles = -(-B // TB)
    B_pad = n_tiles * TB

    xs = x.reshape(B, 28, 28).astype(jnp.float32)
    if B_pad != B:
        xs = jnp.pad(xs, ((0, B_pad - B), (0, 0), (0, 0)))

    # ---- conv1 phase patches: P[(ki,kj), (b, y, x)], one per pool phase ------
    def conv1_patches(du, dv):
        cols = [xs[:, du + ki: du + ki + 24: 2, dv + kj: dv + kj + 24: 2]
                for ki in range(5) for kj in range(5)]        # each (B_pad,12,12)
        return jnp.stack(cols, axis=0).reshape(25, B_pad * 144)

    p1_phases = [conv1_patches(du, dv) for du in (0, 1) for dv in (0, 1)]

    ncols1 = B_pad * 144
    a_out = pl.pallas_call(
        _conv1_pool_kernel,
        grid=(n_tiles,),
        out_shape=jax.ShapeDtypeStruct((10, ncols1), jnp.float32),
        in_specs=[pl.BlockSpec((25, TB * 144), lambda i: (0, i))] * 4
        + [pl.BlockSpec((10, 25), lambda i: (0, 0)),
           pl.BlockSpec((10, 1), lambda i: (0, 0))],
        out_specs=pl.BlockSpec((10, TB * 144), lambda i: (0, i)),
        compiler_params=pltpu.CompilerParams(dimension_semantics=("parallel",)),
        cost_estimate=pl.CostEstimate(flops=2 * 4 * 10 * 25 * ncols1,
                                      transcendentals=0,
                                      bytes_accessed=4 * (4 * 25 + 10) * ncols1),
    )(*p1_phases, kp["w1"], kp["b1"])

    # pooled conv1 activations back to (C, B, H, W) for the conv2 im2col
    h1 = a_out.reshape(10, B_pad, 12, 12)

    # ---- conv2 phase patches: rows (c,ki,kj), cols (tile, s=(y,x), b_in_tile) -
    def conv2_patches(du, dv):
        cols = [h1[:, :, du + ki: du + ki + 8: 2, dv + kj: dv + kj + 8: 2]
                for ki in range(5) for kj in range(5)]        # each (10,B_pad,4,4)
        p = jnp.stack(cols, axis=1).reshape(250, B_pad, 16)   # row = c*25+ki*5+kj
        p = p.reshape(250, n_tiles, TB, 16).transpose(0, 1, 3, 2)
        return p.reshape(250, n_tiles * 16 * TB)

    p2_phases = [conv2_patches(du, dv) for du in (0, 1) for dv in (0, 1)]

    ncols2 = n_tiles * 16 * TB
    flops2 = 2 * (4 * 20 * 250 * ncols2 + 320 * 50 * B_pad
                  + 50 * num_classes * B_pad)
    kernel_b = _make_conv2_pool_fc_kernel(TB, 16, 50)
    logits = pl.pallas_call(
        kernel_b,
        grid=(n_tiles,),
        out_shape=jax.ShapeDtypeStruct((n_tiles, num_classes, TB), jnp.float32),
        in_specs=[pl.BlockSpec((250, 16 * TB), lambda i: (0, i))] * 4
        + [pl.BlockSpec((20, 250), lambda i: (0, 0)),
           pl.BlockSpec((20, 1), lambda i: (0, 0)),
           pl.BlockSpec((16, 50, 20), lambda i: (0, 0, 0)),
           pl.BlockSpec((50, 1), lambda i: (0, 0)),
           pl.BlockSpec((num_classes, 50), lambda i: (0, 0)),
           pl.BlockSpec((num_classes, 1), lambda i: (0, 0))],
        out_specs=pl.BlockSpec((None, num_classes, TB), lambda i: (i, 0, 0)),
        compiler_params=pltpu.CompilerParams(dimension_semantics=("parallel",)),
        cost_estimate=pl.CostEstimate(flops=flops2, transcendentals=0,
                                      bytes_accessed=4 * (4 * 250 + 20) * ncols2),
    )(*p2_phases, kp["w2"], kp["b2"], kp["fc1w"], kp["fc1b"],
      kp["fc2w"], kp["fc2b"])

    out = logits.transpose(0, 2, 1).reshape(B_pad, num_classes)
    return out[:B]


if __name__ == "__main__":
    key = jax.random.PRNGKey(0)
    k_x, k_p = jax.random.split(key)
    # MNIST-shaped input (28x28 required so the flatten yields 320 = 20*4*4).
    x = jax.random.normal(k_x, (2, 1, 28, 28), jnp.float32)
    params = init_params(k_p, num_classes=10)
    kparams = prepare_params(params)          # one-time weight repack

    fwd = jax.jit(lenet_mnist_forward)
    out = jax.block_until_ready(fwd(x, kparams))

    assert out.shape == (2, 10), out.shape
    assert bool(jnp.all(jnp.isfinite(out))), "non-finite output"
    print("KERNEL_OK")
</pallas_src>

<mosaic_0001>
module attributes {stable_mosaic.version = 11 : i64} {
  func.func @_conv1_pool_kernel(%arg0: i32, %arg1: memref<25x1152xf32, #tpu.memory_space<vmem>>, %arg2: memref<25x1152xf32, #tpu.memory_space<vmem>>, %arg3: memref<25x1152xf32, #tpu.memory_space<vmem>>, %arg4: memref<25x1152xf32, #tpu.memory_space<vmem>>, %arg5: memref<10x25xf32, #tpu.memory_space<vmem>>, %arg6: memref<10x1xf32, #tpu.memory_space<vmem>>, %arg7: memref<10x1152xf32, #tpu.memory_space<vmem>>) attributes {dimension_semantics = [#tpu.dimension_semantics<parallel>], iteration_bounds = array<i64: 1>, scalar_prefetch = 0 : i64, scratch_operands = 0 : i64, tpu.core_type = #tpu.core_type<tc>, window_params = [{transform_indices = @transform_0, window_bounds = array<i64: 25, 1152>}, {transform_indices = @transform_1, window_bounds = array<i64: 25, 1152>}, {transform_indices = @transform_2, window_bounds = array<i64: 25, 1152>}, {transform_indices = @transform_3, window_bounds = array<i64: 25, 1152>}, {pipeline_mode = #tpu.pipeline_mode<synchronous>, transform_indices = @transform_4, window_bounds = array<i64: 10, 25>}, {pipeline_mode = #tpu.pipeline_mode<synchronous>, transform_indices = @transform_5, window_bounds = array<i64: 10, 1>}, {transform_indices = @transform_6, window_bounds = array<i64: 10, 1152>}]} {
    %c0 = arith.constant 0 : index
    %c0_0 = arith.constant 0 : index
    %0 = vector.load %arg5[%c0, %c0_0] : memref<10x25xf32, #tpu.memory_space<vmem>>, vector<10x25xf32>
    %c0_1 = arith.constant 0 : index
    %c0_2 = arith.constant 0 : index
    %1 = vector.load %arg1[%c0_1, %c0_2] : memref<25x1152xf32, #tpu.memory_space<vmem>>, vector<25x1152xf32>
    %cst = arith.constant dense<0.000000e+00> : vector<10x1152xf32>
    %2 = tpu.matmul %0, %1, %cst {dimension_numbers = #tpu.dot_dimension_numbers<[1], [0], [0], [1], [0, 0, 1, 1], [], []>} : vector<10x25xf32>, vector<25x1152xf32>, vector<10x1152xf32> -> vector<10x1152xf32>
    %c0_3 = arith.constant 0 : index
    %c0_4 = arith.constant 0 : index
    %3 = vector.load %arg2[%c0_3, %c0_4] : memref<25x1152xf32, #tpu.memory_space<vmem>>, vector<25x1152xf32>
    %cst_5 = arith.constant dense<0.000000e+00> : vector<10x1152xf32>
    %4 = tpu.matmul %0, %3, %cst_5 {dimension_numbers = #tpu.dot_dimension_numbers<[1], [0], [0], [1], [0, 0, 1, 1], [], []>} : vector<10x25xf32>, vector<25x1152xf32>, vector<10x1152xf32> -> vector<10x1152xf32>
    %5 = arith.maximumf %2, %4 : vector<10x1152xf32>
    %c0_6 = arith.constant 0 : index
    %c0_7 = arith.constant 0 : index
    %6 = vector.load %arg3[%c0_6, %c0_7] : memref<25x1152xf32, #tpu.memory_space<vmem>>, vector<25x1152xf32>
    %cst_8 = arith.constant dense<0.000000e+00> : vector<10x1152xf32>
    %7 = tpu.matmul %0, %6, %cst_8 {dimension_numbers = #tpu.dot_dimension_numbers<[1], [0], [0], [1], [0, 0, 1, 1], [], []>} : vector<10x25xf32>, vector<25x1152xf32>, vector<10x1152xf32> -> vector<10x1152xf32>
    %c0_9 = arith.constant 0 : index
    %c0_10 = arith.constant 0 : index
    %8 = vector.load %arg4[%c0_9, %c0_10] : memref<25x1152xf32, #tpu.memory_space<vmem>>, vector<25x1152xf32>
    %cst_11 = arith.constant dense<0.000000e+00> : vector<10x1152xf32>
    %9 = tpu.matmul %0, %8, %cst_11 {dimension_numbers = #tpu.dot_dimension_numbers<[1], [0], [0], [1], [0, 0, 1, 1], [], []>} : vector<10x25xf32>, vector<25x1152xf32>, vector<10x1152xf32> -> vector<10x1152xf32>
    %10 = arith.maximumf %7, %9 : vector<10x1152xf32>
    %11 = arith.maximumf %5, %10 : vector<10x1152xf32>
    %c0_12 = arith.constant 0 : index
    %c0_13 = arith.constant 0 : index
    %12 = vector.load %arg6[%c0_12, %c0_13] : memref<10x1xf32, #tpu.memory_space<vmem>>, vector<10x1xf32>
    %13 = vector.broadcast %12 : vector<10x1xf32> to vector<10x1152xf32>
    %14 = arith.addf %11, %13 : vector<10x1152xf32>
    %cst_14 = arith.constant 0.000000e+00 : f32
    %15 = vector.broadcast %cst_14 : f32 to vector<10x1152xf32>
    %16 = arith.maximumf %14, %15 : vector<10x1152xf32>
    %c0_15 = arith.constant 0 : index
    %c0_16 = arith.constant 0 : index
    %17 = vector.load %arg7[%c0_15, %c0_16] : memref<10x1152xf32, #tpu.memory_space<vmem>>, vector<10x1152xf32>
    tpu.vector_store %arg7[%c0_15, %c0_16], %16 {strides = array<i32>} : memref<10x1152xf32, #tpu.memory_space<vmem>>, vector<10x1152xf32>,
    return
  }
  func.func @transform_0(%arg0: i32) -> (i32, i32) {
    %c0_i32 = arith.constant 0 : i32
    %c0_i32_0 = arith.constant 0 : i32
    return %c0_i32, %arg0 : i32, i32
  }
  func.func @transform_1(%arg0: i32) -> (i32, i32) {
    %c0_i32 = arith.constant 0 : i32
    %c0_i32_0 = arith.constant 0 : i32
    return %c0_i32, %arg0 : i32, i32
  }
  func.func @transform_2(%arg0: i32) -> (i32, i32) {
    %c0_i32 = arith.constant 0 : i32
    %c0_i32_0 = arith.constant 0 : i32
    return %c0_i32, %arg0 : i32, i32
  }
  func.func @transform_3(%arg0: i32) -> (i32, i32) {
    %c0_i32 = arith.constant 0 : i32
    %c0_i32_0 = arith.constant 0 : i32
    return %c0_i32, %arg0 : i32, i32
  }
  func.func @transform_4(%arg0: i32) -> (i32, i32) {
    %c0_i32 = arith.constant 0 : i32
    %c0_i32_0 = arith.constant 0 : i32
    %c0_i32_1 = arith.constant 0 : i32
    return %c0_i32, %c0_i32_0 : i32, i32
  }
  func.func @transform_5(%arg0: i32) -> (i32, i32) {
    %c0_i32 = arith.constant 0 : i32
    %c0_i32_0 = arith.constant 0 : i32
    %c0_i32_1 = arith.constant 0 : i32
    return %c0_i32, %c0_i32_0 : i32, i32
  }
  func.func @transform_6(%arg0: i32) -> (i32, i32) {
    %c0_i32 = arith.constant 0 : i32
    %c0_i32_0 = arith.constant 0 : i32
    return %c0_i32, %arg0 : i32, i32
  }
}

module attributes {stable_mosaic.version = 11 : i64} {
  func.func @kernel(%arg0: i32, %arg1: memref<250x128xf32, #tpu.memory_space<vmem>>, %arg2: memref<250x128xf32, #tpu.memory_space<vmem>>, %arg3: memref<250x128xf32, #tpu.memory_space<vmem>>, %arg4: memref<250x128xf32, #tpu.memory_space<vmem>>, %arg5: memref<20x250xf32, #tpu.memory_space<vmem>>, %arg6: memref<20x1xf32, #tpu.memory_space<vmem>>, %arg7: memref<16x50x20xf32, #tpu.memory_space<vmem>>, %arg8: memref<50x1xf32, #tpu.memory_space<vmem>>, %arg9: memref<10x50xf32, #tpu.memory_space<vmem>>, %arg10: memref<10x1xf32, #tpu.memory_space<vmem>>, %arg11: memref<1x10x8xf32, #tpu.memory_space<vmem>>) attributes {dimension_semantics = [#tpu.dimension_semantics<parallel>], iteration_bounds = array<i64: 1>, scalar_prefetch = 0 : i64, scratch_operands = 0 : i64, tpu.core_type = #tpu.core_type<tc>, window_params = [{transform_indices = @transform_0, window_bounds = array<i64: 250, 128>}, {transform_indices = @transform_1, window_bounds = array<i64: 250, 128>}, {transform_indices = @transform_2, window_bounds = array<i64: 250, 128>}, {transform_indices = @transform_3, window_bounds = array<i64: 250, 128>}, {pipeline_mode = #tpu.pipeline_mode<synchronous>, transform_indices = @transform_4, window_bounds = array<i64: 20, 250>}, {pipeline_mode = #tpu.pipeline_mode<synchronous>, transform_indices = @transform_5, window_bounds = array<i64: 20, 1>}, {pipeline_mode = #tpu.pipeline_mode<synchronous>, transform_indices = @transform_6, window_bounds = array<i64: 16, 50, 20>}, {pipeline_mode = #tpu.pipeline_mode<synchronous>, transform_indices = @transform_7, window_bounds = array<i64: 50, 1>}, {pipeline_mode = #tpu.pipeline_mode<synchronous>, transform_indices = @transform_8, window_bounds = array<i64: 10, 50>}, {pipeline_mode = #tpu.pipeline_mode<synchronous>, transform_indices = @transform_9, window_bounds = array<i64: 10, 1>}, {transform_indices = @transform_10, window_bounds = array<i64: 1, 10, 8>}]} {
    %c0 = arith.constant 0 : index
    %c0_0 = arith.constant 0 : index
    %0 = vector.load %arg5[%c0, %c0_0] : memref<20x250xf32, #tpu.memory_space<vmem>>, vector<20x250xf32>
    %c0_1 = arith.constant 0 : index
    %c0_2 = arith.constant 0 : index
    %1 = vector.load %arg1[%c0_1, %c0_2] : memref<250x128xf32, #tpu.memory_space<vmem>>, vector<250x128xf32>
    %cst = arith.constant dense<0.000000e+00> : vector<20x128xf32>
    %2 = tpu.matmul %0, %1, %cst {dimension_numbers = #tpu.dot_dimension_numbers<[1], [0], [0], [1], [0, 0, 1, 1], [], []>} : vector<20x250xf32>, vector<250x128xf32>, vector<20x128xf32> -> vector<20x128xf32>
    %c0_3 = arith.constant 0 : index
    %c0_4 = arith.constant 0 : index
    %3 = vector.load %arg2[%c0_3, %c0_4] : memref<250x128xf32, #tpu.memory_space<vmem>>, vector<250x128xf32>
    %cst_5 = arith.constant dense<0.000000e+00> : vector<20x128xf32>
    %4 = tpu.matmul %0, %3, %cst_5 {dimension_numbers = #tpu.dot_dimension_numbers<[1], [0], [0], [1], [0, 0, 1, 1], [], []>} : vector<20x250xf32>, vector<250x128xf32>, vector<20x128xf32> -> vector<20x128xf32>
    %5 = arith.maximumf %2, %4 : vector<20x128xf32>
    %c0_6 = arith.constant 0 : index
    %c0_7 = arith.constant 0 : index
    %6 = vector.load %arg3[%c0_6, %c0_7] : memref<250x128xf32, #tpu.memory_space<vmem>>, vector<250x128xf32>
    %cst_8 = arith.constant dense<0.000000e+00> : vector<20x128xf32>
    %7 = tpu.matmul %0, %6, %cst_8 {dimension_numbers = #tpu.dot_dimension_numbers<[1], [0], [0], [1], [0, 0, 1, 1], [], []>} : vector<20x250xf32>, vector<250x128xf32>, vector<20x128xf32> -> vector<20x128xf32>
    %c0_9 = arith.constant 0 : index
    %c0_10 = arith.constant 0 : index
    %8 = vector.load %arg4[%c0_9, %c0_10] : memref<250x128xf32, #tpu.memory_space<vmem>>, vector<250x128xf32>
    %cst_11 = arith.constant dense<0.000000e+00> : vector<20x128xf32>
    %9 = tpu.matmul %0, %8, %cst_11 {dimension_numbers = #tpu.dot_dimension_numbers<[1], [0], [0], [1], [0, 0, 1, 1], [], []>} : vector<20x250xf32>, vector<250x128xf32>, vector<20x128xf32> -> vector<20x128xf32>
    %10 = arith.maximumf %7, %9 : vector<20x128xf32>
    %11 = arith.maximumf %5, %10 : vector<20x128xf32>
    %c0_12 = arith.constant 0 : index
    %c0_13 = arith.constant 0 : index
    %12 = vector.load %arg6[%c0_12, %c0_13] : memref<20x1xf32, #tpu.memory_space<vmem>>, vector<20x1xf32>
    %13 = vector.broadcast %12 : vector<20x1xf32> to vector<20x128xf32>
    %14 = arith.addf %11, %13 : vector<20x128xf32>
    %cst_14 = arith.constant 0.000000e+00 : f32
    %15 = vector.broadcast %cst_14 : f32 to vector<20x128xf32>
    %16 = arith.maximumf %14, %15 : vector<20x128xf32>
    %cst_15 = arith.constant 0.000000e+00 : f32
    %17 = vector.broadcast %cst_15 : f32 to vector<50x8xf32>
    %c0_16 = arith.constant 0 : index
    %c0_17 = arith.constant 0 : index
    %c0_18 = arith.constant 0 : index
    %18 = vector.load %arg7[%c0_16, %c0_17, %c0_18] : memref<16x50x20xf32, #tpu.memory_space<vmem>>, vector<1x50x20xf32>
    %19 = vector.shape_cast %18 : vector<1x50x20xf32> to vector<50x20xf32>
    %20 = vector.extract_strided_slice %16 {offsets = [0, 0], sizes = [20, 8], strides = [1, 1]} : vector<20x128xf32> to vector<20x8xf32>
    %cst_19 = arith.constant dense<0.000000e+00> : vector<50x8xf32>
    %21 = tpu.matmul %19, %20, %cst_19 {dimension_numbers = #tpu.dot_dimension_numbers<[1], [0], [0], [1], [0, 0, 1, 1], [], []>} : vector<50x20xf32>, vector<20x8xf32>, vector<50x8xf32> -> vector<50x8xf32>
    %22 = arith.addf %17, %21 : vector<50x8xf32>
    %c1 = arith.constant 1 : index
    %c0_20 = arith.constant 0 : index
    %c0_21 = arith.constant 0 : index
    %23 = vector.load %arg7[%c1, %c0_20, %c0_21] : memref<16x50x20xf32, #tpu.memory_space<vmem>>, vector<1x50x20xf32>
    %24 = vector.shape_cast %23 : vector<1x50x20xf32> to vector<50x20xf32>
    %25 = vector.extract_strided_slice %16 {offsets = [0, 8], sizes = [20, 8], strides = [1, 1]} : vector<20x128xf32> to vector<20x8xf32>
    %cst_22 = arith.constant dense<0.000000e+00> : vector<50x8xf32>
    %26 = tpu.matmul %24, %25, %cst_22 {dimension_numbers = #tpu.dot_dimension_numbers<[1], [0], [0], [1], [0, 0, 1, 1], [], []>} : vector<50x20xf32>, vector<20x8xf32>, vector<50x8xf32> -> vector<50x8xf32>
    %27 = arith.addf %22, %26 : vector<50x8xf32>
    %c2 = arith.constant 2 : index
    %c0_23 = arith.constant 0 : index
    %c0_24 = arith.constant 0 : index
    %28 = vector.load %arg7[%c2, %c0_23, %c0_24] : memref<16x50x20xf32, #tpu.memory_space<vmem>>, vector<1x50x20xf32>
    %29 = vector.shape_cast %28 : vector<1x50x20xf32> to vector<50x20xf32>
    %30 = vector.extract_strided_slice %16 {offsets = [0, 16], sizes = [20, 8], strides = [1, 1]} : vector<20x128xf32> to vector<20x8xf32>
    %cst_25 = arith.constant dense<0.000000e+00> : vector<50x8xf32>
    %31 = tpu.matmul %29, %30, %cst_25 {dimension_numbers = #tpu.dot_dimension_numbers<[1], [0], [0], [1], [0, 0, 1, 1], [], []>} : vector<50x20xf32>, vector<20x8xf32>, vector<50x8xf32> -> vector<50x8xf32>
    %32 = arith.addf %27, %31 : vector<50x8xf32>
    %c3 = arith.constant 3 : index
    %c0_26 = arith.constant 0 : index
    %c0_27 = arith.constant 0 : index
    %33 = vector.load %arg7[%c3, %c0_26, %c0_27] : memref<16x50x20xf32, #tpu.memory_space<vmem>>, vector<1x50x20xf32>
    %34 = vector.shape_cast %33 : vector<1x50x20xf32> to vector<50x20xf32>
    %35 = vector.extract_strided_slice %16 {offsets = [0, 24], sizes = [20, 8], strides = [1, 1]} : vector<20x128xf32> to vector<20x8xf32>
    %cst_28 = arith.constant dense<0.000000e+00> : vector<50x8xf32>
    %36 = tpu.matmul %34, %35, %cst_28 {dimension_numbers = #tpu.dot_dimension_numbers<[1], [0], [0], [1], [0, 0, 1, 1], [], []>} : vector<50x20xf32>, vector<20x8xf32>, vector<50x8xf32> -> vector<50x8xf32>
    %37 = arith.addf %32, %36 : vector<50x8xf32>
    %c4 = arith.constant 4 : index
    %c0_29 = arith.constant 0 : index
    %c0_30 = arith.constant 0 : index
    %38 = vector.load %arg7[%c4, %c0_29, %c0_30] : memref<16x50x20xf32, #tpu.memory_space<vmem>>, vector<1x50x20xf32>
    %39 = vector.shape_cast %38 : vector<1x50x20xf32> to vector<50x20xf32>
    %40 = vector.extract_strided_slice %16 {offsets = [0, 32], sizes = [20, 8], strides = [1, 1]} : vector<20x128xf32> to vector<20x8xf32>
    %cst_31 = arith.constant dense<0.000000e+00> : vector<50x8xf32>
    %41 = tpu.matmul %39, %40, %cst_31 {dimension_numbers = #tpu.dot_dimension_numbers<[1], [0], [0], [1], [0, 0, 1, 1], [], []>} : vector<50x20xf32>, vector<20x8xf32>, vector<50x8xf32> -> vector<50x8xf32>
    %42 = arith.addf %37, %41 : vector<50x8xf32>
    %c5 = arith.constant 5 : index
    %c0_32 = arith.constant 0 : index
    %c0_33 = arith.constant 0 : index
    %43 = vector.load %arg7[%c5, %c0_32, %c0_33] : memref<16x50x20xf32, #tpu.memory_space<vmem>>, vector<1x50x20xf32>
    %44 = vector.shape_cast %43 : vector<1x50x20xf32> to vector<50x20xf32>
    %45 = vector.extract_strided_slice %16 {offsets = [0, 40], sizes = [20, 8], strides = [1, 1]} : vector<20x128xf32> to vector<20x8xf32>
    %cst_34 = arith.constant dense<0.000000e+00> : vector<50x8xf32>
    %46 = tpu.matmul %44, %45, %cst_34 {dimension_numbers = #tpu.dot_dimension_numbers<[1], [0], [0], [1], [0, 0, 1, 1], [], []>} : vector<50x20xf32>, vector<20x8xf32>, vector<50x8xf32> -> vector<50x8xf32>
    %47 = arith.addf %42, %46 : vector<50x8xf32>
    %c6 = arith.constant 6 : index
    %c0_35 = arith.constant 0 : index
    %c0_36 = arith.constant 0 : index
    %48 = vector.load %arg7[%c6, %c0_35, %c0_36] : memref<16x50x20xf32, #tpu.memory_space<vmem>>, vector<1x50x20xf32>
    %49 = vector.shape_cast %48 : vector<1x50x20xf32> to vector<50x20xf32>
    %50 = vector.extract_strided_slice %16 {offsets = [0, 48], sizes = [20, 8], strides = [1, 1]} : vector<20x128xf32> to vector<20x8xf32>
    %cst_37 = arith.constant dense<0.000000e+00> : vector<50x8xf32>
    %51 = tpu.matmul %49, %50, %cst_37 {dimension_numbers = #tpu.dot_dimension_numbers<[1], [0], [0], [1], [0, 0, 1, 1], [], []>} : vector<50x20xf32>, vector<20x8xf32>, vector<50x8xf32> -> vector<50x8xf32>
    %52 = arith.addf %47, %51 : vector<50x8xf32>
    %c7 = arith.constant 7 : index
    %c0_38 = arith.constant 0 : index
    %c0_39 = arith.constant 0 : index
    %53 = vector.load %arg7[%c7, %c0_38, %c0_39] : memref<16x50x20xf32, #tpu.memory_space<vmem>>, vector<1x50x20xf32>
    %54 = vector.shape_cast %53 : vector<1x50x20xf32> to vector<50x20xf32>
    %55 = vector.extract_strided_slice %16 {offsets = [0, 56], sizes = [20, 8], strides = [1, 1]} : vector<20x128xf32> to vector<20x8xf32>
    %cst_40 = arith.constant dense<0.000000e+00> : vector<50x8xf32>
    %56 = tpu.matmul %54, %55, %cst_40 {dimension_numbers = #tpu.dot_dimension_numbers<[1], [0], [0], [1], [0, 0, 1, 1], [], []>} : vector<50x20xf32>, vector<20x8xf32>, vector<50x8xf32> -> vector<50x8xf32>
    %57 = arith.addf %52, %56 : vector<50x8xf32>
    %c8 = arith.constant 8 : index
    %c0_41 = arith.constant 0 : index
    %c0_42 = arith.constant 0 : index
    %58 = vector.load %arg7[%c8, %c0_41, %c0_42] : memref<16x50x20xf32, #tpu.memory_space<vmem>>, vector<1x50x20xf32>
    %59 = vector.shape_cast %58 : vector<1x50x20xf32> to vector<50x20xf32>
    %60 = vector.extract_strided_slice %16 {offsets = [0, 64], sizes = [20, 8], strides = [1, 1]} : vector<20x128xf32> to vector<20x8xf32>
    %cst_43 = arith.constant dense<0.000000e+00> : vector<50x8xf32>
    %61 = tpu.matmul %59, %60, %cst_43 {dimension_numbers = #tpu.dot_dimension_numbers<[1], [0], [0], [1], [0, 0, 1, 1], [], []>} : vector<50x20xf32>, vector<20x8xf32>, vector<50x8xf32> -> vector<50x8xf32>
    %62 = arith.addf %57, %61 : vector<50x8xf32>
    %c9 = arith.constant 9 : index
    %c0_44 = arith.constant 0 : index
    %c0_45 = arith.constant 0 : index
    %63 = vector.load %arg7[%c9, %c0_44, %c0_45] : memref<16x50x20xf32, #tpu.memory_space<vmem>>, vector<1x50x20xf32>
    %64 = vector.shape_cast %63 : vector<1x50x20xf32> to vector<50x20xf32>
    %65 = vector.extract_strided_slice %16 {offsets = [0, 72], sizes = [20, 8], strides = [1, 1]} : vector<20x128xf32> to vector<20x8xf32>
    %cst_46 = arith.constant dense<0.000000e+00> : vector<50x8xf32>
    %66 = tpu.matmul %64, %65, %cst_46 {dimension_numbers = #tpu.dot_dimension_numbers<[1], [0], [0], [1], [0, 0, 1, 1], [], []>} : vector<50x20xf32>, vector<20x8xf32>, vector<50x8xf32> -> vector<50x8xf32>
    %67 = arith.addf %62, %66 : vector<50x8xf32>
    %c10 = arith.constant 10 : index
    %c0_47 = arith.constant 0 : index
    %c0_48 = arith.constant 0 : index
    %68 = vector.load %arg7[%c10, %c0_47, %c0_48] : memref<16x50x20xf32, #tpu.memory_space<vmem>>, vector<1x50x20xf32>
    %69 = vector.shape_cast %68 : vector<1x50x20xf32> to vector<50x20xf32>
    %70 = vector.extract_strided_slice %16 {offsets = [0, 80], sizes = [20, 8], strides = [1, 1]} : vector<20x128xf32> to vector<20x8xf32>
    %cst_49 = arith.constant dense<0.000000e+00> : vector<50x8xf32>
    %71 = tpu.matmul %69, %70, %cst_49 {dimension_numbers = #tpu.dot_dimension_numbers<[1], [0], [0], [1], [0, 0, 1, 1], [], []>} : vector<50x20xf32>, vector<20x8xf32>, vector<50x8xf32> -> vector<50x8xf32>
    %72 = arith.addf %67, %71 : vector<50x8xf32>
    %c11 = arith.constant 11 : index
    %c0_50 = arith.constant 0 : index
    %c0_51 = arith.constant 0 : index
    %73 = vector.load %arg7[%c11, %c0_50, %c0_51] : memref<16x50x20xf32, #tpu.memory_space<vmem>>, vector<1x50x20xf32>
    %74 = vector.shape_cast %73 : vector<1x50x20xf32> to vector<50x20xf32>
    %75 = vector.extract_strided_slice %16 {offsets = [0, 88], sizes = [20, 8], strides = [1, 1]} : vector<20x128xf32> to vector<20x8xf32>
    %cst_52 = arith.constant dense<0.000000e+00> : vector<50x8xf32>
    %76 = tpu.matmul %74, %75, %cst_52 {dimension_numbers = #tpu.dot_dimension_numbers<[1], [0], [0], [1], [0, 0, 1, 1], [], []>} : vector<50x20xf32>, vector<20x8xf32>, vector<50x8xf32> -> vector<50x8xf32>
    %77 = arith.addf %72, %76 : vector<50x8xf32>
    %c12 = arith.constant 12 : index
    %c0_53 = arith.constant 0 : index
    %c0_54 = arith.constant 0 : index
    %78 = vector.load %arg7[%c12, %c0_53, %c0_54] : memref<16x50x20xf32, #tpu.memory_space<vmem>>, vector<1x50x20xf32>
    %79 = vector.shape_cast %78 : vector<1x50x20xf32> to vector<50x20xf32>
    %80 = vector.extract_strided_slice %16 {offsets = [0, 96], sizes = [20, 8], strides = [1, 1]} : vector<20x128xf32> to vector<20x8xf32>
    %cst_55 = arith.constant dense<0.000000e+00> : vector<50x8xf32>
    %81 = tpu.matmul %79, %80, %cst_55 {dimension_numbers = #tpu.dot_dimension_numbers<[1], [0], [0], [1], [0, 0, 1, 1], [], []>} : vector<50x20xf32>, vector<20x8xf32>, vector<50x8xf32> -> vector<50x8xf32>
    %82 = arith.addf %77, %81 : vector<50x8xf32>
    %c13 = arith.constant 13 : index
    %c0_56 = arith.constant 0 : index
    %c0_57 = arith.constant 0 : index
    %83 = vector.load %arg7[%c13, %c0_56, %c0_57] : memref<16x50x20xf32, #tpu.memory_space<vmem>>, vector<1x50x20xf32>
    %84 = vector.shape_cast %83 : vector<1x50x20xf32> to vector<50x20xf32>
    %85 = vector.extract_strided_slice %16 {offsets = [0, 104], sizes = [20, 8], strides = [1, 1]} : vector<20x128xf32> to vector<20x8xf32>
    %cst_58 = arith.constant dense<0.000000e+00> : vector<50x8xf32>
    %86 = tpu.matmul %84, %85, %cst_58 {dimension_numbers = #tpu.dot_dimension_numbers<[1], [0], [0], [1], [0, 0, 1, 1], [], []>} : vector<50x20xf32>, vector<20x8xf32>, vector<50x8xf32> -> vector<50x8xf32>
    %87 = arith.addf %82, %86 : vector<50x8xf32>
    %c14 = arith.constant 14 : index
    %c0_59 = arith.constant 0 : index
    %c0_60 = arith.constant 0 : index
    %88 = vector.load %arg7[%c14, %c0_59, %c0_60] : memref<16x50x20xf32, #tpu.memory_space<vmem>>, vector<1x50x20xf32>
    %89 = vector.shape_cast %88 : vector<1x50x20xf32> to vector<50x20xf32>
    %90 = vector.extract_strided_slice %16 {offsets = [0, 112], sizes = [20, 8], strides = [1, 1]} : vector<20x128xf32> to vector<20x8xf32>
    %cst_61 = arith.constant dense<0.000000e+00> : vector<50x8xf32>
    %91 = tpu.matmul %89, %90, %cst_61 {dimension_numbers = #tpu.dot_dimension_numbers<[1], [0], [0], [1], [0, 0, 1, 1], [], []>} : vector<50x20xf32>, vector<20x8xf32>, vector<50x8xf32> -> vector<50x8xf32>
    %92 = arith.addf %87, %91 : vector<50x8xf32>
    %c15 = arith.constant 15 : index
    %c0_62 = arith.constant 0 : index
    %c0_63 = arith.constant 0 : index
    %93 = vector.load %arg7[%c15, %c0_62, %c0_63] : memref<16x50x20xf32, #tpu.memory_space<vmem>>, vector<1x50x20xf32>
    %94 = vector.shape_cast %93 : vector<1x50x20xf32> to vector<50x20xf32>
    %95 = vector.extract_strided_slice %16 {offsets = [0, 120], sizes = [20, 8], strides = [1, 1]} : vector<20x128xf32> to vector<20x8xf32>
    %cst_64 = arith.constant dense<0.000000e+00> : vector<50x8xf32>
    %96 = tpu.matmul %94, %95, %cst_64 {dimension_numbers = #tpu.dot_dimension_numbers<[1], [0], [0], [1], [0, 0, 1, 1], [], []>} : vector<50x20xf32>, vector<20x8xf32>, vector<50x8xf32> -> vector<50x8xf32>
    %97 = arith.addf %92, %96 : vector<50x8xf32>
    %c0_65 = arith.constant 0 : index
    %c0_66 = arith.constant 0 : index
    %98 = vector.load %arg8[%c0_65, %c0_66] : memref<50x1xf32, #tpu.memory_space<vmem>>, vector<50x1xf32>
    %99 = vector.broadcast %98 : vector<50x1xf32> to vector<50x8xf32>
    %100 = arith.addf %97, %99 : vector<50x8xf32>
    %cst_67 = arith.constant 0.000000e+00 : f32
    %101 = vector.broadcast %cst_67 : f32 to vector<50x8xf32>
    %102 = arith.maximumf %100, %101 : vector<50x8xf32>
    %c0_68 = arith.constant 0 : index
    %c0_69 = arith.constant 0 : index
    %103 = vector.load %arg9[%c0_68, %c0_69] : memref<10x50xf32, #tpu.memory_space<vmem>>, vector<10x50xf32>
    %cst_70 = arith.constant dense<0.000000e+00> : vector<10x8xf32>
    %104 = tpu.matmul %103, %102, %cst_70 {dimension_numbers = #tpu.dot_dimension_numbers<[1], [0], [0], [1], [0, 0, 1, 1], [], []>} : vector<10x50xf32>, vector<50x8xf32>, vector<10x8xf32> -> vector<10x8xf32>
    %c0_71 = arith.constant 0 : index
    %c0_72 = arith.constant 0 : index
    %105 = vector.load %arg10[%c0_71, %c0_72] : memref<10x1xf32, #tpu.memory_space<vmem>>, vector<10x1xf32>
    %106 = vector.broadcast %105 : vector<10x1xf32> to vector<10x8xf32>
    %107 = arith.addf %104, %106 : vector<10x8xf32>
    %c0_73 = arith.constant 0 : index
    %c0_74 = arith.constant 0 : index
    %c0_75 = arith.constant 0 : index
    %108 = vector.load %arg11[%c0_73, %c0_74, %c0_75] : memref<1x10x8xf32, #tpu.memory_space<vmem>>, vector<1x10x8xf32>
    %109 = vector.shape_cast %108 : vector<1x10x8xf32> to vector<10x8xf32>
    %110 = vector.shape_cast %107 : vector<10x8xf32> to vector<1x10x8xf32>
    tpu.vector_store %arg11[%c0_73, %c0_74, %c0_75], %110 {strides = array<i32>} : memref<1x10x8xf32, #tpu.memory_space<vmem>>, vector<1x10x8xf32>,
    return
  }
  func.func @transform_0(%arg0: i32) -> (i32, i32) {
    %c0_i32 = arith.constant 0 : i32
    %c0_i32_0 = arith.constant 0 : i32
    return %c0_i32, %arg0 : i32, i32
  }
  func.func @transform_1(%arg0: i32) -> (i32, i32) {
    %c0_i32 = arith.constant 0 : i32
    %c0_i32_0 = arith.constant 0 : i32
    return %c0_i32, %arg0 : i32, i32
  }
  func.func @transform_2(%arg0: i32) -> (i32, i32) {
    %c0_i32 = arith.constant 0 : i32
    %c0_i32_0 = arith.constant 0 : i32
    return %c0_i32, %arg0 : i32, i32
  }
  func.func @transform_3(%arg0: i32) -> (i32, i32) {
    %c0_i32 = arith.constant 0 : i32
    %c0_i32_0 = arith.constant 0 : i32
    return %c0_i32, %arg0 : i32, i32
  }
  func.func @transform_4(%arg0: i32) -> (i32, i32) {
    %c0_i32 = arith.constant 0 : i32
    %c0_i32_0 = arith.constant 0 : i32
    %c0_i32_1 = arith.constant 0 : i32
    return %c0_i32, %c0_i32_0 : i32, i32
  }
  func.func @transform_5(%arg0: i32) -> (i32, i32) {
    %c0_i32 = arith.constant 0 : i32
    %c0_i32_0 = arith.constant 0 : i32
    %c0_i32_1 = arith.constant 0 : i32
    return %c0_i32, %c0_i32_0 : i32, i32
  }
  func.func @transform_6(%arg0: i32) -> (i32, i32, i32) {
    %c0_i32 = arith.constant 0 : i32
    %c0_i32_0 = arith.constant 0 : i32
    %c0_i32_1 = arith.constant 0 : i32
    %c0_i32_2 = arith.constant 0 : i32
    return %c0_i32, %c0_i32_0, %c0_i32_1 : i32, i32, i32
  }
  func.func @transform_7(%arg0: i32) -> (i32, i32) {
    %c0_i32 = arith.constant 0 : i32
    %c0_i32_0 = arith.constant 0 : i32
    %c0_i32_1 = arith.constant 0 : i32
    return %c0_i32, %c0_i32_0 : i32, i32
  }
  func.func @transform_8(%arg0: i32) -> (i32, i32) {
    %c0_i32 = arith.constant 0 : i32
    %c0_i32_0 = arith.constant 0 : i32
    %c0_i32_1 = arith.constant 0 : i32
    return %c0_i32, %c0_i32_0 : i32, i32
  }
  func.func @transform_9(%arg0: i32) -> (i32, i32) {
    %c0_i32 = arith.constant 0 : i32
    %c0_i32_0 = arith.constant 0 : i32
    %c0_i32_1 = arith.constant 0 : i32
    return %c0_i32, %c0_i32_0 : i32, i32
  }
  func.func @transform_10(%arg0: i32) -> (i32, i32, i32) {
    %c0_i32 = arith.constant 0 : i32
    %c0_i32_0 = arith.constant 0 : i32
    %c0_i32_1 = arith.constant 0 : i32
    return %arg0, %c0_i32, %c0_i32_0 : i32, i32, i32
  }
}

</mosaic_0001>

<bundles_post_ra>
// kernel: lenet_mnist_forward.2
= control target key start
LH: loop header
LB: loop body
LE: loop exit
PB: predicated region body
PF: predicated region fallthrough
CT: control target
= control target key end

     0   :  { %vm68_vm0 = vcmask 1040384   ;;  %v2289_v3 = vmov 0.0   ;;  %v2290_v8 = vmov 0   ;;  %vm2291_vm1 = vmmov 1   ;;  %s3225_s0 = inlined_call_operand.vmem [shape: f32[25,1152], index: 0, kind: input, shape index: {}]   ;;  %s3226_s4 = inlined_call_operand.vmem [shape: f32[10,25], index: 4, kind: input, shape index: {}]   ;;  %s3227_s1 = inlined_call_operand.vmem [shape: f32[25,1152], index: 1, kind: input, shape index: {}]   ;;  %s3228_s2 = inlined_call_operand.vmem [shape: f32[25,1152], index: 2, kind: input, shape index: {}]   ;;  %s3229_s5 = inlined_call_operand.vmem [shape: f32[10,1], index: 5, kind: input, shape index: {}]   ;;  %s3230_s3 = inlined_call_operand.vmem [shape: f32[25,1152], index: 3, kind: input, shape index: {}]   ;;  %s3231_s6 = inlined_call_operand.vmem [shape: f32[10,1152], index: 6, kind: output, shape index: {}]  }
   0x1   :  { %v26_v0 = vld [vmem:[%s3225_s0 + $0x8] sm:$0xff]  ;;  %v35_v1 = vld [vmem:[%s3225_s0 + $0x50] sm:$0xff]  ;;  %v28_v2 = vld [vmem:[%s3225_s0 + $0x18] sm:$0xff]  ;;  %160 = vmatprep.mubr.f32.mxu0 %v2289_v3  ;;  %237 = vmatprep.mubr.f32.mxu1 %v2289_v3  ;;  %vm61_vm3 = vcmask 203776  }
   0x2   :  { %v2085_v4 = vpack.c.bf16 %v35_v1, %v26_v0  ;;  %v37_v5 = vld [vmem:[%s3225_s0 + $0x60] sm:$0xff]  ;;  %v34_v7 = vld [vmem:[%s3225_s0 + $0x48] sm:$0xff]  ;;  %2288 = vset.pattern.permute.xlu0 %v2290_v8  ;;  %v27_v11 = vld [vmem:[%s3225_s0 + $0x10] sm:$0xff] }
   0x3   :  { %v25_v6 = vld [vmem:[%s3225_s0] sm:$0xff]  ;;  %v2095_v9 = vpack.c.bf16 %v37_v5, %v28_v2  ;;  %v36_v12 = vld [vmem:[%s3225_s0 + $0x58] sm:$0xff]  ;;  %vm2360_vm2 = vmpackc.low %vm68_vm0, %vm2291_vm1 }
   0x4   :  { %v2087_v10 = vpack.c.bf16 %v34_v7, %v25_v6  ;;  %v44_v13 = vld [vmem:[%s3225_s0 + $0x98] sm:$0xff]  ;;  %2086 = vmatprep.subr.bf16.mxu0 %v2085_v4  ;;  %v2097_v14 = vpack.c.bf16 %v36_v12, %v27_v11  ;;  %v53_v15 = vld [vmem:[%s3225_s0 + $0xe0] sm:$0x1]  ;;  %v46_v17 = vld [vmem:[%s3225_s0 + $0xa8] sm:$0xff] }
   0x5   :  { %2096 = vmatprep.subr.bf16.mxu1 %v2095_v9  ;;  %v2089_v18 = vpack.c.bf16 %v53_v15, %v44_v13  ;;  %v55_v19 = vld [vmem:[%s3225_s0 + $0xf0] sm:$0x1]  ;;  %v52_v21 = vld [vmem:[%s3225_s0 + $0xd8] sm:$0x1]  ;;  %v45_v24 = vld [vmem:[%s3225_s0 + $0xa0] sm:$0xff] }
   0x6   :  { %2088 = vmatpush1.bf16.msra.mxu0 %v2087_v10  ;;  %v43_v20 = vld [vmem:[%s3225_s0 + $0x90] sm:$0xff]  ;;  %2098 = vmatpush1.bf16.msra.mxu1 %v2097_v14  ;;  %v2099_v22 = vpack.c.bf16 %v55_v19, %v46_v17  ;;  %v54_v25 = vld [vmem:[%s3225_s0 + $0xe8] sm:$0x1]  ;;  %v32_v29 = vld [vmem:[%s3225_s0 + $0x38] sm:$0xff] }
   0x7   :  { %v2092_v23 = vpack.c.bf16 %v52_v21, %v43_v20  ;;  %2091 = vmatprep.subr.msk.bf16.mxu0 %vm2360_vm2, %v2089_v18  ;;  %v2102_v26 = vpack.c.bf16 %v54_v25, %v45_v24  ;;  %v30_v27 = vld [vmem:[%s3225_s0 + $0x28] sm:$0xff]  ;;  %v39_v28 = vld [vmem:[%s3225_s0 + $0x70] sm:$0xff]  ;;  %v41_v31 = vld [vmem:[%s3225_s0 + $0x80] sm:$0xff] }
   0x8   :  { %2101 = vmatprep.subr.msk.bf16.mxu1 %vm2360_vm2, %v2099_v22  ;;  %v2105_v30 = vpack.c.bf16 %v39_v28, %v30_v27  ;;  %v29_v32 = vld [vmem:[%s3225_s0 + $0x20] sm:$0xff]  ;;  %v38_v33 = vld [vmem:[%s3225_s0 + $0x68] sm:$0xff]  ;;  %v2115_v35 = vpack.c.bf16 %v41_v31, %v32_v29  ;;  %v31_v37 = vld [vmem:[%s3225_s0 + $0x30] sm:$0xff] }
   0x9   :  { %v2409_v34 = vld [vmem:[%s3226_s4] sm:$0xff]  ;;  %v2107_v36 = vpack.c.bf16 %v38_v33, %v29_v32  ;;  %v40_v38 = vld [vmem:[%s3225_s0 + $0x78] sm:$0xff]  ;;  %v50_v42 = vld [vmem:[%s3225_s0 + $0xc8] sm:$0xff] }
   0xa   :  { %2094 = vmatpush1.bf16.msk.msra.mxu0 %vm2360_vm2, %v2092_v23  ;;  %2104 = vmatpush1.bf16.msk.msra.mxu1 %vm2360_vm2, %v2102_v26  ;;  %v2117_v39 = vpack.c.bf16 %v40_v38, %v31_v37  ;;  %v48_v40 = vld [vmem:[%s3225_s0 + $0xb8] sm:$0xff]  ;;  %v57_v41 = vld [vmem:[%s3225_s0 + $0x100] sm:$0x1]  ;;  %v2431_v43 = vld [vmem:[%s3226_s4 + $0x8] sm:$0x3] }
   0xb   :  { %2106 = vmatprep.subr.bf16.mxu0 %v2105_v30  ;;  %2116 = vmatprep.subr.bf16.mxu1 %v2115_v35  ;;  %v2109_v44 = vpack.c.bf16 %v57_v41, %v48_v40  ;;  %v59_v45 = vld [vmem:[%s3225_s0 + $0x110] sm:$0x1]  ;;  %v56_v47 = vld [vmem:[%s3225_s0 + $0xf8] sm:$0x1]  ;;  %v49_v49 = vld [vmem:[%s3225_s0 + $0xc0] sm:$0xff] }
   0xc   :  { %v47_v46 = vld [vmem:[%s3225_s0 + $0xb0] sm:$0xff]  ;;  %v2119_v48 = vpack.c.bf16 %v59_v45, %v50_v42  ;;  %v58_v50 = vld [vmem:[%s3225_s0 + $0x108] sm:$0x1]  ;;  %v33_v51 = vld [vmem:[%s3225_s0 + $0x40] sm:$0xff] }
   0xd   :  { %1943 = vmatmul.mubr.msk.f32.vlgmr.msra.gmra.mrb[0].mxu0 %vm61_vm3, %v2409_v34  ;;  %1947 = vmatmul.mubr.msk.f32.vlgmr.msra.gmra.mrb[0].mxu1 %vm61_vm3, %v2409_v34  ;;  %v2112_v52 = vpack.c.bf16 %v56_v47, %v47_v46  ;;  %v42_v53 = vld [vmem:[%s3225_s0 + $0x88] sm:$0xff]  ;;  %v489_v55 = vld [vmem:[%s3227_s1 + $0x50] sm:$0xff]  ;;  %v2122_v56 = vpack.c.bf16 %v58_v50, %v49_v49  ;;  %v479_v58 = vld [vmem:[%s3227_s1] sm:$0xff] }
   0xe   :  { %2108 = vmatpush1.bf16.msra.mxu0 %v2107_v36  ;;  %v480_v54 = vld [vmem:[%s3227_s1 + $0x8] sm:$0xff]  ;;  %2118 = vmatpush1.bf16.msra.mxu1 %v2117_v39  ;;  %v2125_v57 = vpack.c.bf16 %v42_v53, %v33_v51  ;;  %v51_v61 = vld [vmem:[%s3225_s0 + $0xd0] sm:$0xff]  ;;  %v60_v62 = vld [vmem:[%s3225_s0 + $0x118] sm:$0x1] }
   0xf   :  { %166 = vmatprep.mubr.f32.mxu0 %v2289_v3  ;;  %243 = vmatprep.mubr.f32.mxu1 %v2289_v3  ;;  %v488_v59 = vld [vmem:[%s3227_s1 + $0x48] sm:$0xff]  ;;  %v2135_v60 = vpack.c.bf16 %v489_v55, %v480_v54  ;;  %v498_v63 = vld [vmem:[%s3227_s1 + $0x98] sm:$0xff]  ;;  %v507_v0 = vld [vmem:[%s3227_s1 + $0xe0] sm:$0x1]  ;;  %v2129_v2 = vpack.c.bf16 %v60_v62, %v51_v61 }
  0x10   :  { %2111 = vmatprep.subr.msk.bf16.mxu0 %vm2360_vm2, %v2109_v44  ;;  %2121 = vmatprep.subr.msk.bf16.mxu1 %vm2360_vm2, %v2119_v48  ;;  %v2137_v1 = vpack.c.bf16 %v488_v59, %v479_v58  ;;  %v497_v4 = vld [vmem:[%s3227_s1 + $0x90] sm:$0xff]  ;;  %v506_v5 = vld [vmem:[%s3227_s1 + $0xd8] sm:$0x1]  ;;  %v2139_v6 = vpack.c.bf16 %v507_v0, %v498_v63  ;;  %v491_v8 = vld [vmem:[%s3227_s1 + $0x60] sm:$0xff] }
  0x11   :  { %1944 = vmatmul.mubr.msk.f32.gmra.mrb[2].mxu0 %vm61_vm3, %v2431_v43  ;;  %1948 = vmatmul.mubr.msk.f32.gmra.mrb[2].mxu1 %vm61_vm3, %v2431_v43  ;;  %v482_v7 = vld [vmem:[%s3227_s1 + $0x18] sm:$0xff]  ;;  %v484_v9 = vld [vmem:[%s3227_s1 + $0x28] sm:$0xff]  ;;  %v493_v10 = vld [vmem:[%s3227_s1 + $0x70] sm:$0xff]  ;;  %v2142_v11 = vpack.c.bf16 %v506_v5, %v497_v4 }
  0x12   :  { %2114 = vmatpush1.bf16.msk.msra.mxu0 %vm2360_vm2, %v2112_v52  ;;  %2124 = vmatpush1.bf16.msk.msra.mxu1 %vm2360_vm2, %v2122_v56  ;;  %v481_v12 = vld [vmem:[%s3227_s1 + $0x10] sm:$0xff]  ;;  %v490_v13 = vld [vmem:[%s3227_s1 + $0x58] sm:$0xff]  ;;  %v2145_v14 = vpack.c.bf16 %v491_v8, %v482_v7  ;;  %v483_v15 = vld [vmem:[%s3227_s1 + $0x20] sm:$0xff]  ;;  %v2155_v19 = vpack.c.bf16 %v493_v10, %v484_v9 }
  0x13   :  { %314 = vmatprep.mubr.f32.mxu0 %v2289_v3  ;;  %391 = vmatprep.mubr.f32.mxu1 %v2289_v3  ;;  %v492_v17 = vld [vmem:[%s3227_s1 + $0x68] sm:$0xff]  ;;  %v509_v20 = vld [vmem:[%s3227_s1 + $0xf0] sm:$0x1]  ;;  %v502_v21 = vld [vmem:[%s3227_s1 + $0xb8] sm:$0xff]  ;;  %v2147_v23 = vpack.c.bf16 %v490_v13, %v481_v12 }
  0x14   :  { %2126 = vmatprep.subr.bf16.mxu0 %v2125_v57  ;;  %2136 = vmatprep.subr.bf16.mxu1 %v2135_v60  ;;  %v500_v18 = vld [vmem:[%s3227_s1 + $0xa8] sm:$0xff]  ;;  %v511_v22 = vld [vmem:[%s3227_s1 + $0x100] sm:$0x1]  ;;  %v2157_v24 = vpack.c.bf16 %v492_v17, %v483_v15  ;;  %v501_v29 = vld [vmem:[%s3227_s1 + $0xb0] sm:$0xff] }
  0x15   :  { %1951 = vmatmul.mubr.msk.f32.vlgmr.msra.gmra.mrb[4].mxu0 %vm61_vm3, %v2409_v34  ;;  %1955 = vmatmul.mubr.msk.f32.vlgmr.msra.gmra.mrb[4].mxu1 %vm61_vm3, %v2409_v34  ;;  %v499_v25 = vld [vmem:[%s3227_s1 + $0xa0] sm:$0xff]  ;;  %v508_v26 = vld [vmem:[%s3227_s1 + $0xe8] sm:$0x1]  ;;  %v2149_v27 = vpack.c.bf16 %v509_v20, %v500_v18  ;;  %v2159_v28 = vpack.c.bf16 %v511_v22, %v502_v21  ;;  %v510_v30 = vld [vmem:[%s3227_s1 + $0xf8] sm:$0x1] }
  0x16   :  { %2128 = vmatpush3.bf16.msra.mxu0 %v2125_v57  ;;  %2138 = vmatpush1.bf16.msra.mxu1 %v2137_v1  ;;  %v486_v31 = vld [vmem:[%s3227_s1 + $0x38] sm:$0xff]  ;;  %v495_v32 = vld [vmem:[%s3227_s1 + $0x80] sm:$0xff]  ;;  %v496_v35 = vld [vmem:[%s3227_s1 + $0x88] sm:$0xff]  ;;  %v2152_v36 = vpack.c.bf16 %v508_v26, %v499_v25  ;;  %v2162_v37 = vpack.c.bf16 %v510_v30, %v501_v29 }
  0x17   :  { %320 = vmatprep.mubr.f32.mxu0 %v2289_v3  ;;  %397 = vmatprep.mubr.f32.mxu1 %v2289_v3  ;;  %v487_v33 = vld [vmem:[%s3227_s1 + $0x40] sm:$0xff]  ;;  %v485_v38 = vld [vmem:[%s3227_s1 + $0x30] sm:$0xff]  ;;  %v494_v39 = vld [vmem:[%s3227_s1 + $0x78] sm:$0xff]  ;;  %v2165_v40 = vpack.c.bf16 %v495_v32, %v486_v31 }
  0x18   :  { %2131 = vmatprep.subr.msk.bf16.mxu0 %vm2360_vm2, %v2129_v2  ;;  %2141 = vmatprep.subr.msk.bf16.mxu1 %vm2360_vm2, %v2139_v6  ;;  %v2175_v41 = vpack.c.bf16 %v496_v35, %v487_v33  ;;  %v504_v42 = vld [vmem:[%s3227_s1 + $0xc8] sm:$0xff]  ;;  %v513_v44 = vld [vmem:[%s3227_s1 + $0x110] sm:$0x1]  ;;  %v2167_v45 = vpack.c.bf16 %v494_v39, %v485_v38  ;;  %v514_v47 = vld [vmem:[%s3227_s1 + $0x118] sm:$0x1] }
  0x19   :  { %1952 = vmatmul.mubr.msk.f32.gmra.mrb[6].mxu0 %vm61_vm3, %v2431_v43  ;;  %1956 = vmatmul.mubr.msk.f32.gmra.mrb[6].mxu1 %vm61_vm3, %v2431_v43  ;;  %v505_v46 = vld [vmem:[%s3227_s1 + $0xd0] sm:$0xff]  ;;  %v503_v48 = vld [vmem:[%s3227_s1 + $0xc0] sm:$0xff]  ;;  %v512_v49 = vld [vmem:[%s3227_s1 + $0x108] sm:$0x1]  ;;  %v2169_v50 = vpack.c.bf16 %v513_v44, %v504_v42 }
  0x1a   :  { %2134 = vmatpush3.bf16.msk.msra.mxu0 %vm2360_vm2, %v2129_v2  ;;  %2144 = vmatpush1.bf16.msk.msra.mxu1 %vm2360_vm2, %v2142_v11  ;;  %v2179_v51 = vpack.c.bf16 %v514_v47, %v505_v46  ;;  %v944_v52 = vld [vmem:[%s3228_s2 + $0x8] sm:$0xff]  ;;  %v953_v53 = vld [vmem:[%s3228_s2 + $0x50] sm:$0xff]  ;;  %v2172_v54 = vpack.c.bf16 %v512_v49, %v503_v48  ;;  %v946_v55 = vld [vmem:[%s3228_s2 + $0x18] sm:$0xff] }
  0x1b   :  { %2049 = vmatprep.mubr.msk.f32.mxu0 %vm61_vm3, %v2409_v34  ;;  %606 = vmatprep.mubr.f32.mxu1 %v2289_v3  ;;  %v955_v56 = vld [vmem:[%s3228_s2 + $0x60] sm:$0xff]  ;;  %v952_v58 = vld [vmem:[%s3228_s2 + $0x48] sm:$0xff]  ;;  %v2185_v59 = vpack.c.bf16 %v953_v53, %v944_v52  ;;  %v945_v60 = vld [vmem:[%s3228_s2 + $0x10] sm:$0xff] }
  0x1c   :  { %2146 = vmatprep.subr.bf16.mxu0 %v2145_v14  ;;  %2156 = vmatprep.subr.bf16.mxu1 %v2155_v19  ;;  %v943_v57 = vld [vmem:[%s3228_s2] sm:$0xff]  ;;  %v954_v61 = vld [vmem:[%s3228_s2 + $0x58] sm:$0xff]  ;;  %v2195_v63 = vpack.c.bf16 %v955_v56, %v946_v55  ;;  %v964_v1 = vld [vmem:[%s3228_s2 + $0xa8] sm:$0xff] }
  0x1d   :  { %2050 = vmatmul.mubr.msk.f32.vlgmr.msra.gmra.mrb[8].mxu0 %vm61_vm3, %v2431_v43  ;;  %1962 = vmatmul.mubr.msk.f32.vlgmr.msra.gmra.mrb[8].mxu1 %vm61_vm3, %v2409_v34  ;;  %v962_v62 = vld [vmem:[%s3228_s2 + $0x98] sm:$0xff]  ;;  %v971_v0 = vld [vmem:[%s3228_s2 + $0xe0] sm:$0x1]  ;;  %v973_v2 = vld [vmem:[%s3228_s2 + $0xf0] sm:$0x1]  ;;  %v2187_v4 = vpack.c.bf16 %v952_v58, %v943_v57  ;;  %v2197_v5 = vpack.c.bf16 %v954_v61, %v945_v60 }
  0x1e   :  { %2148 = vmatpush1.bf16.msra.mxu0 %v2147_v23  ;;  %2158 = vmatpush1.bf16.msra.mxu1 %v2157_v24  ;;  %v961_v6 = vld [vmem:[%s3228_s2 + $0x90] sm:$0xff]  ;;  %v970_v7 = vld [vmem:[%s3228_s2 + $0xd8] sm:$0x1]  ;;  %v963_v8 = vld [vmem:[%s3228_s2 + $0xa0] sm:$0xff]  ;;  %v2189_v9 = vpack.c.bf16 %v971_v0, %v962_v62  ;;  %v2199_v10 = vpack.c.bf16 %v973_v2, %v964_v1 }
  0x1f   :  { %612 = vmatprep.mubr.f32.mxu1 %v2289_v3  ;;  %2151 = vmatprep.subr.msk.bf16.mxu0 %vm2360_vm2, %v2149_v27  ;;  %v972_v11 = vld [vmem:[%s3228_s2 + $0xe8] sm:$0x1]  ;;  %v957_v13 = vld [vmem:[%s3228_s2 + $0x70] sm:$0xff]  ;;  %v950_v14 = vld [vmem:[%s3228_s2 + $0x38] sm:$0xff]  ;;  %v2192_v17 = vpack.c.bf16 %v970_v7, %v961_v6 }
  0x20   :  { %2161 = vmatprep.subr.msk.bf16.mxu1 %vm2360_vm2, %v2159_v28  ;;  %683 = vmatprep.mubr.f32.mxu0 %v2289_v3  ;;  %v948_v12 = vld [vmem:[%s3228_s2 + $0x28] sm:$0xff]  ;;  %v959_v15 = vld [vmem:[%s3228_s2 + $0x80] sm:$0xff]  ;;  %v2202_v18 = vpack.c.bf16 %v972_v11, %v963_v8  ;;  %v949_v23 = vld [vmem:[%s3228_s2 + $0x30] sm:$0xff] }
  0x21   :  { %1963 = vmatmul.mubr.msk.f32.gmra.mrb[10].mxu1 %vm61_vm3, %v2431_v43  ;;  %v2205_v19 = vpack.c.bf16 %v957_v13, %v948_v12  ;;  %v947_v20 = vld [vmem:[%s3228_s2 + $0x20] sm:$0xff]  ;;  %v956_v21 = vld [vmem:[%s3228_s2 + $0x68] sm:$0xff]  ;;  %v2215_v22 = vpack.c.bf16 %v959_v15, %v950_v14  ;;  %v958_v24 = vld [vmem:[%s3228_s2 + $0x78] sm:$0xff] }
  0x22   :  { %2154 = vmatpush1.bf16.msk.msra.mxu0 %vm2360_vm2, %v2152_v36  ;;  %2164 = vmatpush1.bf16.msk.msra.mxu1 %vm2360_vm2, %v2162_v37  ;;  %v966_v25 = vld [vmem:[%s3228_s2 + $0xb8] sm:$0xff]  ;;  %v975_v26 = vld [vmem:[%s3228_s2 + $0x100] sm:$0x1]  ;;  %v2207_v27 = vpack.c.bf16 %v956_v21, %v947_v20  ;;  %v968_v28 = vld [vmem:[%s3228_s2 + $0xc8] sm:$0xff]  ;;  %v2217_v30 = vpack.c.bf16 %v958_v24, %v949_v23 }
  0x23   :  { %760 = vmatprep.mubr.f32.mxu1 %v2289_v3  ;;  %2166 = vmatprep.subr.bf16.mxu0 %v2165_v40  ;;  %v977_v29 = vld [vmem:[%s3228_s2 + $0x110] sm:$0x1]  ;;  %v974_v32 = vld [vmem:[%s3228_s2 + $0xf8] sm:$0x1]  ;;  %v1871_v33 = vld [vmem:[%s3229_s5] sm:$0xff]  ;;  %v2209_v35 = vpack.c.bf16 %v975_v26, %v966_v25 }
  0x24   :  { %2176 = vmatprep.subr.bf16.mxu1 %v2175_v41  ;;  %v965_v31 = vld [vmem:[%s3228_s2 + $0xb0] sm:$0xff]  ;;  %v967_v36 = vld [vmem:[%s3228_s2 + $0xc0] sm:$0xff]  ;;  %v976_v37 = vld [vmem:[%s3228_s2 + $0x108] sm:$0x1]  ;;  %1875 = vperm.xlu0 %2288, %v1871_v33   ;;  %v2219_v38 = vpack.c.bf16 %v977_v29, %v968_v28 }
  0x25   :  { %1966 = vmatmul.mubr.msk.f32.vlgmr.msra.gmra.mrb[10].mxu0 %vm61_vm3, %v2409_v34  ;;  %1970 = vmatmul.mubr.msk.f32.vlgmr.msra.gmra.mrb[12].mxu1 %vm61_vm3, %v2409_v34  ;;  %v951_v39 = vld [vmem:[%s3228_s2 + $0x40] sm:$0xff]  ;;  %v960_v40 = vld [vmem:[%s3228_s2 + $0x88] sm:$0xff]  ;;  %v1399_v44 = vld [vmem:[%s3230_s3 + $0x50] sm:$0xff] }
  0x26   :  { %2168 = vmatpush1.bf16.msra.mxu0 %v2167_v45  ;;  %2178 = vmatpush3.bf16.msra.mxu1 %v2175_v41  ;;  %v2212_v41 = vpack.c.bf16 %v974_v32, %v965_v31  ;;  %v1390_v42 = vld [vmem:[%s3230_s3 + $0x8] sm:$0xff]  ;;  %v2222_v45 = vpack.c.bf16 %v976_v37, %v967_v36  ;;  %v2225_v46 = vpack.c.bf16 %v960_v40, %v951_v39  ;;  %v1389_v47 = vld [vmem:[%s3230_s3] sm:$0xff]  ;;  %v1408_v52 = vld [vmem:[%s3230_s3 + $0x98] sm:$0xff] }
  0x27   :  { %689 = vmatprep.mubr.f32.mxu0 %v2289_v3  ;;  %766 = vmatprep.mubr.f32.mxu1 %v2289_v3  ;;  %v1398_v48 = vld [vmem:[%s3230_s3 + $0x48] sm:$0xff]  ;;  %v2235_v49 = vpack.c.bf16 %v1399_v44, %v1390_v42  ;;  %v1417_v53 = vld [vmem:[%s3230_s3 + $0xe0] sm:$0x1]  ;;  %v1407_v56 = vld [vmem:[%s3230_s3 + $0x90] sm:$0xff] }
  0x28   :  { %2171 = vmatprep.subr.msk.bf16.mxu0 %vm2360_vm2, %v2169_v50  ;;  %2181 = vmatprep.subr.msk.bf16.mxu1 %vm2360_vm2, %v2179_v51  ;;  %v969_v50 = vld [vmem:[%s3228_s2 + $0xd0] sm:$0xff]  ;;  %v1416_v57 = vld [vmem:[%s3230_s3 + $0xd8] sm:$0x1]  ;;  %v2239_v58 = vpack.c.bf16 %v1417_v53, %v1408_v52  ;;  %v1401_v60 = vld [vmem:[%s3230_s3 + $0x60] sm:$0xff] }
  0x29   :  { %1967 = vmatmul.mubr.msk.f32.gmra.mrb[12].mxu0 %vm61_vm3, %v2431_v43  ;;  %1971 = vmatmul.mubr.msk.f32.gmra.mrb[14].mxu1 %vm61_vm3, %v2431_v43  ;;  %v1394_v61 = vld [vmem:[%s3230_s3 + $0x28] sm:$0xff]  ;;  %v1403_v62 = vld [vmem:[%s3230_s3 + $0x70] sm:$0xff]  ;;  %v1400_v1 = vld [vmem:[%s3230_s3 + $0x58] sm:$0xff] }
  0x2a   :  { %2174 = vmatpush1.bf16.msk.msra.mxu0 %vm2360_vm2, %v2172_v54  ;;  %2184 = vmatpush3.bf16.msk.msra.mxu1 %vm2360_vm2, %v2179_v51  ;;  %v978_v51 = vld [vmem:[%s3228_s2 + $0x118] sm:$0x1]  ;;  %v2237_v54 = vpack.c.bf16 %v1398_v48, %v1389_v47  ;;  %v1391_v0 = vld [vmem:[%s3230_s3 + $0x10] sm:$0xff]  ;;  %v1410_v6 = vld [vmem:[%s3230_s3 + $0xa8] sm:$0xff]  ;;  %v2255_v7 = vpack.c.bf16 %v1403_v62, %v1394_v61 }
  0x2b   :  { %837 = vmatprep.mubr.f32.mxu0 %v2289_v3  ;;  %2060 = vmatprep.mubr.msk.f32.mxu1 %vm61_vm3, %v2409_v34  ;;  %v2229_v55 = vpack.c.bf16 %v978_v51, %v969_v50  ;;  %v1419_v8 = vld [vmem:[%s3230_s3 + $0xf0] sm:$0x1]  ;;  %v2247_v11 = vpack.c.bf16 %v1400_v1, %v1391_v0  ;;  %v1409_v13 = vld [vmem:[%s3230_s3 + $0xa0] sm:$0xff]  ;;  %v1418_v14 = vld [vmem:[%s3230_s3 + $0xe8] sm:$0x1] }
  0x2c   :  { %2186 = vmatprep.subr.bf16.mxu0 %v2185_v59  ;;  %2196 = vmatprep.subr.bf16.mxu1 %v2195_v63  ;;  %v1392_v59 = vld [vmem:[%s3230_s3 + $0x18] sm:$0xff]  ;;  %v2242_v63 = vpack.c.bf16 %v1416_v57, %v1407_v56  ;;  %v2249_v15 = vpack.c.bf16 %v1419_v8, %v1410_v6  ;;  %v1405_v21 = vld [vmem:[%s3230_s3 + $0x80] sm:$0xff]  ;;  %v1406_v23 = vld [vmem:[%s3230_s3 + $0x88] sm:$0xff]  ;;  %v2252_v24 = vpack.c.bf16 %v1418_v14, %v1409_v13 }
  0x2d   :  { %1974 = vmatmul.mubr.msk.f32.vlgmr.msra.gmra.mrb[14].mxu0 %vm61_vm3, %v2409_v34  ;;  %2061 = vmatmul.mubr.msk.f32.vlgmr.msra.gmra.mrb[16].mxu1 %vm61_vm3, %v2431_v43  ;;  %v2245_v2 = vpack.c.bf16 %v1401_v60, %v1392_v59  ;;  %v1396_v20 = vld [vmem:[%s3230_s3 + $0x38] sm:$0xff]  ;;  %v1872_v25 = vld [vmem:[%s3229_s5 + $0x8] sm:$0x3]  ;;  %v1423_v32 = vld [vmem:[%s3230_s3 + $0x110] sm:$0x1] }
  0x2e   :  { %2188 = vmatpush1.bf16.msra.mxu0 %v2187_v4  ;;  %2198 = vmatpush1.bf16.msra.mxu1 %v2197_v5  ;;  %v1393_v4 = vld [vmem:[%s3230_s3 + $0x20] sm:$0xff]  ;;  %v1402_v5 = vld [vmem:[%s3230_s3 + $0x68] sm:$0xff]  ;;  %v1404_v28 = vld [vmem:[%s3230_s3 + $0x78] sm:$0xff]  ;;  %v2265_v29 = vpack.c.bf16 %v1405_v21, %v1396_v20 }
  0x2f   :  { %843 = vmatprep.mubr.f32.mxu0 %v2289_v3  ;;  %2191 = vmatprep.subr.msk.bf16.mxu0 %vm2360_vm2, %v2189_v9  ;;  %v1412_v9 = vld [vmem:[%s3230_s3 + $0xb8] sm:$0xff]  ;;  %v2257_v12 = vpack.c.bf16 %v1402_v5, %v1393_v4  ;;  %v1414_v31 = vld [vmem:[%s3230_s3 + $0xc8] sm:$0xff]  ;;  %v1413_v37 = vld [vmem:[%s3230_s3 + $0xc0] sm:$0xff] }
  0x30   :  { %2201 = vmatprep.subr.msk.bf16.mxu1 %vm2360_vm2, %v2199_v10  ;;  %1147 = vmatprep.mubr.f32.mxu1 %v2289_v3  ;;  %v1421_v10 = vld [vmem:[%s3230_s3 + $0x100] sm:$0x1]  ;;  %v1424_v36 = vld [vmem:[%s3230_s3 + $0x118] sm:$0x1]  ;;  %v2269_v39 = vpack.c.bf16 %v1423_v32, %v1414_v31 }
  0x31   :  { %1975 = vmatmul.mubr.msk.f32.gmra.mrb[16].mxu0 %vm61_vm3, %v2431_v43  ;;  %1880 = vperm.xlu0 %2288, %v1872_v25  }
  0x32   :  { %2194 = vmatpush1.bf16.msk.msra.mxu0 %vm2360_vm2, %v2192_v17  ;;  %1070 = vmatprep.mubr.f32.mxu0 %v2289_v3  ;;  %v2259_v17 = vpack.c.bf16 %v1421_v10, %v1412_v9 }
  0x33   :  { %2204 = vmatpush1.bf16.msk.msra.mxu1 %vm2360_vm2, %v2202_v18  ;;  %2206 = vmatprep.subr.bf16.mxu0 %v2205_v19  ;;  %v1411_v18 = vld [vmem:[%s3230_s3 + $0xb0] sm:$0xff]  ;;  %v1420_v19 = vld [vmem:[%s3230_s3 + $0xf8] sm:$0x1] }
  0x34   :  { %2216 = vmatprep.subr.bf16.mxu1 %v2215_v22  ;;  %v1397_v22 = vld [vmem:[%s3230_s3 + $0x40] sm:$0xff]  ;;  %v2262_v26 = vpack.c.bf16 %v1420_v19, %v1411_v18 }
  0x35   :  { %1981 = vmatmul.mubr.msk.f32.vlgmr.msra.gmra.mrb[18].mxu0 %vm61_vm3, %v2409_v34 }
  0x36   :  { %1985 = vmatmul.mubr.msk.f32.vlgmr.msra.gmra.mrb[18].mxu1 %vm61_vm3, %v2409_v34  ;;  %2208 = vmatpush1.bf16.msra.mxu0 %v2207_v27  ;;  %v1395_v27 = vld [vmem:[%s3230_s3 + $0x30] sm:$0xff] }
  0x37   :  { %2218 = vmatpush1.bf16.msra.mxu1 %v2217_v30  ;;  %1076 = vmatprep.mubr.f32.mxu0 %v2289_v3  ;;  %v2275_v30 = vpack.c.bf16 %v1406_v23, %v1397_v22  ;;  %v2267_v33 = vpack.c.bf16 %v1404_v28, %v1395_v27 }
  0x38   :  { %1153 = vmatprep.mubr.f32.mxu1 %v2289_v3  ;;  %2211 = vmatprep.subr.msk.bf16.mxu0 %vm2360_vm2, %v2209_v35  ;;  %v1415_v35 = vld [vmem:[%s3230_s3 + $0xd0] sm:$0xff] }
  0x39   :  { %1982 = vmatmul.mubr.msk.f32.gmra.mrb[20].mxu0 %vm61_vm3, %v2431_v43  ;;  %2221 = vmatprep.subr.msk.bf16.mxu1 %vm2360_vm2, %v2219_v38  ;;  %v1422_v38 = vld [vmem:[%s3230_s3 + $0x108] sm:$0x1]  ;;  %v2279_v40 = vpack.c.bf16 %v1424_v36, %v1415_v35 }
  0x3a   :  { %1986 = vmatmul.mubr.msk.f32.gmra.mrb[20].mxu1 %vm61_vm3, %v2431_v43  ;;  %2214 = vmatpush1.bf16.msk.msra.mxu0 %vm2360_vm2, %v2212_v41  ;;  %v2272_v41 = vpack.c.bf16 %v1422_v38, %v1413_v37 }
  0x3b   :  { %2224 = vmatpush1.bf16.msk.msra.mxu1 %vm2360_vm2, %v2222_v45  ;;  %1224 = vmatprep.mubr.f32.mxu0 %v2289_v3 }
  0x3c   :  { %1301 = vmatprep.mubr.f32.mxu1 %v2289_v3  ;;  %2226 = vmatprep.subr.bf16.mxu0 %v2225_v46 }
  0x3d   :  { %1989 = vmatmul.mubr.msk.f32.vlgmr.msra.gmra.mrb[22].mxu0 %vm61_vm3, %v2409_v34  ;;  %2236 = vmatprep.subr.bf16.mxu1 %v2235_v49 }
  0x3e   :  { %1993 = vmatmul.mubr.msk.f32.vlgmr.msra.gmra.mrb[22].mxu1 %vm61_vm3, %v2409_v34  ;;  %2228 = vmatpush3.bf16.msra.mxu0 %v2225_v46 }
  0x3f   :  { %2238 = vmatpush1.bf16.msra.mxu1 %v2237_v54  ;;  %1230 = vmatprep.mubr.f32.mxu0 %v2289_v3 }
  0x40   :  { %1307 = vmatprep.mubr.f32.mxu1 %v2289_v3  ;;  %2231 = vmatprep.subr.msk.bf16.mxu0 %vm2360_vm2, %v2229_v55 }
  0x41   :  { %1990 = vmatmul.mubr.msk.f32.gmra.mrb[24].mxu0 %vm61_vm3, %v2431_v43  ;;  %2241 = vmatprep.subr.msk.bf16.mxu1 %vm2360_vm2, %v2239_v58 }
  0x42   :  { %1994 = vmatmul.mubr.msk.f32.gmra.mrb[24].mxu1 %vm61_vm3, %v2431_v43  ;;  %2234 = vmatpush3.bf16.msk.msra.mxu0 %vm2360_vm2, %v2229_v55 }
  0x43   :  { %2244 = vmatpush1.bf16.msk.msra.mxu1 %vm2360_vm2, %v2242_v63  ;;  %2071 = vmatprep.mubr.msk.f32.mxu0 %vm61_vm3, %v2409_v34 }
  0x44   :  { %1516 = vmatprep.mubr.f32.mxu1 %v2289_v3  ;;  %2246 = vmatprep.subr.bf16.mxu0 %v2245_v2 }
  0x45   :  { %2072 = vmatmul.mubr.msk.f32.vlgmr.msra.gmra.mrb[26].mxu0 %vm61_vm3, %v2431_v43  ;;  %2256 = vmatprep.subr.bf16.mxu1 %v2255_v7 }
  0x46   :  { %2000 = vmatmul.mubr.msk.f32.vlgmr.msra.gmra.mrb[26].mxu1 %vm61_vm3, %v2409_v34  ;;  %2248 = vmatpush1.bf16.msra.mxu0 %v2247_v11 }
  0x47   :  { %2258 = vmatpush1.bf16.msra.mxu1 %v2257_v12  ;;  %1522 = vmatprep.mubr.f32.mxu1 %v2289_v3 }
  0x48   :  { %2251 = vmatprep.subr.msk.bf16.mxu0 %vm2360_vm2, %v2249_v15  ;;  %2261 = vmatprep.subr.msk.bf16.mxu1 %vm2360_vm2, %v2259_v17 }
  0x49   :  { %1593 = vmatprep.mubr.f32.mxu0 %v2289_v3 }
  0x4a   :  { %2001 = vmatmul.mubr.msk.f32.gmra.mrb[28].mxu1 %vm61_vm3, %v2431_v43  ;;  %2254 = vmatpush1.bf16.msk.msra.mxu0 %vm2360_vm2, %v2252_v24 }
  0x4b   :  { %2264 = vmatpush1.bf16.msk.msra.mxu1 %vm2360_vm2, %v2262_v26  ;;  %1670 = vmatprep.mubr.f32.mxu1 %v2289_v3 }
  0x4c   :  { %2266 = vmatprep.subr.bf16.mxu0 %v2265_v29  ;;  %2276 = vmatprep.subr.bf16.mxu1 %v2275_v30 }
  0x4d   :  { %2004 = vmatmul.mubr.msk.f32.vlgmr.msra.gmra.mrb[28].mxu0 %vm61_vm3, %v2409_v34 }
  0x4e   :  { %2008 = vmatmul.mubr.msk.f32.vlgmr.msra.gmra.mrb[30].mxu1 %vm61_vm3, %v2409_v34  ;;  %2268 = vmatpush1.bf16.msra.mxu0 %v2267_v33 }
  0x4f   :  { %2278 = vmatpush3.bf16.msra.mxu1 %v2275_v30  ;;  %1599 = vmatprep.mubr.f32.mxu0 %v2289_v3 }
  0x50   :  { %1676 = vmatprep.mubr.f32.mxu1 %v2289_v3  ;;  %2271 = vmatprep.subr.msk.bf16.mxu0 %vm2360_vm2, %v2269_v39 }
  0x51   :  { %2005 = vmatmul.mubr.msk.f32.gmra.mrb[30].mxu0 %vm61_vm3, %v2431_v43  ;;  %2281 = vmatprep.subr.msk.bf16.mxu1 %vm2360_vm2, %v2279_v40 }
  0x52   :  { %2009 = vmatmul.mubr.msk.f32.gmra.mrb[32].mxu1 %vm61_vm3, %v2431_v43  ;;  %2274 = vmatpush1.bf16.msk.msra.mxu0 %vm2360_vm2, %v2272_v41 }
  0x53   :  { %2284 = vmatpush3.bf16.msk.msra.mxu1 %vm2360_vm2, %v2279_v40  ;;  %1747 = vmatprep.mubr.f32.mxu0 %v2289_v3 }
  0x54   :  { %2082 = vmatprep.mubr.msk.f32.mxu1 %vm61_vm3, %v2409_v34 }
  0x55   :  { %2012 = vmatmul.mubr.msk.f32.vlgmr.msra.gmra.mrb[32].mxu0 %vm61_vm3, %v2409_v34 }
  0x56   :  { %2083 = vmatmul.mubr.msk.f32.vlgmr.msra.gmra.mrb[34].mxu1 %vm61_vm3, %v2431_v43  ;;  %1753 = vmatprep.mubr.f32.mxu0 %v2289_v3 }
  0x59   :  { %2013 = vmatmul.mubr.msk.f32.gmra.mrb[34].mxu0 %vm61_vm3, %v2431_v43 }
  0xa3   :  { %v3090_v24 = vpop.permute.xlu0 %1875 }
  0xe0   :  { %v2972_v42 = vpop.f32.mrb[0].mxu0  ;;  %v2976_v44 = vpop.f32.mrb[0].mxu1 }
  0xe1   :  { %v2974_v16 = vpop.f32.mrb[1].mxu0  ;;  %v2978_v45 = vpop.f32.mrb[1].mxu1 }
  0xe4   :  { %v2980_v46 = vpop.f32.mrb[2].mxu0  ;;  %v2984_v34 = vpop.f32.mrb[2].mxu1 }
  0xe5   :  { %v2982_v47 = vpop.f32.mrb[3].mxu0  ;;  %v2986_v48 = vpop.f32.mrb[3].mxu1 }
  0xe8   :  { %v2988_v3 = vpop.f32.mrb[4].mxu0  ;;  %v2992_v43 = vpop.f32.mrb[4].mxu1 }
  0xe9   :  { %v2990_v49 = vpop.f32.mrb[5].mxu0  ;;  %v2994_v50 = vpop.f32.mrb[5].mxu1 }
  0xec   :  { %v2996_v51 = vpop.f32.mrb[6].mxu0  ;;  %v3000_v53 = vpop.f32.mrb[6].mxu1 }
  0xed   :  { %v2998_v52 = vpop.f32.mrb[7].mxu0  ;;  %3238 = vst [vmem:[#allocation2_spill] sm:$0xff] %v3000_v53  ;;  %v3002_v54 = vpop.f32.mrb[7].mxu1 }
  0xee   :  { %3239 = vst [vmem:[#allocation3_spill] sm:$0xff] %v3002_v54  ;;  %v3096_v54 = vpop.permute.xlu0 %1880 }
  0xf0   :  { %v3004_v55 = vpop.f32.mrb[8].mxu0  ;;  %v608_v56 = vpop.f32.mrb[8].mxu1 }
  0xf1   :  { %v3006_v57 = vpop.f32.mrb[9].mxu0  ;;  %v925_v58 = vmax.f32 %v2972_v42, %v608_v56  ;;  %v610_v59 = vpop.f32.mrb[9].mxu1 }
  0xf2   :  { %v926_v60 = vmax.f32 %v2974_v16, %v610_v59 }
  0xf4   :  { %v3010_v61 = vpop.f32.mrb[10].mxu1 }
  0xf5   :  { %v3014_v63 = vpop.f32.mrb[11].mxu1  ;;  %v3243_v53 = vmax.f32 %v2980_v46, %v3010_v61 }
  0xf8   :  { %v3018_v1 = vpop.f32.mrb[10].mxu0  ;;  %v3022_v4 = vpop.f32.mrb[12].mxu1 }
  0xf9   :  { %v3024_v5 = vpop.f32.mrb[11].mxu0  ;;  %v3030_v8 = vpop.f32.mrb[13].mxu1 }
  0xfc   :  { %v3034_v10 = vpop.f32.mrb[12].mxu0  ;;  %v3038_v12 = vpop.f32.mrb[14].mxu1 }
  0xfd   :  { %v3040_v13 = vpop.f32.mrb[13].mxu0  ;;  %v3046_v17 = vpop.f32.mrb[15].mxu1 }
 0x100   :  { %v3050_v19 = vpop.f32.mrb[14].mxu0  ;;  %v3054_v21 = vpop.f32.mrb[16].mxu1 }
 0x101   :  { %v3056_v22 = vpop.f32.mrb[15].mxu0  ;;  %v3062_v25 = vpop.f32.mrb[17].mxu1 }
 0x104   :  { %v3066_v27 = vpop.f32.mrb[16].mxu0 }
 0x105   :  { %3240 = vst [vmem:[#allocation4_spill] sm:$0xff] %v3066_v27  ;;  %v3070_v29 = vpop.f32.mrb[17].mxu0 }
 0x106   :  { %3241 = vst [vmem:[#allocation5_spill] sm:$0xff] %v3070_v29 }
 0x108   :  { %v1072_v31 = vpop.f32.mrb[18].mxu0 }
 0x109   :  { %v1074_v32 = vpop.f32.mrb[19].mxu0  ;;  %v1149_v33 = vpop.f32.mrb[18].mxu1 }
 0x10a   :  { %v1151_v35 = vpop.f32.mrb[19].mxu1 }
 0x10c   :  { %v1078_v36 = vpop.f32.mrb[20].mxu0 }
 0x10d   :  { %v1080_v37 = vpop.f32.mrb[21].mxu0  ;;  %v3074_v38 = vpop.f32.mrb[20].mxu1 }
 0x10e   :  { %v3076_v39 = vpop.f32.mrb[21].mxu1 }
 0x110   :  { %v1226_v40 = vpop.f32.mrb[22].mxu0 }
 0x111   :  { %v1228_v41 = vpop.f32.mrb[23].mxu0  ;;  %v3078_v42 = vpop.f32.mrb[22].mxu1 }
 0x112   :  { %v3080_v16 = vpop.f32.mrb[23].mxu1 }
 0x114   :  { %v1232_v56 = vpop.f32.mrb[24].mxu0 }
 0x115   :  { %v3082_v59 = vpop.f32.mrb[25].mxu0  ;;  %v3084_v30 = vpop.f32.mrb[24].mxu1 }
 0x116   :  { %v3086_v28 = vpop.f32.mrb[25].mxu1 }
 0x117   :  { %3242 = vst [vmem:[#allocation6_spill] sm:$0xff] %v3086_v28 }
 0x118   :  { %v3088_v26 = vpop.f32.mrb[26].mxu0 }
 0x119   :  { %v1518_v23 = vpop.f32.mrb[26].mxu1  ;;  %v3092_v20 = vpop.f32.mrb[27].mxu0 }
 0x11a   :  { %v1835_v18 = vmax.f32 %v1072_v31, %v1518_v23  ;;  %v1520_v15 = vpop.f32.mrb[27].mxu1 }
 0x11b   :  { %v1836_v14 = vmax.f32 %v1074_v32, %v1520_v15 }
 0x11c   :  { %v1853_v11 = vmax.f32 %v925_v58, %v1835_v18  ;;  %v3244_v58 = vmax.f32 %v2982_v47, %v3014_v63  ;;  %v3245_v47 = vmax.f32 %v2976_v44, %v3018_v1  ;;  %v3246_v63 = vmax.f32 %v2988_v3, %v3022_v4 }
 0x11d   :  { %v1854_v9 = vmax.f32 %v926_v60, %v1836_v14  ;;  %v1524_v7 = vpop.f32.mrb[28].mxu1  ;;  %v3247_v18 = vmax.f32 %v2978_v45, %v3024_v5 }
 0x11e   :  { %v1883_v6 = vadd.f32 %v3090_v24, %v1853_v11  ;;  %v1844_v2 = vmax.f32 %v1078_v36, %v1524_v7  ;;  %v1526_v0 = vpop.f32.mrb[29].mxu1 }
 0x11f   :  { %v1884_v62 = vadd.f32 %v3090_v24, %v1854_v9  ;;  %v1845_v29 = vmax.f32 %v1080_v37, %v1526_v0 }
 0x120   :  { %v1901_v27 = vmax.f32 %v1883_v6, 0.0  ;;  %v1862_v28 = vmax.f32 %v3243_v53, %v1844_v2  ;;  %v1595_v23 = vpop.f32.mrb[28].mxu0 }
 0x121   :  { %v1902_v31 = vmax.f32 %v1884_v62, 0.0  ;;  %v1863_v60 = vmax.f32 %v3244_v58, %v1845_v29  ;;  %v1837_v14 = vmax.f32 %v1149_v33, %v1595_v23  ;;  %v1672_v11 = vpop.f32.mrb[30].mxu1  ;;  %v1597_v7 = vpop.f32.mrb[29].mxu0  ;;  %v3248_v33 = vmax.f32 %v2990_v49, %v3030_v8 }
 0x122   :  { %1919 = vst [vmem:[%s3231_s6] sm:$0xff] %v1901_v27  ;;  %v1892_v0 = vadd.f32 %v3096_v54, %v1862_v28  ;;  %v1839_v6 = vmax.f32 %v1226_v40, %v1672_v11  ;;  %v1838_v9 = vmax.f32 %v1151_v35, %v1597_v7  ;;  %v1674_v15 = vpop.f32.mrb[31].mxu1  ;;  %v3251_v58 = vmax.f32 %v2986_v48, %v3040_v13 }
 0x123   :  { %1920 = vst [vmem:[%s3231_s6 + $0x8] sm:$0xff] %v1902_v31  ;;  %v1893_v46 = vadd.f32 %v3096_v54, %v1863_v60  ;;  %v1855_v53 = vmax.f32 %v3245_v47, %v1837_v14  ;;  %v1840_v61 = vmax.f32 %v1228_v41, %v1674_v15 }
 0x124   :  { %v1910_v62 = vmax.f32 %v1892_v0, 0.0  ;;  %v1857_v2 = vmax.f32 %v3246_v63, %v1839_v6  ;;  %v1856_v27 = vmax.f32 %v3247_v18, %v1838_v9  ;;  %v1601_v28 = vpop.f32.mrb[30].mxu0  ;;  %v3253_v9 = vmax.f32 %v2992_v43, %v3050_v19 }
 0x125   :  { %v1911_v29 = vmax.f32 %v1893_v46, 0.0  ;;  %v1885_v32 = vadd.f32 %v3090_v24, %v1855_v53  ;;  %v1858_v35 = vmax.f32 %v3248_v33, %v1840_v61  ;;  %v1846_v44 = vmax.f32 %v3074_v38, %v1601_v28  ;;  %v1678_v1 = vpop.f32.mrb[32].mxu1  ;;  %v1603_v36 = vpop.f32.mrb[31].mxu0  ;;  %v3259_v28 = vld [vmem:[#allocation4_spill] sm:$0xff] }
 0x126   :  { %1928 = vst [vmem:[%s3231_s6 + $0x48] sm:$0x3] %v1910_v62  ;;  %v1887_v3 = vadd.f32 %v3090_v24, %v1857_v2  ;;  %v1886_v45 = vadd.f32 %v3090_v24, %v1856_v27  ;;  %v1848_v4 = vmax.f32 %v1232_v56, %v1678_v1  ;;  %v1847_v5 = vmax.f32 %v3076_v39, %v1603_v36  ;;  %v1680_v37 = vpop.f32.mrb[33].mxu1  ;;  %v3262_v1 = vld [vmem:[#allocation5_spill] sm:$0xff] }
 0x127   :  { %1929 = vst [vmem:[%s3231_s6 + $0x50] sm:$0x3] %v1911_v29  ;;  %v1903_v49 = vmax.f32 %v1885_v32, 0.0  ;;  %v1888_v8 = vadd.f32 %v3090_v24, %v1858_v35  ;;  %v3249_v38 = vmax.f32 %v2984_v34, %v3034_v10  ;;  %v1849_v41 = vmax.f32 %v3082_v59, %v1680_v37 }
 0x128   :  { %v1905_v23 = vmax.f32 %v1887_v3, 0.0  ;;  %v1904_v31 = vmax.f32 %v1886_v45, 0.0  ;;  %v3250_v56 = vmax.f32 %v2996_v51, %v3038_v12  ;;  %v1865_v60 = vmax.f32 %v3251_v58, %v1847_v5  ;;  %v1749_v14 = vpop.f32.mrb[32].mxu0 }
 0x129   :  { %v1864_v40 = vmax.f32 %v3249_v38, %v1846_v44  ;;  %1921 = vst [vmem:[%s3231_s6 + $0x10] sm:$0xff] %v1903_v49  ;;  %v1906_v11 = vmax.f32 %v1888_v8, 0.0  ;;  %v3252_v10 = vmax.f32 %v2998_v52, %v3046_v17  ;;  %v1841_v7 = vmax.f32 %v3078_v42, %v1749_v14  ;;  %v2084_v51 = vpop.f32.mrb[34].mxu1  ;;  %v1751_v12 = vpop.f32.mrb[33].mxu0  ;;  %v3261_v44 = vld [vmem:[#allocation3_spill] sm:$0xff] }
 0x12a   :  { %v1866_v39 = vmax.f32 %v3250_v56, %v1848_v4  ;;  %1923 = vst [vmem:[%s3231_s6 + $0x20] sm:$0xff] %v1905_v23  ;;  %1922 = vst [vmem:[%s3231_s6 + $0x18] sm:$0xff] %v1904_v31  ;;  %v1895_v13 = vadd.f32 %v3096_v54, %v1865_v60  ;;  %v1852_v0 = vmax.f32 %v3088_v26, %v2084_v51  ;;  %v1826_v17 = vpop.f32.mrb[35].mxu1 }
 0x12b   :  { %v1894_v34 = vadd.f32 %v3096_v54, %v1864_v40  ;;  %v1867_v59 = vmax.f32 %v3252_v10, %v1849_v41  ;;  %v1842_v52 = vmax.f32 %v3080_v16, %v1751_v12  ;;  %1924 = vst [vmem:[%s3231_s6 + $0x28] sm:$0xff] %v1906_v11  ;;  %v1859_v15 = vmax.f32 %v3253_v9, %v1841_v7 }
 0x12c   :  { %v1896_v48 = vadd.f32 %v3096_v54, %v1866_v39  ;;  %v1843_v46 = vmax.f32 %v3092_v20, %v1826_v17  ;;  %v1913_v53 = vmax.f32 %v1895_v13, 0.0  ;;  %v3254_v26 = vmax.f32 %v3004_v55, %v3054_v21  ;;  %v1755_v63 = vpop.f32.mrb[34].mxu0 }
 0x12d   :  { %v1912_v42 = vmax.f32 %v1894_v34, 0.0  ;;  %v1897_v6 = vadd.f32 %v3096_v54, %v1867_v59  ;;  %v3255_v61 = vmax.f32 %v2994_v50, %v3056_v22  ;;  %v1889_v43 = vadd.f32 %v3090_v24, %v1859_v15  ;;  %v1757_v55 = vpop.f32.mrb[35].mxu0  ;;  %v3257_v22 = vld [vmem:[#allocation6_spill] sm:$0xff] }
 0x12e   :  { %v1914_v47 = vmax.f32 %v1896_v48, 0.0  ;;  %v1870_v16 = vmax.f32 %v3254_v26, %v1852_v0  ;;  %v3256_v19 = vmax.f32 %v3006_v57, %v3062_v25  ;;  %v1850_v18 = vmax.f32 %v3084_v30, %v1755_v63  ;;  %1931 = vst [vmem:[%s3231_s6 + $0x60] sm:$0x3] %v1913_v53  ;;  %v3258_v30 = vld [vmem:[#allocation2_spill] sm:$0xff] }
 0x12f   :  { %v1860_v62 = vmax.f32 %v3255_v61, %v1842_v52  ;;  %1930 = vst [vmem:[%s3231_s6 + $0x58] sm:$0x3] %v1912_v42  ;;  %v1915_v2 = vmax.f32 %v1897_v6, 0.0  ;;  %v1851_v27 = vmax.f32 %v3257_v22, %v1757_v55  ;;  %v1907_v57 = vmax.f32 %v1889_v43, 0.0 }
 0x130   :  { %v1861_v20 = vmax.f32 %v3256_v19, %v1843_v46  ;;  %1932 = vst [vmem:[%s3231_s6 + $0x68] sm:$0x3] %v1914_v47  ;;  %v1900_v50 = vadd.f32 %v3096_v54, %v1870_v16  ;;  %v3260_v29 = vmax.f32 %v3258_v30, %v3259_v28  ;;  %v3263_v36 = vmax.f32 %v3261_v44, %v3262_v1 }
 0x131   :  { %v1890_v21 = vadd.f32 %v3090_v24, %v1860_v62  ;;  %1933 = vst [vmem:[%s3231_s6 + $0x70] sm:$0x3] %v1915_v2  ;;  %1925 = vst [vmem:[%s3231_s6 + $0x30] sm:$0xff] %v1907_v57 }
 0x132   :  { %v1891_v25 = vadd.f32 %v3090_v24, %v1861_v20  ;;  %v1868_v32 = vmax.f32 %v3260_v29, %v1850_v18  ;;  %v1918_v33 = vmax.f32 %v1900_v50, 0.0  ;;  %v1869_v3 = vmax.f32 %v3263_v36, %v1851_v27 }
 0x133   :  { %v1908_v35 = vmax.f32 %v1890_v21, 0.0 }
 0x134   :  { %v1909_v45 = vmax.f32 %v1891_v25, 0.0  ;;  %v1898_v4 = vadd.f32 %v3096_v54, %v1868_v32  ;;  %1936 = vst [vmem:[%s3231_s6 + $0x88] sm:$0x3] %v1918_v33  ;;  %v1899_v24 = vadd.f32 %v3096_v54, %v1869_v3 }
 0x135   :  { %1926 = vst [vmem:[%s3231_s6 + $0x38] sm:$0xff] %v1908_v35 }
 0x136   :  { %1927 = vst [vmem:[%s3231_s6 + $0x40] sm:$0xff] %v1909_v45  ;;  %v1916_v5 = vmax.f32 %v1898_v4, 0.0  ;;  %v1917_v37 = vmax.f32 %v1899_v24, 0.0 }
 0x138   :  { %1934 = vst [vmem:[%s3231_s6 + $0x78] sm:$0x3] %v1916_v5  ;;  %1935 = vst [vmem:[%s3231_s6 + $0x80] sm:$0x3] %v1917_v37 }

// kernel: lenet_mnist_forward.3
= control target key start
LH: loop header
LB: loop body
LE: loop exit
PB: predicated region body
PF: predicated region fallthrough
CT: control target
= control target key end

     0   :  { %v4349_v3 = vmov 0   ;;  %vm73_vm0 = vcmask 998400   ;;  %vm83_vm1 = vcmask 1041408   ;;  %vm4350_vm2 = vmmov 1   ;;  %s4356_s30 = smov 104   ;;  %s4357_s15 = smov 96   ;;  %s5715_s0 = inlined_call_operand.vmem [shape: f32[250,128], index: 0, kind: input, shape index: {}]   ;;  %s5716_s1 = inlined_call_operand.vmem [shape: f32[250,128], index: 1, kind: input, shape index: {}]   ;;  %s5717_s4 = inlined_call_operand.vmem [shape: f32[20,250], index: 4, kind: input, shape index: {}]   ;;  %s5718_s2 = inlined_call_operand.vmem [shape: f32[250,128], index: 2, kind: input, shape index: {}]   ;;  %s5719_s3 = inlined_call_operand.vmem [shape: f32[250,128], index: 3, kind: input, shape index: {}]   ;;  %s5720_s5 = inlined_call_operand.vmem [shape: f32[20,1], index: 5, kind: input, shape index: {}]   ;;  %s5721_s6 = inlined_call_operand.vmem [shape: f32[16,50,20], index: 6, kind: input, shape index: {}]   ;;  %s5722_s7 = inlined_call_operand.vmem [shape: f32[50,1], index: 7, kind: input, shape index: {}]   ;;  %s5723_s9 = inlined_call_operand.vmem [shape: f32[10,1], index: 9, kind: input, shape index: {}]   ;;  %s5724_s8 = inlined_call_operand.vmem [shape: f32[10,50], index: 8, kind: input, shape index: {}]   ;;  %s5725_s10 = inlined_call_operand.vmem [shape: f32[1,10,8], index: 10, kind: output, shape index: {}]  }
   0x1   :  { %v57_v0 = vld [vmem:[%s5715_s0 + $0x80] sm:$0xff]  ;;  %v58_v1 = vld [vmem:[%s5715_s0 + $0x88] sm:$0xff]  ;;  %4272 = vset.pattern.permute.xlu0 %v4349_v3  ;;  %4273 = vset.pattern.permute.xlu1 %v4349_v3  ;;  %v59_v12 = vld [vmem:[%s5715_s0 + $0x90] sm:$0xff]  ;;  %vm4352_vm4 = vmmov 0   ;;  %vm593_vm5 = vcmask 1043456   ;;  %vm571_vm6 = vcmask 162816  }
   0x2   :  { %v183_v2 = vld [vmem:[%s5716_s1 + $0x80] sm:$0xff]  ;;  %v4060_v4 = vpack.c.bf16 %v58_v1, %v57_v0  ;;  %v184_v5 = vld [vmem:[%s5716_s1 + $0x88] sm:$0xff]  ;;  %v60_v14 = vld [vmem:[%s5715_s0 + $0x98] sm:$0xff]  ;;  %s4358_s16 = smov 88   ;;  %s4359_s20 = smov 80   ;;  %vm2933_vm7 = vcmask 408576  }
   0x3   :  { %v41_v6 = vld [vmem:[%s5715_s0] sm:$0xff]  ;;  %v42_v7 = vld [vmem:[%s5715_s0 + $0x8] sm:$0xff]  ;;  %v4093_v8 = vpack.c.bf16 %v184_v5, %v183_v2  ;;  %v185_v15 = vld [vmem:[%s5716_s1 + $0x90] sm:$0xff]  ;;  %v4064_v17 = vpack.c.bf16 %v60_v14, %v59_v12  ;;  %s4360_s21 = smov 72   ;;  %s4361_s26 = smov 64   ;;  %vm3020_vm8 = vcmask 58368  }
   0x4   :  { %v4062_v9 = vpack.c.bf16 %v42_v7, %v41_v6  ;;  %v167_v10 = vld [vmem:[%s5716_s1] sm:$0xff]  ;;  %v168_v11 = vld [vmem:[%s5716_s1 + $0x8] sm:$0xff]  ;;  %4061 = vmatprep.subr.bf16.mxu0 %v4060_v4  ;;  %v186_v16 = vld [vmem:[%s5716_s1 + $0x98] sm:$0xff]  ;;  %s4362_s27 = smov 56   ;;  %s4365_s28 = smov 32   ;;  %vm3018_vm9 = vcmask 64512  }
   0x5   :  { %v4095_v13 = vpack.c.bf16 %v168_v11, %v167_v10  ;;  %4094 = vmatprep.subr.bf16.mxu1 %v4093_v8  ;;  %v4097_v18 = vpack.c.bf16 %v186_v16, %v185_v15  ;;  %v43_v19 = vld [vmem:[%s5715_s0 + $0x10] sm:$0xff]  ;;  %v44_v20 = vld [vmem:[%s5715_s0 + $0x18] sm:$0xff]  ;;  %v61_v24 = vld [vmem:[%s5715_s0 + $0xa0] sm:$0xff]  ;;  %s4368_s29 = smov 8  }
   0x6   :  { %4063 = vmatpush3.bf16.msra.mxu0 %v4062_v9  ;;  %v169_v21 = vld [vmem:[%s5716_s1 + $0x10] sm:$0xff]  ;;  %v4066_v22 = vpack.c.bf16 %v44_v20, %v43_v19  ;;  %v170_v23 = vld [vmem:[%s5716_s1 + $0x18] sm:$0xff]  ;;  %v62_v25 = vld [vmem:[%s5715_s0 + $0xa8] sm:$0xff] }
   0x7   :  { %4096 = vmatpush3.bf16.msra.mxu1 %v4095_v13  ;;  %4065 = vmatprep.subr.bf16.mxu0 %v4064_v17  ;;  %v4099_v26 = vpack.c.bf16 %v170_v23, %v169_v21  ;;  %v4068_v27 = vpack.c.bf16 %v62_v25, %v61_v24  ;;  %v187_v28 = vld [vmem:[%s5716_s1 + $0xa0] sm:$0xff]  ;;  %v188_v29 = vld [vmem:[%s5716_s1 + $0xa8] sm:$0xff]  ;;  %v63_v36 = vld [vmem:[%s5715_s0 + $0xb0] sm:$0xff]  ;;  %v4351_v25 = vmov 0.0|0.0  }
   0x8   :  { %4098 = vmatprep.subr.bf16.mxu1 %v4097_v18  ;;  %v45_v30 = vld [vmem:[%s5715_s0 + $0x20] sm:$0xff]  ;;  %v4101_v31 = vpack.c.bf16 %v188_v29, %v187_v28  ;;  %v46_v32 = vld [vmem:[%s5715_s0 + $0x28] sm:$0xff]  ;;  %v64_v37 = vld [vmem:[%s5715_s0 + $0xb8] sm:$0xff] }
   0x9   :  { %v171_v33 = vld [vmem:[%s5716_s1 + $0x20] sm:$0xff]  ;;  %v172_v34 = vld [vmem:[%s5716_s1 + $0x28] sm:$0xff]  ;;  %v4070_v35 = vpack.c.bf16 %v46_v32, %v45_v30  ;;  %v189_v38 = vld [vmem:[%s5716_s1 + $0xb0] sm:$0xff]  ;;  %v4072_v40 = vpack.c.bf16 %v64_v37, %v63_v36 }
   0xa   :  { %4067 = vmatpush3.bf16.msra.mxu0 %v4066_v22  ;;  %v4103_v39 = vpack.c.bf16 %v172_v34, %v171_v33  ;;  %v190_v41 = vld [vmem:[%s5716_s1 + $0xb8] sm:$0xff]  ;;  %v47_v42 = vld [vmem:[%s5715_s0 + $0x30] sm:$0xff]  ;;  %v65_v47 = vld [vmem:[%s5715_s0 + $0xc0] sm:$0xff] }
   0xb   :  { %4100 = vmatpush3.bf16.msra.mxu1 %v4099_v26  ;;  %4069 = vmatprep.subr.bf16.mxu0 %v4068_v27  ;;  %v48_v43 = vld [vmem:[%s5715_s0 + $0x38] sm:$0xff]  ;;  %v4105_v44 = vpack.c.bf16 %v190_v41, %v189_v38  ;;  %v173_v45 = vld [vmem:[%s5716_s1 + $0x30] sm:$0xff]  ;;  %v66_v48 = vld [vmem:[%s5715_s0 + $0xc8] sm:$0xff] }
   0xc   :  { %4102 = vmatprep.subr.bf16.mxu1 %v4101_v31  ;;  %v174_v46 = vld [vmem:[%s5716_s1 + $0x38] sm:$0xff]  ;;  %v191_v49 = vld [vmem:[%s5716_s1 + $0xc0] sm:$0xff]  ;;  %v192_v50 = vld [vmem:[%s5716_s1 + $0xc8] sm:$0xff]  ;;  %v4074_v51 = vpack.c.bf16 %v48_v43, %v47_v42  ;;  %v4076_v53 = vpack.c.bf16 %v66_v48, %v65_v47 }
   0xd   :  { %v4107_v52 = vpack.c.bf16 %v174_v46, %v173_v45  ;;  %v49_v54 = vld [vmem:[%s5715_s0 + $0x40] sm:$0xff]  ;;  %v50_v55 = vld [vmem:[%s5715_s0 + $0x48] sm:$0xff]  ;;  %v4109_v57 = vpack.c.bf16 %v192_v50, %v191_v49  ;;  %v67_v59 = vld [vmem:[%s5715_s0 + $0xd0] sm:$0xff] }
   0xe   :  { %4071 = vmatpush3.bf16.msra.mxu0 %v4070_v35  ;;  %v175_v56 = vld [vmem:[%s5716_s1 + $0x40] sm:$0xff]  ;;  %v176_v58 = vld [vmem:[%s5716_s1 + $0x48] sm:$0xff]  ;;  %v68_v60 = vld [vmem:[%s5715_s0 + $0xd8] sm:$0xff]  ;;  %v4078_v63 = vpack.c.bf16 %v50_v55, %v49_v54 }
   0xf   :  { %4104 = vmatpush3.bf16.msra.mxu1 %v4103_v39  ;;  %4073 = vmatprep.subr.bf16.mxu0 %v4072_v40  ;;  %v193_v61 = vld [vmem:[%s5716_s1 + $0xd0] sm:$0xff]  ;;  %v194_v62 = vld [vmem:[%s5716_s1 + $0xd8] sm:$0xff]  ;;  %v4111_v0 = vpack.c.bf16 %v176_v58, %v175_v56  ;;  %v4080_v1 = vpack.c.bf16 %v68_v60, %v67_v59  ;;  %v69_v7 = vld [vmem:[%s5715_s0 + $0xe0] sm:$0xff] }
  0x10   :  { %4106 = vmatprep.subr.bf16.mxu1 %v4105_v44  ;;  %v51_v2 = vld [vmem:[%s5715_s0 + $0x50] sm:$0xff]  ;;  %v52_v3 = vld [vmem:[%s5715_s0 + $0x58] sm:$0xff]  ;;  %v4113_v5 = vpack.c.bf16 %v194_v62, %v193_v61  ;;  %v70_v8 = vld [vmem:[%s5715_s0 + $0xe8] sm:$0xff] }
  0x11   :  { %v177_v4 = vld [vmem:[%s5716_s1 + $0x50] sm:$0xff]  ;;  %v178_v6 = vld [vmem:[%s5716_s1 + $0x58] sm:$0xff]  ;;  %v195_v9 = vld [vmem:[%s5716_s1 + $0xe0] sm:$0xff]  ;;  %v4082_v11 = vpack.c.bf16 %v52_v3, %v51_v2  ;;  %v4084_v14 = vpack.c.bf16 %v70_v8, %v69_v7 }
  0x12   :  { %4075 = vmatpush3.bf16.msra.mxu0 %v4074_v51  ;;  %v196_v10 = vld [vmem:[%s5716_s1 + $0xe8] sm:$0xff]  ;;  %v53_v12 = vld [vmem:[%s5715_s0 + $0x60] sm:$0xff]  ;;  %v4115_v13 = vpack.c.bf16 %v178_v6, %v177_v4  ;;  %v71_v20 = vld [vmem:[%s5715_s0 + $0xf0] sm:$0xff] }
  0x13   :  { %4108 = vmatpush3.bf16.msra.mxu1 %v4107_v52  ;;  %4077 = vmatprep.subr.bf16.mxu0 %v4076_v53  ;;  %v54_v15 = vld [vmem:[%s5715_s0 + $0x68] sm:$0xff]  ;;  %v179_v16 = vld [vmem:[%s5716_s1 + $0x60] sm:$0xff]  ;;  %v4117_v18 = vpack.c.bf16 %v196_v10, %v195_v9  ;;  %v72_v21 = vld [vmem:[%s5715_s0 + $0xf8] sm:$0x3] }
  0x14   :  { %4110 = vmatprep.subr.bf16.mxu1 %v4109_v57  ;;  %v4592_v17 = vld [vmem:[%s5717_s4 + $0x8] sm:$0xff]  ;;  %v197_v22 = vld [vmem:[%s5716_s1 + $0xf0] sm:$0xff]  ;;  %v198_v23 = vld [vmem:[%s5716_s1 + $0xf8] sm:$0x3]  ;;  %v4086_v24 = vpack.c.bf16 %v54_v15, %v53_v12  ;;  %v4088_v27 = vpack.c.bf16 %v72_v21, %v71_v20 }
  0x15   :  { %v180_v19 = vld [vmem:[%s5716_s1 + $0x68] sm:$0xff]  ;;  %3027 = vmatprep.mubr.msk.f32.mxu0 %vm73_vm0, %v4592_v17  ;;  %3031 = vmatprep.mubr.msk.f32.mxu1 %vm73_vm0, %v4592_v17  ;;  %vm4614_vm3 = vmpackc.low %vm83_vm1, %vm4350_vm2  ;;  %v55_v28 = vld [vmem:[%s5715_s0 + $0x70] sm:$0xff]  ;;  %v4121_v31 = vpack.c.bf16 %v198_v23, %v197_v22 }
  0x16   :  { %4079 = vmatpush3.bf16.msra.mxu0 %v4078_v63  ;;  %v4119_v26 = vpack.c.bf16 %v180_v19, %v179_v16  ;;  %v56_v29 = vld [vmem:[%s5715_s0 + $0x78] sm:$0xff]  ;;  %v181_v30 = vld [vmem:[%s5716_s1 + $0x70] sm:$0xff]  ;;  %v301_v33 = vld [vmem:[%s5718_s2 + $0x80] sm:$0xff]  ;;  %s4363_s0 = smov 48  }
  0x17   :  { %4112 = vmatpush3.bf16.msra.mxu1 %v4111_v0  ;;  %4081 = vmatprep.subr.bf16.mxu0 %v4080_v1  ;;  %v182_v32 = vld [vmem:[%s5716_s1 + $0x78] sm:$0xff]  ;;  %v302_v34 = vld [vmem:[%s5718_s2 + $0x88] sm:$0xff]  ;;  %v416_v35 = vld [vmem:[%s5719_s3 + $0x80] sm:$0xff]  ;;  %v4091_v37 = vpack.c.bf16 %v56_v29, %v55_v28  ;;  %s4355_s1 = smov 112  }
  0x18   :  { %4114 = vmatprep.subr.bf16.mxu1 %v4113_v5  ;;  %v417_v36 = vld [vmem:[%s5719_s3 + $0x88] sm:$0xff]  ;;  %v4124_v38 = vpack.c.bf16 %v182_v32, %v181_v30  ;;  %v4126_v39 = vpack.c.bf16 %v302_v34, %v301_v33  ;;  %v285_v40 = vld [vmem:[%s5718_s2] sm:$0xff]  ;;  %v303_v45 = vld [vmem:[%s5718_s2 + $0x90] sm:$0xff] }
  0x19   :  { %v286_v41 = vld [vmem:[%s5718_s2 + $0x8] sm:$0xff]  ;;  %v400_v42 = vld [vmem:[%s5719_s3] sm:$0xff]  ;;  %v4159_v43 = vpack.c.bf16 %v417_v36, %v416_v35  ;;  %v304_v46 = vld [vmem:[%s5718_s2 + $0x98] sm:$0xff] }
  0x1a   :  { %4083 = vmatpush3.bf16.msra.mxu0 %v4082_v11  ;;  %v401_v44 = vld [vmem:[%s5719_s3 + $0x8] sm:$0xff]  ;;  %v418_v47 = vld [vmem:[%s5719_s3 + $0x90] sm:$0xff]  ;;  %v419_v48 = vld [vmem:[%s5719_s3 + $0x98] sm:$0xff]  ;;  %v4128_v50 = vpack.c.bf16 %v286_v41, %v285_v40  ;;  %v4130_v52 = vpack.c.bf16 %v304_v46, %v303_v45 }
  0x1b   :  { %4116 = vmatpush3.bf16.msra.mxu1 %v4115_v13  ;;  %4085 = vmatprep.subr.bf16.mxu0 %v4084_v14  ;;  %v4673_v49 = vld [vmem:[%s5717_s4] sm:$0xff]  ;;  %v4161_v51 = vpack.c.bf16 %v401_v44, %v400_v42  ;;  %v287_v53 = vld [vmem:[%s5718_s2 + $0x10] sm:$0xff]  ;;  %v288_v54 = vld [vmem:[%s5718_s2 + $0x18] sm:$0xff]  ;;  %v4163_v56 = vpack.c.bf16 %v419_v48, %v418_v47 }
  0x1c   :  { %4118 = vmatprep.subr.bf16.mxu1 %v4117_v18  ;;  %v402_v55 = vld [vmem:[%s5719_s3 + $0x10] sm:$0xff]  ;;  %v403_v57 = vld [vmem:[%s5719_s3 + $0x18] sm:$0xff]  ;;  %v305_v58 = vld [vmem:[%s5718_s2 + $0xa0] sm:$0xff]  ;;  %v4132_v62 = vpack.c.bf16 %v288_v54, %v287_v53 }
  0x1d   :  { %v306_v59 = vld [vmem:[%s5718_s2 + $0xa8] sm:$0xff]  ;;  %v420_v60 = vld [vmem:[%s5719_s3 + $0xa0] sm:$0xff]  ;;  %v4165_v1 = vpack.c.bf16 %v403_v57, %v402_v55  ;;  %v307_v5 = vld [vmem:[%s5718_s2 + $0xb0] sm:$0xff] }
  0x1e   :  { %4087 = vmatpush3.bf16.msra.mxu0 %v4086_v24  ;;  %v421_v61 = vld [vmem:[%s5719_s3 + $0xa8] sm:$0xff]  ;;  %v289_v63 = vld [vmem:[%s5718_s2 + $0x20] sm:$0xff]  ;;  %v4134_v2 = vpack.c.bf16 %v306_v59, %v305_v58  ;;  %v308_v7 = vld [vmem:[%s5718_s2 + $0xb8] sm:$0xff] }
  0x1f   :  { %4120 = vmatpush3.bf16.msra.mxu1 %v4119_v26  ;;  %4090 = vmatprep.subr.msk.bf16.mxu0 %vm4614_vm3, %v4088_v27  ;;  %v290_v0 = vld [vmem:[%s5718_s2 + $0x28] sm:$0xff]  ;;  %v404_v3 = vld [vmem:[%s5719_s3 + $0x20] sm:$0xff]  ;;  %v4167_v6 = vpack.c.bf16 %v421_v61, %v420_v60  ;;  %v4722_v8 = vld [vmem:[%s5717_s4 + $0x18] sm:$0xff]  ;;  %v4138_v16 = vpack.c.bf16 %v308_v7, %v307_v5 }
  0x20   :  { %4123 = vmatprep.subr.msk.bf16.mxu1 %vm4614_vm3, %v4121_v31  ;;  %v405_v4 = vld [vmem:[%s5719_s3 + $0x28] sm:$0xff]  ;;  %v4727_v9 = vld [vmem:[%s5717_s4 + $0x10] sm:$0xff]  ;;  %v423_v11 = vld [vmem:[%s5719_s3 + $0xb8] sm:$0xff]  ;;  %v4136_v12 = vpack.c.bf16 %v290_v0, %v289_v63 }
  0x21   :  { %v422_v10 = vld [vmem:[%s5719_s3 + $0xb0] sm:$0xff]  ;;  %v292_v14 = vld [vmem:[%s5718_s2 + $0x38] sm:$0xff]  ;;  %v4169_v15 = vpack.c.bf16 %v405_v4, %v404_v3  ;;  %v4755_v20 = vld [vmem:[%s5717_s4 + $0x28] sm:$0xf] }
  0x22   :  { %4092 = vmatpush3.bf16.msra.mxu0 %v4091_v37  ;;  %v291_v13 = vld [vmem:[%s5718_s2 + $0x30] sm:$0xff]  ;;  %v407_v19 = vld [vmem:[%s5719_s3 + $0x38] sm:$0xff]  ;;  %v4171_v21 = vpack.c.bf16 %v423_v11, %v422_v10  ;;  %v309_v22 = vld [vmem:[%s5718_s2 + $0xc0] sm:$0xff] }
  0x23   :  { %4125 = vmatpush3.bf16.msra.mxu1 %v4124_v38  ;;  %4127 = vmatprep.subr.bf16.mxu0 %v4126_v39  ;;  %v406_v18 = vld [vmem:[%s5719_s3 + $0x30] sm:$0xff]  ;;  %v310_v23 = vld [vmem:[%s5718_s2 + $0xc8] sm:$0xff]  ;;  %v4767_v24 = vld [vmem:[%s5717_s4 + $0x20] sm:$0xf]  ;;  %v4140_v28 = vpack.c.bf16 %v292_v14, %v291_v13 }
  0x24   :  { %4160 = vmatprep.subr.bf16.mxu1 %v4159_v43  ;;  %v424_v26 = vld [vmem:[%s5719_s3 + $0xc0] sm:$0xff]  ;;  %v425_v27 = vld [vmem:[%s5719_s3 + $0xc8] sm:$0xff]  ;;  %v4173_v30 = vpack.c.bf16 %v407_v19, %v406_v18  ;;  %v4142_v31 = vpack.c.bf16 %v310_v23, %v309_v22  ;;  %v311_v37 = vld [vmem:[%s5718_s2 + $0xd0] sm:$0xff] }
  0x25   :  { %152 = vmatmul.mubr.f32.vlgmr.msra.gmra.mrb[0].mxu0 %v4673_v49  ;;  %v293_v29 = vld [vmem:[%s5718_s2 + $0x40] sm:$0xff]  ;;  %v294_v32 = vld [vmem:[%s5718_s2 + $0x48] sm:$0xff]  ;;  %v4175_v35 = vpack.c.bf16 %v425_v27, %v424_v26  ;;  %v312_v38 = vld [vmem:[%s5718_s2 + $0xd8] sm:$0xff] }
  0x26   :  { %267 = vmatmul.mubr.f32.vlgmr.msra.gmra.mrb[0].mxu1 %v4673_v49  ;;  %4129 = vmatpush3.bf16.msra.mxu0 %v4128_v50  ;;  %v408_v33 = vld [vmem:[%s5719_s3 + $0x40] sm:$0xff]  ;;  %v409_v36 = vld [vmem:[%s5719_s3 + $0x48] sm:$0xff]  ;;  %v426_v39 = vld [vmem:[%s5719_s3 + $0xd0] sm:$0xff]  ;;  %v4144_v42 = vpack.c.bf16 %v294_v32, %v293_v29  ;;  %v4146_v45 = vpack.c.bf16 %v312_v38, %v311_v37 }
  0x27   :  { %4162 = vmatpush3.bf16.msra.mxu1 %v4161_v51  ;;  %4131 = vmatprep.subr.bf16.mxu0 %v4130_v52  ;;  %v521_v34 = vld [vmem:[%s5720_s5] sm:$0xff]  ;;  %v427_v40 = vld [vmem:[%s5719_s3 + $0xd8] sm:$0xff]  ;;  %v523_v41 = vld [vmem:[%s5720_s5 + $0x10] sm:$0xf]  ;;  %v4177_v44 = vpack.c.bf16 %v409_v36, %v408_v33 }
  0x28   :  { %4164 = vmatprep.subr.bf16.mxu1 %v4163_v56  ;;  %3028 = vmatprep.mubr.msk.f32.mxu0 %vm73_vm0, %v4722_v8  ;;  %v295_v43 = vld [vmem:[%s5718_s2 + $0x50] sm:$0xff]  ;;  %v296_v46 = vld [vmem:[%s5718_s2 + $0x58] sm:$0xff]  ;;  %v522_v47 = vld [vmem:[%s5720_s5 + $0x8] sm:$0xff]  ;;  %v4179_v48 = vpack.c.bf16 %v427_v40, %v426_v39  ;;  %s4364_s5 = smov 40  }
  0x29   :  { %3032 = vmatprep.mubr.msk.f32.mxu1 %vm73_vm0, %v4722_v8  ;;  %157 = vmatmul.mubr.f32.gmra.mrb[2].mxu0 %v4727_v9  ;;  %v411_v50 = vld [vmem:[%s5719_s3 + $0x58] sm:$0xff]  ;;  %v313_v51 = vld [vmem:[%s5718_s2 + $0xe0] sm:$0xff]  ;;  %v314_v52 = vld [vmem:[%s5718_s2 + $0xe8] sm:$0xff]  ;;  %v4148_v55 = vpack.c.bf16 %v296_v46, %v295_v43 }
  0x2a   :  { %4133 = vmatpush3.bf16.msra.mxu0 %v4132_v62  ;;  %272 = vmatmul.mubr.f32.gmra.mrb[2].mxu1 %v4727_v9  ;;  %v428_v53 = vld [vmem:[%s5719_s3 + $0xe0] sm:$0xff]  ;;  %v429_v54 = vld [vmem:[%s5719_s3 + $0xe8] sm:$0xff]  ;;  %v4150_v57 = vpack.c.bf16 %v314_v52, %v313_v51  ;;  %v315_v63 = vld [vmem:[%s5718_s2 + $0xf0] sm:$0xff] }
  0x2b   :  { %4166 = vmatpush3.bf16.msra.mxu1 %v4165_v1  ;;  %4135 = vmatprep.subr.bf16.mxu0 %v4134_v2  ;;  %v297_v58 = vld [vmem:[%s5718_s2 + $0x60] sm:$0xff]  ;;  %v298_v59 = vld [vmem:[%s5718_s2 + $0x68] sm:$0xff]  ;;  %v4183_v61 = vpack.c.bf16 %v429_v54, %v428_v53  ;;  %v316_v0 = vld [vmem:[%s5718_s2 + $0xf8] sm:$0x3] }
  0x2c   :  { %4168 = vmatprep.subr.bf16.mxu1 %v4167_v6  ;;  %3029 = vmatprep.mubr.msk.f32.mxu0 %vm73_vm0, %v4755_v20  ;;  %v412_v60 = vld [vmem:[%s5719_s3 + $0x60] sm:$0xff]  ;;  %v413_v62 = vld [vmem:[%s5719_s3 + $0x68] sm:$0xff]  ;;  %v430_v1 = vld [vmem:[%s5719_s3 + $0xf0] sm:$0xff]  ;;  %v4152_v3 = vpack.c.bf16 %v298_v59, %v297_v58  ;;  %v4154_v5 = vpack.c.bf16 %v316_v0, %v315_v63 }
  0x2d   :  { %3033 = vmatprep.mubr.msk.f32.mxu1 %vm73_vm0, %v4755_v20  ;;  %162 = vmatmul.mubr.f32.gmra.mrb[4].mxu0 %v4767_v24  ;;  %v431_v2 = vld [vmem:[%s5719_s3 + $0xf8] sm:$0x3]  ;;  %v4185_v4 = vpack.c.bf16 %v413_v62, %v412_v60  ;;  %v299_v6 = vld [vmem:[%s5718_s2 + $0x70] sm:$0xff] }
  0x2e   :  { %4137 = vmatpush3.bf16.msra.mxu0 %v4136_v12  ;;  %277 = vmatmul.mubr.f32.gmra.mrb[4].mxu1 %v4767_v24  ;;  %v300_v7 = vld [vmem:[%s5718_s2 + $0x78] sm:$0xff]  ;;  %v4187_v10 = vpack.c.bf16 %v431_v2, %v430_v1  ;;  %v414_v11 = vld [vmem:[%s5719_s3 + $0x70] sm:$0xff]  ;;  %s4354_s2 = smov 120  }
  0x2f   :  { %4170 = vmatpush3.bf16.msra.mxu1 %v4169_v15  ;;  %4139 = vmatprep.subr.bf16.mxu0 %v4138_v16  ;;  %v415_v12 = vld [vmem:[%s5719_s3 + $0x78] sm:$0xff]  ;;  %v4157_v13 = vpack.c.bf16 %v300_v7, %v299_v6  ;;  %v545_v7 = vld [vmem:[%s5721_s6] sm:$0xff] }
  0x30   :  { %4172 = vmatprep.subr.bf16.mxu1 %v4171_v21  ;;  %3035 = vmatprep.mubr.msk.f32.mxu0 %vm73_vm0, %v4592_v17  ;;  %v4190_v14 = vpack.c.bf16 %v415_v12, %v414_v11  ;;  %v547_v11 = vld [vmem:[%s5721_s6 + $0x10] sm:$0xff]  ;;  %v548_v12 = vld [vmem:[%s5721_s6 + $0x18] sm:$0xff] }
  0x31   :  { %3039 = vmatprep.mubr.msk.f32.mxu1 %vm73_vm0, %v4592_v17  ;;  %526 = vperm.xlu0 %4272, %v521_v34   ;;  %v410_v17 = vld [vmem:[%s5719_s3 + $0x50] sm:$0xff]  ;;  %s4367_s3 = smov 16  }
  0x32   :  { %4141 = vmatpush3.bf16.msra.mxu0 %v4140_v28  ;;  %536 = vperm.xlu1 %4273, %v523_v41   ;;  %v4181_v56 = vpack.c.bf16 %v411_v50, %v410_v17 }
  0x33   :  { %4174 = vmatpush3.bf16.msra.mxu1 %v4173_v30  ;;  %4143 = vmatprep.subr.bf16.mxu0 %v4142_v31 }
  0x34   :  { %4176 = vmatprep.subr.bf16.mxu1 %v4175_v35 }
  0x35   :  { %531 = vperm.xlu0 %4272, %v522_v47  }
  0x36   :  { %4145 = vmatpush3.bf16.msra.mxu0 %v4144_v42 }
  0x37   :  { %4178 = vmatpush3.bf16.msra.mxu1 %v4177_v44  ;;  %4147 = vmatprep.subr.bf16.mxu0 %v4146_v45 }
  0x38   :  { %4180 = vmatprep.subr.bf16.mxu1 %v4179_v48 }
  0x3a   :  { %4149 = vmatpush3.bf16.msra.mxu0 %v4148_v55 }
  0x3b   :  { %4182 = vmatpush3.bf16.msra.mxu1 %v4181_v56  ;;  %4151 = vmatprep.subr.bf16.mxu0 %v4150_v57 }
  0x3c   :  { %4184 = vmatprep.subr.bf16.mxu1 %v4183_v61 }
  0x3e   :  { %4153 = vmatpush3.bf16.msra.mxu0 %v4152_v3 }
  0x3f   :  { %4186 = vmatpush3.bf16.msra.mxu1 %v4185_v4  ;;  %4156 = vmatprep.subr.msk.bf16.mxu0 %vm4614_vm3, %v4154_v5 }
  0x40   :  { %4189 = vmatprep.subr.msk.bf16.mxu1 %vm4614_vm3, %v4187_v10  ;;  %v546_v10 = vld [vmem:[%s5721_s6 + $0x8] sm:$0xff] }
  0x42   :  { %4158 = vmatpush3.bf16.msra.mxu0 %v4157_v13  ;;  %v549_v13 = vld [vmem:[%s5721_s6 + $0x20] sm:$0xff] }
  0x43   :  { %4191 = vmatpush3.bf16.msra.mxu1 %v4190_v14  ;;  %4192 = vmatprep.subr.bf16.mxu0 %v4351_v25  ;;  %v550_v14 = vld [vmem:[%s5721_s6 + $0x28] sm:$0xff] }
  0x44   :  { %4195 = vmatprep.subr.bf16.mxu1 %v4351_v25 }
  0x45   :  { %385 = vmatmul.mubr.f32.vlgmr.msra.gmra.mrb[6].mxu0 %v4673_v49 }
  0x46   :  { %500 = vmatmul.mubr.f32.vlgmr.msra.gmra.mrb[6].mxu1 %v4673_v49  ;;  %3036 = vmatprep.mubr.msk.f32.mxu0 %vm73_vm0, %v4722_v8 }
  0x47   :  { %3040 = vmatprep.mubr.msk.f32.mxu1 %vm73_vm0, %v4722_v8  ;;  %v4353_v8 = vmov 0.0  }
  0x49   :  { %390 = vmatmul.mubr.f32.gmra.mrb[8].mxu0 %v4727_v9 }
  0x4a   :  { %505 = vmatmul.mubr.f32.gmra.mrb[8].mxu1 %v4727_v9  ;;  %3037 = vmatprep.mubr.msk.f32.mxu0 %vm73_vm0, %v4755_v20 }
  0x4b   :  { %3041 = vmatprep.mubr.msk.f32.mxu1 %vm73_vm0, %v4755_v20 }
  0x4d   :  { %395 = vmatmul.mubr.f32.gmra.mrb[10].mxu0 %v4767_v24 }
  0x4e   :  { %510 = vmatmul.mubr.f32.gmra.mrb[10].mxu1 %v4767_v24  ;;  %3617 = vmatprep.mubr.msk.f32.mxu0 %vm4352_vm4, %v4353_v8 }
  0x4f   :  { %3644 = vmatprep.mubr.msk.f32.mxu1 %vm4352_vm4, %v4353_v8 }
  0xb0   :  { %v527_v46 = vpop.permute.xlu0 %526 }
  0xb1   :  { %v537_v63 = vpop.permute.xlu1 %536 }
  0xb4   :  { %v532_v60 = vpop.permute.xlu0 %531 }
  0xf8   :  { %v3310_v49 = vpop.f32.mrb[0].mxu0 }
  0xf9   :  { %v3351_v9 = vpop.f32.mrb[0].mxu1  ;;  %v3311_v15 = vpop.f32.mrb[1].mxu0 }
  0xfa   :  { %v3312_v16 = vadd.f32 %v3311_v15, %v3310_v49  ;;  %v3352_v18 = vpop.f32.mrb[1].mxu1  ;;  %v551_v49 = vld [vmem:[%s5721_s6 + $0x30] sm:$0x3]  ;;  %v2864_v15 = vld [vmem:[%s5722_s7 + $0x8] sm:$0xff] }
  0xfb   :  { %v3353_v19 = vadd.f32 %v3352_v18, %v3351_v9  ;;  %v2863_v9 = vld [vmem:[%s5722_s7] sm:$0xff]  ;;  %v2866_v18 = vld [vmem:[%s5722_s7 + $0x18] sm:$0xff] }
  0xfc   :  { %v3313_v23 = vpop.f32.mrb[2].mxu0 }
  0xfd   :  { %v282_v20 = vmax.f32 %v3312_v16, %v3353_v19  ;;  %v3354_v21 = vpop.f32.mrb[2].mxu1  ;;  %v3314_v26 = vpop.f32.mrb[3].mxu0  ;;  %v2865_v16 = vld [vmem:[%s5722_s7 + $0x10] sm:$0xff]  ;;  %v2867_v19 = vld [vmem:[%s5722_s7 + $0x20] sm:$0xff] }
  0xfe   :  { %v3355_v22 = vpop.f32.mrb[3].mxu1  ;;  %v3315_v27 = vadd.f32 %v3314_v26, %v3313_v23  ;;  %v2922_v23 = vld [vmem:[%s5723_s9 + $0x8] sm:$0x3] }
  0xff   :  { %v3356_v24 = vadd.f32 %v3355_v22, %v3354_v21  ;;  %v2869_v21 = vld [vmem:[%s5722_s7 + $0x30] sm:$0x3]  ;;  %v2921_v22 = vld [vmem:[%s5723_s9] sm:$0xff] }
 0x100   :  { %v3316_v31 = vpop.f32.mrb[4].mxu0 }
 0x101   :  { %v3357_v28 = vpop.f32.mrb[4].mxu1  ;;  %v283_v30 = vmax.f32 %v3315_v27, %v3356_v24  ;;  %v3317_v33 = vpop.f32.mrb[5].mxu0 }
 0x102   :  { %v3358_v29 = vpop.f32.mrb[5].mxu1  ;;  %v3318_v34 = vadd.f32 %v3317_v33, %v3316_v31 }
 0x103   :  { %v3359_v32 = vadd.f32 %v3358_v29, %v3357_v28 }
 0x105   :  { %v284_v35 = vmax.f32 %v3318_v34, %v3359_v32 }
 0x118   :  { %v3392_v36 = vpop.f32.mrb[6].mxu0 }
 0x119   :  { %v3433_v37 = vpop.f32.mrb[6].mxu1  ;;  %v3393_v38 = vpop.f32.mrb[7].mxu0 }
 0x11a   :  { %v3394_v39 = vadd.f32 %v3393_v38, %v3392_v36  ;;  %v3434_v40 = vpop.f32.mrb[7].mxu1  ;;  %v3042_v36 = vld [vmem:[%s5721_s6 + $0x38] sm:$0xff] }
 0x11b   :  { %v3435_v41 = vadd.f32 %v3434_v40, %v3433_v37  ;;  %v3043_v40 = vld [vmem:[%s5721_s6 + $0x40] sm:$0xff] }
 0x11c   :  { %v3395_v42 = vpop.f32.mrb[8].mxu0 }
 0x11d   :  { %v515_v43 = vmax.f32 %v3394_v39, %v3435_v41  ;;  %v3436_v44 = vpop.f32.mrb[8].mxu1  ;;  %v3396_v45 = vpop.f32.mrb[9].mxu0  ;;  %v3080_v41 = vld [vmem:[%s5721_s6 + $0xa8] sm:$0xff] }
 0x11e   :  { %v3397_v17 = vadd.f32 %v3396_v45, %v3395_v42  ;;  %v3437_v47 = vpop.f32.mrb[9].mxu1 }
 0x11f   :  { %v518_v48 = vmax.f32 %v282_v20, %v515_v43  ;;  %v3438_v50 = vadd.f32 %v3437_v47, %v3436_v44  ;;  %v2868_v20 = vld [vmem:[%s5722_s7 + $0x28] sm:$0xff]  ;;  %v3081_v47 = vld [vmem:[%s5721_s6 + $0xb0] sm:$0xff] }
 0x120   :  { %v3398_v51 = vpop.f32.mrb[10].mxu0 }
 0x121   :  { %v516_v52 = vmax.f32 %v3397_v17, %v3438_v50  ;;  %v3439_v53 = vpop.f32.mrb[10].mxu1  ;;  %v3399_v54 = vpop.f32.mrb[11].mxu0  ;;  %v539_v57 = vadd.f32 %v527_v46, %v518_v48  ;;  %v3044_v46 = vld [vmem:[%s5721_s6 + $0x48] sm:$0xff]  ;;  %v3045_v48 = vld [vmem:[%s5721_s6 + $0x50] sm:$0xff]  ;;  %v3082_v50 = vld [vmem:[%s5721_s6 + $0xb8] sm:$0xff] }
 0x122   :  { %v3400_v55 = vadd.f32 %v3399_v54, %v3398_v51  ;;  %v3440_v56 = vpop.f32.mrb[11].mxu1  ;;  %v3047_v54 = vld [vmem:[%s5721_s6 + $0x60] sm:$0xff] }
 0x123   :  { %v519_v58 = vmax.f32 %v283_v30, %v516_v52  ;;  %v3441_v59 = vadd.f32 %v3440_v56, %v3439_v53  ;;  %v542_v0 = vmax.f32 %v539_v57, 0.0  ;;  %v3046_v52 = vld [vmem:[%s5721_s6 + $0x58] sm:$0xff]  ;;  %v3083_v53 = vld [vmem:[%s5721_s6 + $0xc0] sm:$0xff]  ;;  %v3048_v57 = vld [vmem:[%s5721_s6 + $0x68] sm:$0x3] }
 0x125   :  { %v540_v61 = vadd.f32 %v532_v60, %v519_v58  ;;  %v517_v62 = vmax.f32 %v3400_v55, %v3441_v59  ;;  %v3084_v55 = vld [vmem:[%s5721_s6 + $0xc8] sm:$0xff]  ;;  %v3085_v60 = vld [vmem:[%s5721_s6 + $0xd0] sm:$0xff] }
 0x127   :  { %v543_v1 = vmax.f32 %v540_v61, 0.0  ;;  %v520_v2 = vmax.f32 %v284_v35, %v517_v62  ;;  %v3065_v61 = vld [vmem:[%s5721_s6 + $0x70] sm:$0xff] }
 0x129   :  { %v541_v3 = vadd.f32 %v537_v63, %v520_v2  ;;  %v4902_v4 = vpack.i.bf16 %v543_v1, %v542_v0  ;;  %v4196_v5 = vpack.c.bf16 %v543_v1, %v542_v0  ;;  %v3086_v0 = vld [vmem:[%s5721_s6 + $0xd8] sm:$0x3] }
 0x12b   :  { %v4904_v6 = vmax.f32 %v541_v3, 0.0  ;;  %4275 = vrot.lane.b32.xlu1 %v4902_v4, %s4354_s2  ;;  %4197 = vmatpush3.bf16.msra.mxu1 %v4196_v5  ;;  %v3066_v3 = vld [vmem:[%s5721_s6 + $0x78] sm:$0xff] }
 0x12c   :  { %3642 = vmatprep.subr.mxu1 %v4353_v8 }
 0x12d   :  { %567 = vrot.lane.b32.xlu0 %v4904_v6, %s4354_s2  ;;  %s4366_s2 = smov 24  }
 0x12f   :  { %4280 = vrot.lane.b32.xlu1 %v4902_v4, %s4355_s1  ;;  %3643 = vmatpush3.msk.msra.mxu1 %vm593_vm5, %v4904_v6 }
 0x130   :  { %3645 = vmatmul.mubr.msk.f32.vlgmr.msra.gmra.mrb[12].mxu1 %vm571_vm6, %v545_v7  ;;  %4201 = vmatprep.subr.bf16.mxu1 %v4351_v25  ;;  %v3067_v7 = vld [vmem:[%s5721_s6 + $0x80] sm:$0xff] }
 0x131   :  { %4285 = vrot.lane.b32.xlu0 %v4902_v4, %s4356_s30  ;;  %3647 = vmatprep.mubr.msk.f32.mxu1 %vm4352_vm4, %v4353_v8 }
 0x133   :  { %831 = vrot.lane.b32.xlu1 %v4904_v6, %s4355_s1 }
 0x134   :  { %3648 = vmatmul.mubr.msk.f32.gmra.mrb[14].mxu1 %vm571_vm6, %v546_v10  ;;  %v3111_v10 = vld [vmem:[%s5721_s6 + $0x120] sm:$0xff] }
 0x135   :  { %977 = vrot.lane.b32.xlu0 %v4904_v6, %s4356_s30  ;;  %3650 = vmatprep.mubr.msk.f32.mxu1 %vm4352_vm4, %v4353_v8 }
 0x137   :  { %4290 = vrot.lane.b32.xlu1 %v4902_v4, %s4357_s15 }
 0x138   :  { %3651 = vmatmul.mubr.msk.f32.gmra.mrb[16].mxu1 %vm571_vm6, %v547_v11  ;;  %v3068_v11 = vld [vmem:[%s5721_s6 + $0x88] sm:$0xff] }
 0x139   :  { %4295 = vrot.lane.b32.xlu0 %v4902_v4, %s4358_s16  ;;  %3653 = vmatprep.mubr.msk.f32.mxu1 %vm4352_vm4, %v4353_v8 }
 0x13b   :  { %1123 = vrot.lane.b32.xlu1 %v4904_v6, %s4357_s15 }
 0x13c   :  { %3654 = vmatmul.mubr.msk.f32.gmra.mrb[18].mxu1 %vm571_vm6, %v548_v12 }
 0x13d   :  { %1269 = vrot.lane.b32.xlu0 %v4904_v6, %s4358_s16  ;;  %3656 = vmatprep.mubr.msk.f32.mxu1 %vm4352_vm4, %v4353_v8 }
 0x13f   :  { %4300 = vrot.lane.b32.xlu1 %v4902_v4, %s4359_s20 }
 0x140   :  { %3657 = vmatmul.mubr.msk.f32.gmra.mrb[20].mxu1 %vm571_vm6, %v549_v13  ;;  %v3112_v13 = vld [vmem:[%s5721_s6 + $0x128] sm:$0xff] }
 0x141   :  { %4305 = vrot.lane.b32.xlu0 %v4902_v4, %s4360_s21  ;;  %3659 = vmatprep.mubr.msk.f32.mxu1 %vm4352_vm4, %v4353_v8 }
 0x143   :  { %1415 = vrot.lane.b32.xlu1 %v4904_v6, %s4359_s20 }
 0x144   :  { %3660 = vmatmul.mubr.msk.f32.gmra.mrb[22].mxu1 %vm571_vm6, %v550_v14  ;;  %v3069_v14 = vld [vmem:[%s5721_s6 + $0x90] sm:$0xff] }
 0x145   :  { %1561 = vrot.lane.b32.xlu0 %v4904_v6, %s4360_s21  ;;  %3662 = vmatprep.mubr.msk.f32.mxu1 %vm4352_vm4, %v4353_v8 }
 0x147   :  { %4310 = vrot.lane.b32.xlu1 %v4902_v4, %s4361_s26 }
 0x148   :  { %3663 = vmatmul.mubr.msk.f32.gmra.mrb[24].mxu1 %vm571_vm6, %v551_v49  ;;  %v3113_v49 = vld [vmem:[%s5721_s6 + $0x130] sm:$0xff] }
 0x149   :  { %4315 = vrot.lane.b32.xlu0 %v4902_v4, %s4362_s27  ;;  %3698 = vmatprep.mubr.msk.f32.mxu1 %vm4352_vm4, %v4353_v8 }
 0x14b   :  { %1707 = vrot.lane.b32.xlu1 %v4904_v6, %s4361_s26 }
 0x14d   :  { %1853 = vrot.lane.b32.xlu0 %v4904_v6, %s4362_s27 }
 0x14f   :  { %4320 = vrot.lane.b32.xlu1 %v4902_v4, %s4363_s0 }
 0x151   :  { %4325 = vrot.lane.b32.xlu0 %v4902_v4, %s4364_s5 }
 0x153   :  { %1999 = vrot.lane.b32.xlu1 %v4904_v6, %s4363_s0 }
 0x155   :  { %2145 = vrot.lane.b32.xlu0 %v4904_v6, %s4364_s5 }
 0x157   :  { %4330 = vrot.lane.b32.xlu1 %v4902_v4, %s4365_s28 }
 0x159   :  { %4335 = vrot.lane.b32.xlu0 %v4902_v4, %s4366_s2 }
 0x15b   :  { %2291 = vrot.lane.b32.xlu1 %v4904_v6, %s4365_s28 }
 0x15d   :  { %2437 = vrot.lane.b32.xlu0 %v4904_v6, %s4366_s2 }
 0x15f   :  { %4340 = vrot.lane.b32.xlu1 %v4902_v4, %s4367_s3 }
 0x161   :  { %4345 = vrot.lane.b32.xlu0 %v4902_v4, %s4368_s29  ;;  %v3110_v4 = vld [vmem:[%s5721_s6 + $0x118] sm:$0xff] }
 0x163   :  { %2583 = vrot.lane.b32.xlu1 %v4904_v6, %s4367_s3 }
 0x165   :  { %2729 = vrot.lane.b32.xlu0 %v4904_v6, %s4368_s29 }
 0x167   :  { %2872 = vperm.xlu1 %4273, %v2863_v9   ;;  %v3070_v9 = vld [vmem:[%s5721_s6 + $0x98] sm:$0xff] }
 0x169   :  { %2877 = vperm.xlu0 %4272, %v2864_v15   ;;  %v3114_v15 = vld [vmem:[%s5721_s6 + $0x138] sm:$0xff] }
 0x16b   :  { %2882 = vperm.xlu1 %4273, %v2865_v16  }
 0x16d   :  { %2887 = vperm.xlu0 %4272, %v2866_v18   ;;  %v3071_v18 = vld [vmem:[%s5721_s6 + $0xa0] sm:$0x3] }
 0x16f   :  { %2892 = vperm.xlu1 %4273, %v2867_v19  }
 0x171   :  { %2897 = vperm.xlu0 %4272, %v2868_v20  }
 0x173   :  { %2902 = vperm.xlu1 %4273, %v2869_v21   ;;  %v3115_v21 = vld [vmem:[%s5721_s6 + $0x140] sm:$0xff] }
 0x175   :  { %2925 = vperm.xlu0 %4272, %v2921_v22   ;;  %v3095_v22 = vld [vmem:[%s5721_s6 + $0xe0] sm:$0xff] }
 0x177   :  { %2930 = vperm.xlu1 %4273, %v2922_v23  }
 0x19d   :  { %v4276_v24 = vpop.permute.xlu1 %4275 }
 0x19e   :  { %v4278_v26 = vunpack.i.h.bf16 %v4276_v24  ;;  %v4277_v27 = vunpack.i.l.bf16 %v4276_v24 }
 0x19f   :  { %v568_v28 = vpop.permute.xlu0 %567 }
 0x1a0   :  { %v4193_v29 = vpack.c.bf16 %v4278_v26, %v4277_v27  ;;  %v3116_v26 = vld [vmem:[%s5721_s6 + $0x148] sm:$0x3] }
 0x1a1   :  { %v4281_v30 = vpop.permute.xlu1 %4280 }
 0x1a2   :  { %v4283_v31 = vunpack.i.h.bf16 %v4281_v30  ;;  %v4282_v32 = vunpack.i.l.bf16 %v4281_v30  ;;  %4194 = vmatpush3.bf16.msra.mxu0 %v4193_v29  ;;  %v3096_v29 = vld [vmem:[%s5721_s6 + $0xe8] sm:$0xff] }
 0x1a3   :  { %v4286_v33 = vpop.permute.xlu0 %4285  ;;  %3615 = vmatprep.subr.mxu0 %v4353_v8  ;;  %v3140_v30 = vld [vmem:[%s5721_s6 + $0x188] sm:$0xff] }
 0x1a4   :  { %v4288_v34 = vunpack.i.h.bf16 %v4286_v33  ;;  %v4287_v35 = vunpack.i.l.bf16 %v4286_v33  ;;  %v4199_v37 = vpack.c.bf16 %v4283_v31, %v4282_v32  ;;  %v3097_v33 = vld [vmem:[%s5721_s6 + $0xf0] sm:$0xff] }
 0x1a5   :  { %v832_v42 = vpop.permute.xlu1 %831 }
 0x1a6   :  { %v4202_v38 = vpack.c.bf16 %v4288_v34, %v4287_v35  ;;  %3616 = vmatpush3.msk.msra.mxu0 %vm593_vm5, %v568_v28  ;;  %v3141_v34 = vld [vmem:[%s5721_s6 + $0x190] sm:$0xff]  ;;  %v3098_v35 = vld [vmem:[%s5721_s6 + $0xf8] sm:$0xff] }
 0x1a7   :  { %v978_v39 = vpop.permute.xlu0 %977  ;;  %3618 = vmatmul.mubr.msk.f32.vlgmr.msra.gmra.mrb[12].mxu0 %vm571_vm6, %v3042_v36  ;;  %4198 = vmatprep.subr.bf16.mxu0 %v4351_v25 }
 0x1a8   :  { %4200 = vmatpush3.bf16.msra.mxu0 %v4199_v37  ;;  %4203 = vmatpush3.bf16.msra.mxu1 %v4202_v38  ;;  %v3142_v37 = vld [vmem:[%s5721_s6 + $0x198] sm:$0xff]  ;;  %v3099_v38 = vld [vmem:[%s5721_s6 + $0x100] sm:$0xff] }
 0x1a9   :  { %3620 = vmatprep.mubr.msk.f32.mxu0 %vm4352_vm4, %v4353_v8  ;;  %3669 = vmatprep.subr.mxu0 %v4353_v8  ;;  %v4291_v56 = vpop.permute.xlu1 %4290 }
 0x1aa   :  { %3696 = vmatprep.subr.mxu1 %v4353_v8  ;;  %v4293_v58 = vunpack.i.h.bf16 %v4291_v56  ;;  %v4292_v59 = vunpack.i.l.bf16 %v4291_v56 }
 0x1ab   :  { %v4296_v43 = vpop.permute.xlu0 %4295  ;;  %3621 = vmatmul.mubr.msk.f32.gmra.mrb[14].mxu0 %vm571_vm6, %v3043_v40  ;;  %v3100_v40 = vld [vmem:[%s5721_s6 + $0x108] sm:$0xff] }
 0x1ac   :  { %v4298_v44 = vunpack.i.h.bf16 %v4296_v43  ;;  %v4297_v45 = vunpack.i.l.bf16 %v4296_v43  ;;  %3670 = vmatpush3.msk.msra.mxu0 %vm593_vm5, %v832_v42  ;;  %3697 = vmatpush3.msk.msra.mxu1 %vm593_vm5, %v978_v39  ;;  %v4205_v63 = vpack.c.bf16 %v4293_v58, %v4292_v59  ;;  %v3143_v39 = vld [vmem:[%s5721_s6 + $0x1a0] sm:$0xff]  ;;  %v3101_v43 = vld [vmem:[%s5721_s6 + $0x110] sm:$0x3] }
 0x1ad   :  { %3699 = vmatmul.mubr.msk.f32.vlgmr.msra.gmra.mrb[26].mxu1 %vm571_vm6, %v3080_v41  ;;  %3623 = vmatprep.mubr.msk.f32.mxu0 %vm4352_vm4, %v4353_v8  ;;  %v1124_v5 = vpop.permute.xlu1 %1123  ;;  %v3144_v41 = vld [vmem:[%s5721_s6 + $0x1a8] sm:$0xff]  ;;  %v3171_v58 = vld [vmem:[%s5721_s6 + $0x200] sm:$0xff] }
 0x1ae   :  { %v4208_v17 = vpack.c.bf16 %v4298_v44, %v4297_v45  ;;  %4207 = vmatprep.subr.bf16.mxu1 %v4351_v25  ;;  %3701 = vmatprep.mubr.msk.f32.mxu1 %vm4352_vm4, %v4353_v8 }
 0x1af   :  { %3624 = vmatmul.mubr.msk.f32.gmra.mrb[16].mxu0 %vm571_vm6, %v3044_v46  ;;  %4204 = vmatprep.subr.bf16.mxu0 %v4351_v25  ;;  %v1270_v51 = vpop.permute.xlu0 %1269  ;;  %v3145_v46 = vld [vmem:[%s5721_s6 + $0x1b0] sm:$0xff] }
 0x1b0   :  { %4209 = vmatpush3.bf16.msra.mxu1 %v4208_v17  ;;  %3626 = vmatprep.mubr.msk.f32.mxu0 %vm4352_vm4, %v4353_v8  ;;  %v3125_v17 = vld [vmem:[%s5721_s6 + $0x150] sm:$0xff] }
 0x1b1   :  { %3702 = vmatmul.mubr.msk.f32.gmra.mrb[28].mxu1 %vm571_vm6, %v3081_v47  ;;  %3750 = vmatprep.subr.mxu1 %v4353_v8  ;;  %v4301_v16 = vpop.permute.xlu1 %4300 }
 0x1b2   :  { %3704 = vmatprep.mubr.msk.f32.mxu1 %vm4352_vm4, %v4353_v8  ;;  %v4303_v19 = vunpack.i.h.bf16 %v4301_v16  ;;  %v4302_v20 = vunpack.i.l.bf16 %v4301_v16  ;;  %v3155_v16 = vld [vmem:[%s5721_s6 + $0x1c0] sm:$0xff] }
 0x1b3   :  { %3627 = vmatmul.mubr.msk.f32.gmra.mrb[18].mxu0 %vm571_vm6, %v3045_v48  ;;  %v4306_v62 = vpop.permute.xlu0 %4305 }
 0x1b4   :  { %3751 = vmatpush3.msk.msra.mxu1 %vm593_vm5, %v1270_v51  ;;  %3629 = vmatprep.mubr.msk.f32.mxu0 %vm4352_vm4, %v4353_v8  ;;  %v4308_v1 = vunpack.i.h.bf16 %v4306_v62  ;;  %v4307_v2 = vunpack.i.l.bf16 %v4306_v62  ;;  %v4211_v24 = vpack.c.bf16 %v4303_v19, %v4302_v20 }
 0x1b5   :  { %3705 = vmatmul.mubr.msk.f32.gmra.mrb[30].mxu1 %vm571_vm6, %v3082_v50  ;;  %4213 = vmatprep.subr.bf16.mxu1 %v4351_v25  ;;  %v1416_v31 = vpop.permute.xlu1 %1415  ;;  %v3146_v50 = vld [vmem:[%s5721_s6 + $0x1b8] sm:$0x3] }
 0x1b6   :  { %3707 = vmatprep.mubr.msk.f32.mxu1 %vm4352_vm4, %v4353_v8  ;;  %v4214_v6 = vpack.c.bf16 %v4308_v1, %v4307_v2  ;;  %v3129_v1 = vld [vmem:[%s5721_s6 + $0x170] sm:$0xff] }
 0x1b7   :  { %3630 = vmatmul.mubr.msk.f32.gmra.mrb[20].mxu0 %vm571_vm6, %v3046_v52  ;;  %v1562_v12 = vpop.permute.xlu0 %1561 }
 0x1b8   :  { %3632 = vmatprep.mubr.msk.f32.mxu0 %vm4352_vm4, %v4353_v8 }
 0x1b9   :  { %3708 = vmatmul.mubr.msk.f32.gmra.mrb[32].mxu1 %vm571_vm6, %v3083_v53  ;;  %v4311_v42 = vpop.permute.xlu1 %4310  ;;  %v3126_v53 = vld [vmem:[%s5721_s6 + $0x158] sm:$0xff] }
 0x1ba   :  { %3710 = vmatprep.mubr.msk.f32.mxu1 %vm4352_vm4, %v4353_v8  ;;  %v4313_v44 = vunpack.i.h.bf16 %v4311_v42  ;;  %v4312_v45 = vunpack.i.l.bf16 %v4311_v42 }
 0x1bb   :  { %3633 = vmatmul.mubr.msk.f32.gmra.mrb[22].mxu0 %vm571_vm6, %v3047_v54  ;;  %v4316_v23 = vpop.permute.xlu0 %4315  ;;  %v3170_v54 = vld [vmem:[%s5721_s6 + $0x1f8] sm:$0xff] }
 0x1bc   :  { %3635 = vmatprep.mubr.msk.f32.mxu0 %vm4352_vm4, %v4353_v8  ;;  %v4318_v27 = vunpack.i.h.bf16 %v4316_v23  ;;  %v4317_v28 = vunpack.i.l.bf16 %v4316_v23  ;;  %v4217_v48 = vpack.c.bf16 %v4313_v44, %v4312_v45 }
 0x1bd   :  { %3711 = vmatmul.mubr.msk.f32.gmra.mrb[34].mxu1 %vm571_vm6, %v3084_v55  ;;  %v1708_v55 = vpop.permute.xlu1 %1707 }
 0x1be   :  { %3713 = vmatprep.mubr.msk.f32.mxu1 %vm4352_vm4, %v4353_v8  ;;  %v4220_v32 = vpack.c.bf16 %v4318_v27, %v4317_v28  ;;  %v3200_v28 = vld [vmem:[%s5721_s6 + $0x268] sm:$0xff] }
 0x1bf   :  { %3636 = vmatmul.mubr.msk.f32.gmra.mrb[24].mxu0 %vm571_vm6, %v3048_v57  ;;  %v1854_v36 = vpop.permute.xlu0 %1853  ;;  %v3127_v57 = vld [vmem:[%s5721_s6 + $0x160] sm:$0xff] }
 0x1c0   :  { %3671 = vmatprep.mubr.msk.f32.mxu0 %vm4352_vm4, %v4353_v8 }
 0x1c1   :  { %3714 = vmatmul.mubr.msk.f32.gmra.mrb[36].mxu1 %vm571_vm6, %v3085_v60  ;;  %v3128_v60 = vld [vmem:[%s5721_s6 + $0x168] sm:$0xff] }
 0x1c2   :  { %3716 = vmatprep.mubr.msk.f32.mxu1 %vm4352_vm4, %v4353_v8 }
 0x1c3   :  { %3672 = vmatmul.mubr.msk.f32.vlgmr.msra.gmra.mrb[26].mxu0 %vm571_vm6, %v3065_v61  ;;  %v4326_v47 = vpop.permute.xlu0 %4325 }
 0x1c4   :  { %4206 = vmatpush3.bf16.msra.mxu0 %v4205_v63  ;;  %3674 = vmatprep.mubr.msk.f32.mxu0 %vm4352_vm4, %v4353_v8  ;;  %v4328_v51 = vunpack.i.h.bf16 %v4326_v47  ;;  %v4327_v52 = vunpack.i.l.bf16 %v4326_v47  ;;  %v3172_v63 = vld [vmem:[%s5721_s6 + $0x208] sm:$0xff] }
 0x1c5   :  { %3717 = vmatmul.mubr.msk.f32.gmra.mrb[38].mxu1 %vm571_vm6, %v3086_v0  ;;  %3723 = vmatprep.subr.mxu0 %v4353_v8 }
 0x1c6   :  { %3752 = vmatprep.mubr.msk.f32.mxu1 %vm4352_vm4, %v4353_v8  ;;  %v4226_v56 = vpack.c.bf16 %v4328_v51, %v4327_v52 }
 0x1c7   :  { %3675 = vmatmul.mubr.msk.f32.gmra.mrb[28].mxu0 %vm571_vm6, %v3066_v3  ;;  %v2146_v62 = vpop.permute.xlu0 %2145  ;;  %v3173_v3 = vld [vmem:[%s5721_s6 + $0x210] sm:$0xff] }
 0x1c8   :  { %3724 = vmatpush3.msk.msra.mxu0 %vm593_vm5, %v1124_v5  ;;  %3677 = vmatprep.mubr.msk.f32.mxu0 %vm4352_vm4, %v4353_v8  ;;  %v3130_v5 = vld [vmem:[%s5721_s6 + $0x178] sm:$0xff] }
 0x1c9   :  { %3753 = vmatmul.mubr.msk.f32.vlgmr.msra.gmra.mrb[40].mxu1 %vm571_vm6, %v3110_v4  ;;  %4210 = vmatprep.subr.bf16.mxu0 %v4351_v25 }
 0x1ca   :  { %4215 = vmatpush3.bf16.msra.mxu1 %v4214_v6  ;;  %3755 = vmatprep.mubr.msk.f32.mxu1 %vm4352_vm4, %v4353_v8 }
 0x1cb   :  { %3678 = vmatmul.mubr.msk.f32.gmra.mrb[30].mxu0 %vm571_vm6, %v3067_v7  ;;  %3804 = vmatprep.subr.mxu1 %v4353_v8  ;;  %v3174_v7 = vld [vmem:[%s5721_s6 + $0x218] sm:$0xff]  ;;  %v4336_v19 = vpop.permute.xlu0 %4335 }
 0x1cc   :  { %3680 = vmatprep.mubr.msk.f32.mxu0 %vm4352_vm4, %v4353_v8  ;;  %v4338_v23 = vunpack.i.h.bf16 %v4336_v19 }
 0x1cd   :  { %3756 = vmatmul.mubr.msk.f32.gmra.mrb[42].mxu1 %vm571_vm6, %v3111_v10  ;;  %v4321_v10 = vpop.permute.xlu1 %4320 }
 0x1ce   :  { %3805 = vmatpush3.msk.msra.mxu1 %vm593_vm5, %v1562_v12  ;;  %3758 = vmatprep.mubr.msk.f32.mxu1 %vm4352_vm4, %v4353_v8  ;;  %v3131_v12 = vld [vmem:[%s5721_s6 + $0x180] sm:$0x3] }
 0x1cf   :  { %3681 = vmatmul.mubr.msk.f32.gmra.mrb[32].mxu0 %vm571_vm6, %v3068_v11  ;;  %4219 = vmatprep.subr.bf16.mxu1 %v4351_v25 }
 0x1d0   :  { %3683 = vmatprep.mubr.msk.f32.mxu0 %vm4352_vm4, %v4353_v8 }
 0x1d1   :  { %3759 = vmatmul.mubr.msk.f32.gmra.mrb[44].mxu1 %vm571_vm6, %v3112_v13 }
 0x1d2   :  { %3761 = vmatprep.mubr.msk.f32.mxu1 %vm4352_vm4, %v4353_v8 }
 0x1d3   :  { %3684 = vmatmul.mubr.msk.f32.gmra.mrb[34].mxu0 %vm571_vm6, %v3069_v14  ;;  %v4323_v14 = vunpack.i.h.bf16 %v4321_v10 }
 0x1d4   :  { %3686 = vmatprep.mubr.msk.f32.mxu0 %vm4352_vm4, %v4353_v8 }
 0x1d5   :  { %3762 = vmatmul.mubr.msk.f32.gmra.mrb[46].mxu1 %vm571_vm6, %v3113_v49  ;;  %v4322_v49 = vunpack.i.l.bf16 %v4321_v10  ;;  %v3235_v10 = vld [vmem:[%s5721_s6 + $0x300] sm:$0xff] }
 0x1d6   :  { %3764 = vmatprep.mubr.msk.f32.mxu1 %vm4352_vm4, %v4353_v8 }
 0x1d7   :  { %3687 = vmatmul.mubr.msk.f32.gmra.mrb[36].mxu0 %vm571_vm6, %v3070_v9  ;;  %v3175_v9 = vld [vmem:[%s5721_s6 + $0x220] sm:$0xff]  ;;  %v4223_v20 = vpack.c.bf16 %v4323_v14, %v4322_v49  ;;  %v3236_v14 = vld [vmem:[%s5721_s6 + $0x308] sm:$0x3] }
 0x1d8   :  { %3689 = vmatprep.mubr.msk.f32.mxu0 %vm4352_vm4, %v4353_v8  ;;  %v3216_v49 = vld [vmem:[%s5721_s6 + $0x2a8] sm:$0xff] }
 0x1d9   :  { %3765 = vmatmul.mubr.msk.f32.gmra.mrb[48].mxu1 %vm571_vm6, %v3114_v15 }
 0x1da   :  { %3767 = vmatprep.mubr.msk.f32.mxu1 %vm4352_vm4, %v4353_v8 }
 0x1db   :  { %3690 = vmatmul.mubr.msk.f32.gmra.mrb[38].mxu0 %vm571_vm6, %v3071_v18 }
 0x1dc   :  { %3725 = vmatprep.mubr.msk.f32.mxu0 %vm4352_vm4, %v4353_v8 }
 0x1dd   :  { %3768 = vmatmul.mubr.msk.f32.gmra.mrb[50].mxu1 %vm571_vm6, %v3115_v21  ;;  %v3176_v21 = vld [vmem:[%s5721_s6 + $0x228] sm:$0x3] }
 0x1de   :  { %3770 = vmatprep.mubr.msk.f32.mxu1 %vm4352_vm4, %v4353_v8 }
 0x1df   :  { %3726 = vmatmul.mubr.msk.f32.vlgmr.msra.gmra.mrb[40].mxu0 %vm571_vm6, %v3095_v22 }
 0x1e0   :  { %4212 = vmatpush3.bf16.msra.mxu0 %v4211_v24  ;;  %3728 = vmatprep.mubr.msk.f32.mxu0 %vm4352_vm4, %v4353_v8  ;;  %v4337_v24 = vunpack.i.l.bf16 %v4336_v19  ;;  %v3261_v19 = vld [vmem:[%s5721_s6 + $0x350] sm:$0xff] }
 0x1e1   :  { %3771 = vmatmul.mubr.msk.f32.gmra.mrb[52].mxu1 %vm571_vm6, %v3116_v26  ;;  %3777 = vmatprep.subr.mxu0 %v4353_v8  ;;  %v3156_v26 = vld [vmem:[%s5721_s6 + $0x1c8] sm:$0xff] }
 0x1e2   :  { %3806 = vmatprep.mubr.msk.f32.mxu1 %vm4352_vm4, %v4353_v8 }
 0x1e3   :  { %3729 = vmatmul.mubr.msk.f32.gmra.mrb[42].mxu0 %vm571_vm6, %v3096_v29  ;;  %v2000_v29 = vpop.permute.xlu1 %1999 }
 0x1e4   :  { %3778 = vmatpush3.msk.msra.mxu0 %vm593_vm5, %v1416_v31  ;;  %3731 = vmatprep.mubr.msk.f32.mxu0 %vm4352_vm4, %v4353_v8  ;;  %v4232_v31 = vpack.c.bf16 %v4338_v23, %v4337_v24  ;;  %v3219_v23 = vld [vmem:[%s5721_s6 + $0x2c0] sm:$0xff] }
 0x1e5   :  { %3807 = vmatmul.mubr.msk.f32.vlgmr.msra.gmra.mrb[54].mxu1 %vm571_vm6, %v3140_v30  ;;  %4216 = vmatprep.subr.bf16.mxu0 %v4351_v25  ;;  %v3263_v24 = vld [vmem:[%s5721_s6 + $0x360] sm:$0xff] }
 0x1e6   :  { %4221 = vmatpush3.bf16.msra.mxu1 %v4220_v32  ;;  %3809 = vmatprep.mubr.msk.f32.mxu1 %vm4352_vm4, %v4353_v8  ;;  %v3157_v32 = vld [vmem:[%s5721_s6 + $0x1d0] sm:$0xff] }
 0x1e7   :  { %3732 = vmatmul.mubr.msk.f32.gmra.mrb[44].mxu0 %vm571_vm6, %v3097_v33  ;;  %3858 = vmatprep.subr.mxu1 %v4353_v8  ;;  %v4331_v42 = vpop.permute.xlu1 %4330 }
 0x1e8   :  { %3734 = vmatprep.mubr.msk.f32.mxu0 %vm4352_vm4, %v4353_v8  ;;  %v4333_v44 = vunpack.i.h.bf16 %v4331_v42  ;;  %v4332_v45 = vunpack.i.l.bf16 %v4331_v42 }
 0x1e9   :  { %3810 = vmatmul.mubr.msk.f32.gmra.mrb[56].mxu1 %vm571_vm6, %v3141_v34  ;;  %v3201_v34 = vld [vmem:[%s5721_s6 + $0x270] sm:$0xff] }
 0x1ea   :  { %3859 = vmatpush3.msk.msra.mxu1 %vm593_vm5, %v1854_v36  ;;  %3812 = vmatprep.mubr.msk.f32.mxu1 %vm4352_vm4, %v4353_v8  ;;  %v2438_v36 = vpop.permute.xlu0 %2437 }
 0x1eb   :  { %3735 = vmatmul.mubr.msk.f32.gmra.mrb[46].mxu0 %vm571_vm6, %v3098_v35  ;;  %4225 = vmatprep.subr.bf16.mxu1 %v4351_v25  ;;  %v3158_v35 = vld [vmem:[%s5721_s6 + $0x1d8] sm:$0xff] }
 0x1ec   :  { %3737 = vmatprep.mubr.msk.f32.mxu0 %vm4352_vm4, %v4353_v8 }
 0x1ed   :  { %3813 = vmatmul.mubr.msk.f32.gmra.mrb[58].mxu1 %vm571_vm6, %v3142_v37  ;;  %v3202_v37 = vld [vmem:[%s5721_s6 + $0x278] sm:$0xff] }
 0x1ee   :  { %3815 = vmatprep.mubr.msk.f32.mxu1 %vm4352_vm4, %v4353_v8  ;;  %v4346_v47 = vpop.permute.xlu0 %4345 }
 0x1ef   :  { %3738 = vmatmul.mubr.msk.f32.gmra.mrb[48].mxu0 %vm571_vm6, %v3099_v38  ;;  %v3159_v38 = vld [vmem:[%s5721_s6 + $0x1e0] sm:$0xff]  ;;  %v4348_v51 = vunpack.i.h.bf16 %v4346_v47  ;;  %v4347_v52 = vunpack.i.l.bf16 %v4346_v47 }
 0x1f0   :  { %3740 = vmatprep.mubr.msk.f32.mxu0 %vm4352_vm4, %v4353_v8 }
 0x1f1   :  { %3816 = vmatmul.mubr.msk.f32.gmra.mrb[60].mxu1 %vm571_vm6, %v3143_v39  ;;  %v3203_v39 = vld [vmem:[%s5721_s6 + $0x280] sm:$0xff] }
 0x1f2   :  { %3818 = vmatprep.mubr.msk.f32.mxu1 %vm4352_vm4, %v4353_v8 }
 0x1f3   :  { %3741 = vmatmul.mubr.msk.f32.gmra.mrb[50].mxu0 %vm571_vm6, %v3100_v40  ;;  %v3160_v40 = vld [vmem:[%s5721_s6 + $0x1e8] sm:$0xff] }
 0x1f4   :  { %3743 = vmatprep.mubr.msk.f32.mxu0 %vm4352_vm4, %v4353_v8 }
 0x1f5   :  { %3819 = vmatmul.mubr.msk.f32.gmra.mrb[62].mxu1 %vm571_vm6, %v3144_v41  ;;  %v3204_v41 = vld [vmem:[%s5721_s6 + $0x288] sm:$0xff] }
 0x1f6   :  { %3821 = vmatprep.mubr.msk.f32.mxu1 %vm4352_vm4, %v4353_v8 }
 0x1f7   :  { %3744 = vmatmul.mubr.msk.f32.gmra.mrb[52].mxu0 %vm571_vm6, %v3101_v43  ;;  %v3161_v43 = vld [vmem:[%s5721_s6 + $0x1f0] sm:$0x3] }
 0x1f8   :  { %3779 = vmatprep.mubr.msk.f32.mxu0 %vm4352_vm4, %v4353_v8 }
 0x1f9   :  { %3822 = vmatmul.mubr.msk.f32.gmra.mrb[64].mxu1 %vm571_vm6, %v3145_v46  ;;  %v3205_v46 = vld [vmem:[%s5721_s6 + $0x290] sm:$0xff] }
 0x1fa   :  { %3824 = vmatprep.mubr.msk.f32.mxu1 %vm4352_vm4, %v4353_v8 }
 0x1fb   :  { %3780 = vmatmul.mubr.msk.f32.vlgmr.msra.gmra.mrb[54].mxu0 %vm571_vm6, %v3125_v17  ;;  %v3185_v17 = vld [vmem:[%s5721_s6 + $0x230] sm:$0xff] }
 0x1fc   :  { %4218 = vmatpush3.bf16.msra.mxu0 %v4217_v48  ;;  %3782 = vmatprep.mubr.msk.f32.mxu0 %vm4352_vm4, %v4353_v8  ;;  %v4229_v48 = vpack.c.bf16 %v4333_v44, %v4332_v45 }
 0x1fd   :  { %3825 = vmatmul.mubr.msk.f32.gmra.mrb[66].mxu1 %vm571_vm6, %v3146_v50  ;;  %3831 = vmatprep.subr.mxu0 %v4353_v8  ;;  %v3206_v50 = vld [vmem:[%s5721_s6 + $0x298] sm:$0x3] }
 0x1fe   :  { %3860 = vmatprep.mubr.msk.f32.mxu1 %vm4352_vm4, %v4353_v8 }
 0x1ff   :  { %3783 = vmatmul.mubr.msk.f32.gmra.mrb[56].mxu0 %vm571_vm6, %v3126_v53  ;;  %v3186_v53 = vld [vmem:[%s5721_s6 + $0x238] sm:$0xff] }
 0x200   :  { %3832 = vmatpush3.msk.msra.mxu0 %vm593_vm5, %v1708_v55  ;;  %3785 = vmatprep.mubr.msk.f32.mxu0 %vm4352_vm4, %v4353_v8  ;;  %v2292_v55 = vpop.permute.xlu1 %2291 }
 0x201   :  { %3861 = vmatmul.mubr.msk.f32.vlgmr.msra.gmra.mrb[68].mxu1 %vm571_vm6, %v3170_v54  ;;  %4222 = vmatprep.subr.bf16.mxu0 %v4351_v25  ;;  %v3230_v54 = vld [vmem:[%s5721_s6 + $0x2d8] sm:$0xff] }
 0x202   :  { %4227 = vmatpush3.bf16.msra.mxu1 %v4226_v56  ;;  %3863 = vmatprep.mubr.msk.f32.mxu1 %vm4352_vm4, %v4353_v8  ;;  %v4238_v56 = vpack.c.bf16 %v4348_v51, %v4347_v52 }
 0x203   :  { %3786 = vmatmul.mubr.msk.f32.gmra.mrb[58].mxu0 %vm571_vm6, %v3127_v57  ;;  %3912 = vmatprep.subr.mxu1 %v4353_v8  ;;  %v5314_v59 = vpop.f32.mrb[12].mxu1  ;;  %v3187_v57 = vld [vmem:[%s5721_s6 + $0x240] sm:$0xff] }
 0x204   :  { %3788 = vmatprep.mubr.msk.f32.mxu0 %vm4352_vm4, %v4353_v8  ;;  %v3646_v61 = vpop.f32.mrb[13].mxu1 }
 0x205   :  { %3864 = vmatmul.mubr.msk.f32.gmra.mrb[70].mxu1 %vm571_vm6, %v3171_v58  ;;  %v3231_v58 = vld [vmem:[%s5721_s6 + $0x2e0] sm:$0xff]  ;;  %v3232_v61 = vld [vmem:[%s5721_s6 + $0x2e8] sm:$0xff] }
 0x206   :  { %3913 = vmatpush3.msk.msra.mxu1 %vm593_vm5, %v2146_v62  ;;  %3866 = vmatprep.mubr.msk.f32.mxu1 %vm4352_vm4, %v4353_v8  ;;  %v3189_v62 = vld [vmem:[%s5721_s6 + $0x250] sm:$0xff] }
 0x207   :  { %3789 = vmatmul.mubr.msk.f32.gmra.mrb[60].mxu0 %vm571_vm6, %v3128_v60  ;;  %4231 = vmatprep.subr.bf16.mxu1 %v4351_v25  ;;  %v5330_v0 = vpop.f32.mrb[14].mxu1  ;;  %v3188_v60 = vld [vmem:[%s5721_s6 + $0x248] sm:$0xff] }
 0x208   :  { %3791 = vmatprep.mubr.msk.f32.mxu0 %vm4352_vm4, %v4353_v8  ;;  %v3649_v2 = vpop.f32.mrb[15].mxu1 }
 0x209   :  { %3867 = vmatmul.mubr.msk.f32.gmra.mrb[72].mxu1 %vm571_vm6, %v3172_v63  ;;  %v3233_v63 = vld [vmem:[%s5721_s6 + $0x2f0] sm:$0xff]  ;;  %v3234_v2 = vld [vmem:[%s5721_s6 + $0x2f8] sm:$0xff] }
 0x20a   :  { %3869 = vmatprep.mubr.msk.f32.mxu1 %vm4352_vm4, %v4353_v8 }
 0x20b   :  { %3792 = vmatmul.mubr.msk.f32.gmra.mrb[62].mxu0 %vm571_vm6, %v3129_v1  ;;  %v5344_v4 = vpop.f32.mrb[16].mxu1  ;;  %v3190_v1 = vld [vmem:[%s5721_s6 + $0x258] sm:$0xff] }
 0x20c   :  { %3794 = vmatprep.mubr.msk.f32.mxu0 %vm4352_vm4, %v4353_v8  ;;  %v3652_v6 = vpop.f32.mrb[17].mxu1 }
 0x20d   :  { %3870 = vmatmul.mubr.msk.f32.gmra.mrb[74].mxu1 %vm571_vm6, %v3173_v3  ;;  %v4341_v3 = vpop.permute.xlu1 %4340 }
 0x20e   :  { %3872 = vmatprep.mubr.msk.f32.mxu1 %vm4352_vm4, %v4353_v8  ;;  %v4343_v6 = vunpack.i.h.bf16 %v4341_v3 }
 0x20f   :  { %3795 = vmatmul.mubr.msk.f32.gmra.mrb[64].mxu0 %vm571_vm6, %v3130_v5  ;;  %v5358_v11 = vpop.f32.mrb[18].mxu1  ;;  %v3191_v5 = vld [vmem:[%s5721_s6 + $0x260] sm:$0x3] }
 0x210   :  { %3797 = vmatprep.mubr.msk.f32.mxu0 %vm4352_vm4, %v4353_v8  ;;  %v3655_v13 = vpop.f32.mrb[19].mxu1 }
 0x211   :  { %3873 = vmatmul.mubr.msk.f32.gmra.mrb[76].mxu1 %vm571_vm6, %v3174_v7  ;;  %v4342_v7 = vunpack.i.l.bf16 %v4341_v3 }
 0x212   :  { %3875 = vmatprep.mubr.msk.f32.mxu1 %vm4352_vm4, %v4353_v8 }
 0x213   :  { %3798 = vmatmul.mubr.msk.f32.gmra.mrb[66].mxu0 %vm571_vm6, %v3131_v12  ;;  %v5372_v15 = vpop.f32.mrb[20].mxu1  ;;  %v3215_v12 = vld [vmem:[%s5721_s6 + $0x2a0] sm:$0xff]  ;;  %v4235_v13 = vpack.c.bf16 %v4343_v6, %v4342_v7 }
 0x214   :  { %3833 = vmatprep.mubr.msk.f32.mxu0 %vm4352_vm4, %v4353_v8  ;;  %v3658_v18 = vpop.f32.mrb[21].mxu1 }
 0x215   :  { %3876 = vmatmul.mubr.msk.f32.gmra.mrb[78].mxu1 %vm571_vm6, %v3175_v9  ;;  %v3260_v9 = vld [vmem:[%s5721_s6 + $0x348] sm:$0xff]  ;;  %v3217_v18 = vld [vmem:[%s5721_s6 + $0x2b0] sm:$0xff] }
 0x216   :  { %3878 = vmatprep.mubr.msk.f32.mxu1 %vm4352_vm4, %v4353_v8 }
 0x217   :  { %3834 = vmatmul.mubr.msk.f32.vlgmr.msra.gmra.mrb[68].mxu0 %vm571_vm6, %v3155_v16  ;;  %v5386_v22 = vpop.f32.mrb[22].mxu1  ;;  %v2584_v16 = vpop.permute.xlu1 %2583 }
 0x218   :  { %4224 = vmatpush3.bf16.msra.mxu0 %v4223_v20  ;;  %3836 = vmatprep.mubr.msk.f32.mxu0 %vm4352_vm4, %v4353_v8  ;;  %v3661_v27 = vpop.f32.mrb[23].mxu1  ;;  %v3218_v20 = vld [vmem:[%s5721_s6 + $0x2b8] sm:$0xff] }
 0x219   :  { %3879 = vmatmul.mubr.msk.f32.gmra.mrb[80].mxu1 %vm571_vm6, %v3176_v21  ;;  %3885 = vmatprep.subr.mxu0 %v4353_v8  ;;  %v3262_v21 = vld [vmem:[%s5721_s6 + $0x358] sm:$0xff]  ;;  %v3264_v27 = vld [vmem:[%s5721_s6 + $0x368] sm:$0xff] }
 0x21a   :  { %3914 = vmatprep.mubr.msk.f32.mxu1 %vm4352_vm4, %v4353_v8 }
 0x21b   :  { %3837 = vmatmul.mubr.msk.f32.gmra.mrb[70].mxu0 %vm571_vm6, %v3156_v26  ;;  %v5401_v30 = vpop.f32.mrb[24].mxu1  ;;  %v3220_v26 = vld [vmem:[%s5721_s6 + $0x2c8] sm:$0xff] }
 0x21c   :  { %3886 = vmatpush3.msk.msra.mxu0 %vm593_vm5, %v2000_v29  ;;  %3839 = vmatprep.mubr.msk.f32.mxu0 %vm4352_vm4, %v4353_v8  ;;  %v3664_v33 = vpop.f32.mrb[25].mxu1  ;;  %v3265_v29 = vld [vmem:[%s5721_s6 + $0x370] sm:$0xff] }
 0x21d   :  { %3915 = vmatmul.mubr.msk.f32.vlgmr.msra.gmra.mrb[82].mxu1 %vm571_vm6, %v3200_v28  ;;  %4228 = vmatprep.subr.bf16.mxu0 %v4351_v25  ;;  %v3221_v28 = vld [vmem:[%s5721_s6 + $0x2d0] sm:$0x3]  ;;  %v3246_v33 = vld [vmem:[%s5721_s6 + $0x318] sm:$0xff] }
 0x21e   :  { %4233 = vmatpush3.bf16.msra.mxu1 %v4232_v31  ;;  %3917 = vmatprep.mubr.msk.f32.mxu1 %vm4352_vm4, %v4353_v8  ;;  %v3245_v31 = vld [vmem:[%s5721_s6 + $0x310] sm:$0xff] }
 0x21f   :  { %3840 = vmatmul.mubr.msk.f32.gmra.mrb[72].mxu0 %vm571_vm6, %v3157_v32  ;;  %3966 = vmatprep.subr.mxu1 %v4353_v8  ;;  %v3266_v32 = vld [vmem:[%s5721_s6 + $0x378] sm:$0x3] }
 0x220   :  { %3842 = vmatprep.mubr.msk.f32.mxu0 %vm4352_vm4, %v4353_v8 }
 0x221   :  { %3918 = vmatmul.mubr.msk.f32.gmra.mrb[84].mxu1 %vm571_vm6, %v3201_v34  ;;  %v3247_v34 = vld [vmem:[%s5721_s6 + $0x320] sm:$0xff] }
 0x222   :  { %3967 = vmatpush3.msk.msra.mxu1 %vm593_vm5, %v2438_v36  ;;  %3920 = vmatprep.mubr.msk.f32.mxu1 %vm4352_vm4, %v4353_v8  ;;  %v3249_v36 = vld [vmem:[%s5721_s6 + $0x330] sm:$0xff] }
 0x223   :  { %3843 = vmatmul.mubr.msk.f32.gmra.mrb[74].mxu0 %vm571_vm6, %v3158_v35  ;;  %4237 = vmatprep.subr.bf16.mxu1 %v4351_v25  ;;  %v3248_v35 = vld [vmem:[%s5721_s6 + $0x328] sm:$0xff] }
 0x224   :  { %3845 = vmatprep.mubr.msk.f32.mxu0 %vm4352_vm4, %v4353_v8 }
 0x225   :  { %3921 = vmatmul.mubr.msk.f32.gmra.mrb[86].mxu1 %vm571_vm6, %v3202_v37 }
 0x226   :  { %3923 = vmatprep.mubr.msk.f32.mxu1 %vm4352_vm4, %v4353_v8 }
 0x227   :  { %3846 = vmatmul.mubr.msk.f32.gmra.mrb[76].mxu0 %vm571_vm6, %v3159_v38 }
 0x228   :  { %3848 = vmatprep.mubr.msk.f32.mxu0 %vm4352_vm4, %v4353_v8 }
 0x229   :  { %3924 = vmatmul.mubr.msk.f32.gmra.mrb[88].mxu1 %vm571_vm6, %v3203_v39 }
 0x22a   :  { %3926 = vmatprep.mubr.msk.f32.mxu1 %vm4352_vm4, %v4353_v8 }
 0x22b   :  { %3849 = vmatmul.mubr.msk.f32.gmra.mrb[78].mxu0 %vm571_vm6, %v3160_v40  ;;  %v3250_v40 = vld [vmem:[%s5721_s6 + $0x338] sm:$0xff] }
 0x22c   :  { %3851 = vmatprep.mubr.msk.f32.mxu0 %vm4352_vm4, %v4353_v8 }
 0x22d   :  { %3927 = vmatmul.mubr.msk.f32.gmra.mrb[90].mxu1 %vm571_vm6, %v3204_v41 }
 0x22e   :  { %3929 = vmatprep.mubr.msk.f32.mxu1 %vm4352_vm4, %v4353_v8 }
 0x22f   :  { %3852 = vmatmul.mubr.msk.f32.gmra.mrb[80].mxu0 %vm571_vm6, %v3161_v43 }
 0x230   :  { %3887 = vmatprep.mubr.msk.f32.mxu0 %vm4352_vm4, %v4353_v8 }
 0x231   :  { %3930 = vmatmul.mubr.msk.f32.gmra.mrb[92].mxu1 %vm571_vm6, %v3205_v46 }
 0x232   :  { %3932 = vmatprep.mubr.msk.f32.mxu1 %vm4352_vm4, %v4353_v8 }
 0x233   :  { %3888 = vmatmul.mubr.msk.f32.vlgmr.msra.gmra.mrb[82].mxu0 %vm571_vm6, %v3185_v17 }
 0x234   :  { %4230 = vmatpush3.bf16.msra.mxu0 %v4229_v48  ;;  %3890 = vmatprep.mubr.msk.f32.mxu0 %vm4352_vm4, %v4353_v8 }
 0x235   :  { %3933 = vmatmul.mubr.msk.f32.gmra.mrb[94].mxu1 %vm571_vm6, %v3206_v50  ;;  %3939 = vmatprep.subr.mxu0 %v4353_v8 }
 0x236   :  { %3968 = vmatprep.mubr.msk.f32.mxu1 %vm4352_vm4, %v4353_v8 }
 0x237   :  { %3891 = vmatmul.mubr.msk.f32.gmra.mrb[84].mxu0 %vm571_vm6, %v3186_v53 }
 0x238   :  { %3940 = vmatpush3.msk.msra.mxu0 %vm593_vm5, %v2292_v55  ;;  %3893 = vmatprep.mubr.msk.f32.mxu0 %vm4352_vm4, %v4353_v8 }
 0x239   :  { %3969 = vmatmul.mubr.msk.f32.vlgmr.msra.gmra.mrb[96].mxu1 %vm571_vm6, %v3230_v54  ;;  %4234 = vmatprep.subr.bf16.mxu0 %v4351_v25  ;;  %v2730_v25 = vpop.permute.xlu0 %2729 }
 0x23a   :  { %4239 = vmatpush3.bf16.msra.mxu1 %v4238_v56  ;;  %3971 = vmatprep.mubr.msk.f32.mxu1 %vm4352_vm4, %v4353_v8 }
 0x23b   :  { %3894 = vmatmul.mubr.msk.f32.gmra.mrb[86].mxu0 %vm571_vm6, %v3187_v57  ;;  %4020 = vmatprep.subr.mxu1 %v4353_v8 }
 0x23c   :  { %3896 = vmatprep.mubr.msk.f32.mxu0 %vm4352_vm4, %v4353_v8 }
 0x23d   :  { %3972 = vmatmul.mubr.msk.f32.gmra.mrb[98].mxu1 %vm571_vm6, %v3231_v58 }
 0x23e   :  { %4021 = vmatpush3.msk.msra.mxu1 %vm593_vm5, %v2730_v25  ;;  %3974 = vmatprep.mubr.msk.f32.mxu1 %vm4352_vm4, %v4353_v8 }
 0x23f   :  { %3897 = vmatmul.mubr.msk.f32.gmra.mrb[88].mxu0 %vm571_vm6, %v3188_v60 }
 0x240   :  { %3899 = vmatprep.mubr.msk.f32.mxu0 %vm4352_vm4, %v4353_v8 }
 0x241   :  { %3975 = vmatmul.mubr.msk.f32.gmra.mrb[100].mxu1 %vm571_vm6, %v3232_v61 }
 0x242   :  { %3977 = vmatprep.mubr.msk.f32.mxu1 %vm4352_vm4, %v4353_v8 }
 0x243   :  { %3900 = vmatmul.mubr.msk.f32.gmra.mrb[90].mxu0 %vm571_vm6, %v3189_v62 }
 0x244   :  { %3902 = vmatprep.mubr.msk.f32.mxu0 %vm4352_vm4, %v4353_v8 }
 0x245   :  { %3978 = vmatmul.mubr.msk.f32.gmra.mrb[102].mxu1 %vm571_vm6, %v3233_v63 }
 0x246   :  { %3980 = vmatprep.mubr.msk.f32.mxu1 %vm4352_vm4, %v4353_v8 }
 0x247   :  { %3903 = vmatmul.mubr.msk.f32.gmra.mrb[92].mxu0 %vm571_vm6, %v3190_v1 }
 0x248   :  { %3905 = vmatprep.mubr.msk.f32.mxu0 %vm4352_vm4, %v4353_v8 }
 0x249   :  { %3981 = vmatmul.mubr.msk.f32.gmra.mrb[104].mxu1 %vm571_vm6, %v3234_v2 }
 0x24a   :  { %3983 = vmatprep.mubr.msk.f32.mxu1 %vm4352_vm4, %v4353_v8 }
 0x24b   :  { %3906 = vmatmul.mubr.msk.f32.gmra.mrb[94].mxu0 %vm571_vm6, %v3191_v5 }
 0x24c   :  { %3941 = vmatprep.mubr.msk.f32.mxu0 %vm4352_vm4, %v4353_v8 }
 0x24d   :  { %3984 = vmatmul.mubr.msk.f32.gmra.mrb[106].mxu1 %vm571_vm6, %v3235_v10 }
 0x24e   :  { %3986 = vmatprep.mubr.msk.f32.mxu1 %vm4352_vm4, %v4353_v8 }
 0x24f   :  { %3942 = vmatmul.mubr.msk.f32.vlgmr.msra.gmra.mrb[96].mxu0 %vm571_vm6, %v3215_v12 }
 0x250   :  { %4236 = vmatpush3.bf16.msra.mxu0 %v4235_v13  ;;  %3944 = vmatprep.mubr.msk.f32.mxu0 %vm4352_vm4, %v4353_v8 }
 0x251   :  { %3993 = vmatprep.subr.mxu0 %v4353_v8  ;;  %3987 = vmatmul.mubr.msk.f32.gmra.mrb[108].mxu1 %vm571_vm6, %v3236_v14 }
 0x252   :  { %4022 = vmatprep.mubr.msk.f32.mxu1 %vm4352_vm4, %v4353_v8 }
 0x253   :  { %3945 = vmatmul.mubr.msk.f32.gmra.mrb[98].mxu0 %vm571_vm6, %v3216_v49 }
 0x254   :  { %3994 = vmatpush3.msk.msra.mxu0 %vm593_vm5, %v2584_v16  ;;  %3947 = vmatprep.mubr.msk.f32.mxu0 %vm4352_vm4, %v4353_v8 }
 0x255   :  { %4023 = vmatmul.mubr.msk.f32.vlgmr.msra.gmra.mrb[110].mxu1 %vm571_vm6, %v3260_v9 }
 0x256   :  { %4025 = vmatprep.mubr.msk.f32.mxu1 %vm4352_vm4, %v4353_v8 }
 0x257   :  { %3948 = vmatmul.mubr.msk.f32.gmra.mrb[100].mxu0 %vm571_vm6, %v3217_v18 }
 0x258   :  { %3950 = vmatprep.mubr.msk.f32.mxu0 %vm4352_vm4, %v4353_v8 }
 0x259   :  { %4026 = vmatmul.mubr.msk.f32.gmra.mrb[112].mxu1 %vm571_vm6, %v3261_v19 }
 0x25a   :  { %4028 = vmatprep.mubr.msk.f32.mxu1 %vm4352_vm4, %v4353_v8 }
 0x25b   :  { %3951 = vmatmul.mubr.msk.f32.gmra.mrb[102].mxu0 %vm571_vm6, %v3218_v20 }
 0x25c   :  { %3953 = vmatprep.mubr.msk.f32.mxu0 %vm4352_vm4, %v4353_v8 }
 0x25d   :  { %4029 = vmatmul.mubr.msk.f32.gmra.mrb[114].mxu1 %vm571_vm6, %v3262_v21 }
 0x25e   :  { %4031 = vmatprep.mubr.msk.f32.mxu1 %vm4352_vm4, %v4353_v8 }
 0x25f   :  { %3954 = vmatmul.mubr.msk.f32.gmra.mrb[104].mxu0 %vm571_vm6, %v3219_v23 }
 0x260   :  { %3956 = vmatprep.mubr.msk.f32.mxu0 %vm4352_vm4, %v4353_v8 }
 0x261   :  { %4032 = vmatmul.mubr.msk.f32.gmra.mrb[116].mxu1 %vm571_vm6, %v3263_v24 }
 0x262   :  { %4034 = vmatprep.mubr.msk.f32.mxu1 %vm4352_vm4, %v4353_v8 }
 0x263   :  { %3957 = vmatmul.mubr.msk.f32.gmra.mrb[106].mxu0 %vm571_vm6, %v3220_v26 }
 0x264   :  { %3959 = vmatprep.mubr.msk.f32.mxu0 %vm4352_vm4, %v4353_v8 }
 0x265   :  { %4035 = vmatmul.mubr.msk.f32.gmra.mrb[118].mxu1 %vm571_vm6, %v3264_v27 }
 0x266   :  { %4037 = vmatprep.mubr.msk.f32.mxu1 %vm4352_vm4, %v4353_v8 }
 0x267   :  { %3960 = vmatmul.mubr.msk.f32.gmra.mrb[108].mxu0 %vm571_vm6, %v3221_v28 }
 0x268   :  { %3995 = vmatprep.mubr.msk.f32.mxu0 %vm4352_vm4, %v4353_v8 }
 0x269   :  { %4038 = vmatmul.mubr.msk.f32.gmra.mrb[120].mxu1 %vm571_vm6, %v3265_v29 }
 0x26a   :  { %4040 = vmatprep.mubr.msk.f32.mxu1 %vm4352_vm4, %v4353_v8 }
 0x26b   :  { %3996 = vmatmul.mubr.msk.f32.vlgmr.msra.gmra.mrb[110].mxu0 %vm571_vm6, %v3245_v31 }
 0x26c   :  { %3998 = vmatprep.mubr.msk.f32.mxu0 %vm4352_vm4, %v4353_v8 }
 0x26d   :  { %4041 = vmatmul.mubr.msk.f32.gmra.mrb[122].mxu1 %vm571_vm6, %v3266_v32 }
 0x26f   :  { %3999 = vmatmul.mubr.msk.f32.gmra.mrb[112].mxu0 %vm571_vm6, %v3246_v33 }
 0x270   :  { %4001 = vmatprep.mubr.msk.f32.mxu0 %vm4352_vm4, %v4353_v8 }
 0x273   :  { %4002 = vmatmul.mubr.msk.f32.gmra.mrb[114].mxu0 %vm571_vm6, %v3247_v34 }
 0x274   :  { %4004 = vmatprep.mubr.msk.f32.mxu0 %vm4352_vm4, %v4353_v8 }
 0x277   :  { %4005 = vmatmul.mubr.msk.f32.gmra.mrb[116].mxu0 %vm571_vm6, %v3248_v35 }
 0x278   :  { %4007 = vmatprep.mubr.msk.f32.mxu0 %vm4352_vm4, %v4353_v8 }
 0x27a   :  { %v662_v37 = vpop.f32.mrb[12].mxu0 }
 0x27b   :  { %v786_v38 = vadd.f32 %v5314_v59, %v662_v37  ;;  %v3619_v39 = vpop.f32.mrb[13].mxu0  ;;  %4008 = vmatmul.mubr.msk.f32.gmra.mrb[118].mxu0 %vm571_vm6, %v3249_v36  ;;  %v3251_v59 = vld [vmem:[%s5721_s6 + $0x340] sm:$0x3] }
 0x27c   :  { %4010 = vmatprep.mubr.msk.f32.mxu0 %vm4352_vm4, %v4353_v8 }
 0x27e   :  { %v667_v41 = vpop.f32.mrb[14].mxu0 }
 0x27f   :  { %v791_v42 = vadd.f32 %v5330_v0, %v667_v41  ;;  %v3622_v43 = vpop.f32.mrb[15].mxu0  ;;  %4011 = vmatmul.mubr.msk.f32.gmra.mrb[120].mxu0 %vm571_vm6, %v3250_v40 }
 0x280   :  { %4013 = vmatprep.mubr.msk.f32.mxu0 %vm4352_vm4, %v4353_v8  ;;  %v1070_v44 = vpop.f32.mrb[26].mxu1 }
 0x281   :  { %v3700_v45 = vpop.f32.mrb[27].mxu1 }
 0x282   :  { %v672_v46 = vpop.f32.mrb[16].mxu0 }
 0x283   :  { %v796_v17 = vadd.f32 %v5344_v4, %v672_v46  ;;  %v3625_v47 = vpop.f32.mrb[17].mxu0  ;;  %4014 = vmatmul.mubr.msk.f32.gmra.mrb[122].mxu0 %vm571_vm6, %v3251_v59 }
 0x284   :  { %v1075_v48 = vpop.f32.mrb[28].mxu1 }
 0x285   :  { %v3703_v0 = vpop.f32.mrb[29].mxu1 }
 0x286   :  { %v677_v50 = vpop.f32.mrb[18].mxu0 }
 0x287   :  { %v801_v51 = vadd.f32 %v5358_v11, %v677_v50  ;;  %v3628_v52 = vpop.f32.mrb[19].mxu0 }
 0x288   :  { %v1080_v53 = vpop.f32.mrb[30].mxu1 }
 0x289   :  { %v3706_v8 = vpop.f32.mrb[31].mxu1 }
 0x28a   :  { %v682_v54 = vpop.f32.mrb[20].mxu0 }
 0x28b   :  { %v806_v55 = vadd.f32 %v5372_v15, %v682_v54  ;;  %v3631_v56 = vpop.f32.mrb[21].mxu0 }
 0x28c   :  { %v1085_v57 = vpop.f32.mrb[32].mxu1 }
 0x28d   :  { %v3709_v58 = vpop.f32.mrb[33].mxu1 }
 0x28e   :  { %v687_v60 = vpop.f32.mrb[22].mxu0 }
 0x28f   :  { %v811_v4 = vadd.f32 %v5386_v22, %v687_v60  ;;  %v3634_v25 = vpop.f32.mrb[23].mxu0 }
 0x290   :  { %v1090_v61 = vpop.f32.mrb[34].mxu1 }
 0x291   :  { %v3712_v62 = vpop.f32.mrb[35].mxu1 }
 0x292   :  { %v692_v63 = vpop.f32.mrb[24].mxu0 }
 0x293   :  { %v816_v1 = vadd.f32 %v5401_v30, %v692_v63  ;;  %v3637_v2 = vpop.f32.mrb[25].mxu0 }
 0x294   :  { %v1095_v11 = vpop.f32.mrb[36].mxu1 }
 0x295   :  { %v3715_v3 = vpop.f32.mrb[37].mxu1 }
 0x296   :  { %v924_v5 = vpop.f32.mrb[26].mxu0 }
 0x297   :  { %v958_v6 = vadd.f32 %v924_v5, %v786_v38  ;;  %v3673_v7 = vpop.f32.mrb[27].mxu0 }
 0x298   :  { %v1100_v10 = vpop.f32.mrb[38].mxu1 }
 0x299   :  { %v1104_v15 = vadd.f32 %v1070_v44, %v958_v6  ;;  %v3718_v12 = vpop.f32.mrb[39].mxu1 }
 0x29a   :  { %v929_v13 = vpop.f32.mrb[28].mxu0 }
 0x29b   :  { %v959_v14 = vadd.f32 %v929_v13, %v791_v42  ;;  %v3676_v49 = vpop.f32.mrb[29].mxu0 }
 0x29c   :  { %v1362_v9 = vpop.f32.mrb[40].mxu1 }
 0x29d   :  { %v1105_v22 = vadd.f32 %v1075_v48, %v959_v14  ;;  %v3754_v16 = vpop.f32.mrb[41].mxu1 }
 0x29e   :  { %v934_v18 = vpop.f32.mrb[30].mxu0 }
 0x29f   :  { %v960_v19 = vadd.f32 %v934_v18, %v796_v17  ;;  %v3679_v20 = vpop.f32.mrb[31].mxu0 }
 0x2a0   :  { %v1367_v21 = vpop.f32.mrb[42].mxu1 }
 0x2a1   :  { %v1106_v30 = vadd.f32 %v1080_v53, %v960_v19  ;;  %v3757_v23 = vpop.f32.mrb[43].mxu1 }
 0x2a2   :  { %v939_v24 = vpop.f32.mrb[32].mxu0 }
 0x2a3   :  { %v961_v26 = vadd.f32 %v939_v24, %v801_v51  ;;  %v3682_v27 = vpop.f32.mrb[33].mxu0 }
 0x2a4   :  { %v1372_v28 = vpop.f32.mrb[44].mxu1 }
 0x2a5   :  { %v1107_v29 = vadd.f32 %v1085_v57, %v961_v26  ;;  %v3760_v31 = vpop.f32.mrb[45].mxu1 }
 0x2a6   :  { %v944_v32 = vpop.f32.mrb[34].mxu0 }
 0x2a7   :  { %v962_v33 = vadd.f32 %v944_v32, %v806_v55  ;;  %v3685_v34 = vpop.f32.mrb[35].mxu0 }
 0x2a8   :  { %v1377_v35 = vpop.f32.mrb[46].mxu1 }
 0x2a9   :  { %v1108_v36 = vadd.f32 %v1090_v61, %v962_v33  ;;  %v3763_v37 = vpop.f32.mrb[47].mxu1 }
 0x2aa   :  { %v949_v38 = vpop.f32.mrb[36].mxu0 }
 0x2ab   :  { %v963_v39 = vadd.f32 %v949_v38, %v811_v4  ;;  %v3688_v40 = vpop.f32.mrb[37].mxu0 }
 0x2ac   :  { %v1382_v41 = vpop.f32.mrb[48].mxu1 }
 0x2ad   :  { %v1109_v42 = vadd.f32 %v1095_v11, %v963_v39  ;;  %v3766_v43 = vpop.f32.mrb[49].mxu1 }
 0x2ae   :  { %v954_v59 = vpop.f32.mrb[38].mxu0 }
 0x2af   :  { %v964_v44 = vadd.f32 %v954_v59, %v816_v1  ;;  %v3691_v45 = vpop.f32.mrb[39].mxu0 }
 0x2b0   :  { %v1387_v46 = vpop.f32.mrb[50].mxu1 }
 0x2b1   :  { %v1110_v17 = vadd.f32 %v1100_v10, %v964_v44  ;;  %v3769_v47 = vpop.f32.mrb[51].mxu1 }
 0x2b2   :  { %v1216_v48 = vpop.f32.mrb[40].mxu0 }
 0x2b3   :  { %v1250_v0 = vadd.f32 %v1216_v48, %v1104_v15  ;;  %v3727_v50 = vpop.f32.mrb[41].mxu0 }
 0x2b4   :  { %v1392_v51 = vpop.f32.mrb[52].mxu1 }
 0x2b5   :  { %v1396_v52 = vadd.f32 %v1362_v9, %v1250_v0  ;;  %v3772_v53 = vpop.f32.mrb[53].mxu1 }
 0x2b6   :  { %v1221_v8 = vpop.f32.mrb[42].mxu0 }
 0x2b7   :  { %v1251_v54 = vadd.f32 %v1221_v8, %v1105_v22  ;;  %v3730_v55 = vpop.f32.mrb[43].mxu0 }
 0x2b8   :  { %v1654_v56 = vpop.f32.mrb[54].mxu1 }
 0x2b9   :  { %v1397_v57 = vadd.f32 %v1367_v21, %v1251_v54  ;;  %v3808_v58 = vpop.f32.mrb[55].mxu1 }
 0x2ba   :  { %v1226_v60 = vpop.f32.mrb[44].mxu0  ;;  %v2919_v58 = vld [vmem:[%s5724_s8] sm:$0xff] }
 0x2bb   :  { %v1252_v4 = vadd.f32 %v1226_v60, %v1106_v30  ;;  %v3733_v25 = vpop.f32.mrb[45].mxu0  ;;  %4057 = vmatprep.mubr.msk.f32.mxu0 %vm2933_vm7, %v2919_v58 }
 0x2bc   :  { %v1659_v61 = vpop.f32.mrb[56].mxu1 }
 0x2bd   :  { %v1398_v62 = vadd.f32 %v1372_v28, %v1252_v4  ;;  %v3811_v63 = vpop.f32.mrb[57].mxu1 }
 0x2be   :  { %v1231_v1 = vpop.f32.mrb[46].mxu0 }
 0x2bf   :  { %v1253_v2 = vadd.f32 %v1231_v1, %v1107_v29  ;;  %v3736_v11 = vpop.f32.mrb[47].mxu0 }
 0x2c0   :  { %v1664_v3 = vpop.f32.mrb[58].mxu1 }
 0x2c1   :  { %v1399_v5 = vadd.f32 %v1377_v35, %v1253_v2  ;;  %v3814_v6 = vpop.f32.mrb[59].mxu1 }
 0x2c2   :  { %v1236_v7 = vpop.f32.mrb[48].mxu0 }
 0x2c3   :  { %v1254_v10 = vadd.f32 %v1236_v7, %v1108_v36  ;;  %v3739_v15 = vpop.f32.mrb[49].mxu0 }
 0x2c4   :  { %v1669_v12 = vpop.f32.mrb[60].mxu1 }
 0x2c5   :  { %v1400_v13 = vadd.f32 %v1382_v41, %v1254_v10  ;;  %v3817_v14 = vpop.f32.mrb[61].mxu1 }
 0x2c6   :  { %v1241_v49 = vpop.f32.mrb[50].mxu0 }
 0x2c7   :  { %v1255_v9 = vadd.f32 %v1241_v49, %v1109_v42  ;;  %v3742_v22 = vpop.f32.mrb[51].mxu0 }
 0x2c8   :  { %v1674_v16 = vpop.f32.mrb[62].mxu1 }
 0x2c9   :  { %v1401_v18 = vadd.f32 %v1387_v46, %v1255_v9  ;;  %v3820_v19 = vpop.f32.mrb[63].mxu1 }
 0x2ca   :  { %v1246_v20 = vpop.f32.mrb[52].mxu0 }
 0x2cb   :  { %v1256_v21 = vadd.f32 %v1246_v20, %v1110_v17  ;;  %v3745_v30 = vpop.f32.mrb[53].mxu0 }
 0x2cc   :  { %v1679_v23 = vpop.f32.mrb[64].mxu1 }
 0x2cd   :  { %v1402_v24 = vadd.f32 %v1392_v51, %v1256_v21  ;;  %v3823_v26 = vpop.f32.mrb[65].mxu1 }
 0x2ce   :  { %v1508_v27 = vpop.f32.mrb[54].mxu0 }
 0x2cf   :  { %v1542_v28 = vadd.f32 %v1508_v27, %v1396_v52  ;;  %v3781_v29 = vpop.f32.mrb[55].mxu0 }
 0x2d0   :  { %v1684_v31 = vpop.f32.mrb[66].mxu1 }
 0x2d1   :  { %v1688_v32 = vadd.f32 %v1654_v56, %v1542_v28  ;;  %v3826_v33 = vpop.f32.mrb[67].mxu1 }
 0x2d2   :  { %v1513_v34 = vpop.f32.mrb[56].mxu0 }
 0x2d3   :  { %v1543_v35 = vadd.f32 %v1513_v34, %v1397_v57  ;;  %v3784_v36 = vpop.f32.mrb[57].mxu0 }
 0x2d4   :  { %v1946_v37 = vpop.f32.mrb[68].mxu1 }
 0x2d5   :  { %v1689_v38 = vadd.f32 %v1659_v61, %v1543_v35  ;;  %v3862_v39 = vpop.f32.mrb[69].mxu1 }
 0x2d6   :  { %v1518_v40 = vpop.f32.mrb[58].mxu0 }
 0x2d7   :  { %v1544_v41 = vadd.f32 %v1518_v40, %v1398_v62  ;;  %v3787_v42 = vpop.f32.mrb[59].mxu0 }
 0x2d8   :  { %v1951_v43 = vpop.f32.mrb[70].mxu1 }
 0x2d9   :  { %v1690_v59 = vadd.f32 %v1664_v3, %v1544_v41  ;;  %v3865_v44 = vpop.f32.mrb[71].mxu1 }
 0x2da   :  { %v1523_v45 = vpop.f32.mrb[60].mxu0 }
 0x2db   :  { %v1545_v46 = vadd.f32 %v1523_v45, %v1399_v5  ;;  %v3790_v17 = vpop.f32.mrb[61].mxu0 }
 0x2dc   :  { %v1956_v47 = vpop.f32.mrb[72].mxu1 }
 0x2dd   :  { %v1691_v48 = vadd.f32 %v1669_v12, %v1545_v46  ;;  %v3868_v0 = vpop.f32.mrb[73].mxu1 }
 0x2de   :  { %v1528_v50 = vpop.f32.mrb[62].mxu0 }
 0x2df   :  { %v1546_v51 = vadd.f32 %v1528_v50, %v1400_v13  ;;  %v3793_v52 = vpop.f32.mrb[63].mxu0 }
 0x2e0   :  { %v1961_v53 = vpop.f32.mrb[74].mxu1 }
 0x2e1   :  { %v1692_v8 = vadd.f32 %v1674_v16, %v1546_v51  ;;  %v3871_v54 = vpop.f32.mrb[75].mxu1 }
 0x2e2   :  { %v1533_v55 = vpop.f32.mrb[64].mxu0 }
 0x2e3   :  { %v1547_v56 = vadd.f32 %v1533_v55, %v1401_v18  ;;  %v3796_v57 = vpop.f32.mrb[65].mxu0 }
 0x2e4   :  { %v1966_v60 = vpop.f32.mrb[76].mxu1 }
 0x2e5   :  { %v1693_v4 = vadd.f32 %v1679_v23, %v1547_v56  ;;  %v3874_v25 = vpop.f32.mrb[77].mxu1 }
 0x2e6   :  { %v1538_v61 = vpop.f32.mrb[66].mxu0 }
 0x2e7   :  { %v1548_v62 = vadd.f32 %v1538_v61, %v1402_v24  ;;  %v3799_v63 = vpop.f32.mrb[67].mxu0 }
 0x2e8   :  { %v1971_v1 = vpop.f32.mrb[78].mxu1 }
 0x2e9   :  { %v1694_v2 = vadd.f32 %v1684_v31, %v1548_v62  ;;  %v3877_v11 = vpop.f32.mrb[79].mxu1 }
 0x2ea   :  { %v1800_v3 = vpop.f32.mrb[68].mxu0 }
 0x2eb   :  { %v1834_v5 = vadd.f32 %v1800_v3, %v1688_v32  ;;  %v3835_v6 = vpop.f32.mrb[69].mxu0 }
 0x2ec   :  { %v1976_v7 = vpop.f32.mrb[80].mxu1 }
 0x2ed   :  { %v1980_v10 = vadd.f32 %v1946_v37, %v1834_v5  ;;  %v3880_v15 = vpop.f32.mrb[81].mxu1 }
 0x2ee   :  { %v1805_v12 = vpop.f32.mrb[70].mxu0 }
 0x2ef   :  { %v1835_v13 = vadd.f32 %v1805_v12, %v1689_v38  ;;  %v3838_v14 = vpop.f32.mrb[71].mxu0 }
 0x2f0   :  { %v2238_v49 = vpop.f32.mrb[82].mxu1 }
 0x2f1   :  { %v1981_v9 = vadd.f32 %v1951_v43, %v1835_v13  ;;  %v3916_v22 = vpop.f32.mrb[83].mxu1 }
 0x2f2   :  { %v1810_v16 = vpop.f32.mrb[72].mxu0 }
 0x2f3   :  { %v1836_v18 = vadd.f32 %v1810_v16, %v1690_v59  ;;  %v3841_v19 = vpop.f32.mrb[73].mxu0 }
 0x2f4   :  { %v2243_v20 = vpop.f32.mrb[84].mxu1 }
 0x2f5   :  { %v1982_v21 = vadd.f32 %v1956_v47, %v1836_v18  ;;  %v3919_v30 = vpop.f32.mrb[85].mxu1 }
 0x2f6   :  { %v1815_v23 = vpop.f32.mrb[74].mxu0 }
 0x2f7   :  { %v1837_v24 = vadd.f32 %v1815_v23, %v1691_v48  ;;  %v3844_v26 = vpop.f32.mrb[75].mxu0 }
 0x2f8   :  { %v2248_v27 = vpop.f32.mrb[86].mxu1 }
 0x2f9   :  { %v1983_v28 = vadd.f32 %v1961_v53, %v1837_v24  ;;  %v3922_v29 = vpop.f32.mrb[87].mxu1 }
 0x2fa   :  { %v1820_v31 = vpop.f32.mrb[76].mxu0 }
 0x2fb   :  { %v1838_v32 = vadd.f32 %v1820_v31, %v1692_v8  ;;  %v3847_v33 = vpop.f32.mrb[77].mxu0 }
 0x2fc   :  { %v2253_v34 = vpop.f32.mrb[88].mxu1 }
 0x2fd   :  { %v1984_v35 = vadd.f32 %v1966_v60, %v1838_v32  ;;  %v3925_v36 = vpop.f32.mrb[89].mxu1 }
 0x2fe   :  { %v1825_v37 = vpop.f32.mrb[78].mxu0 }
 0x2ff   :  { %v1839_v38 = vadd.f32 %v1825_v37, %v1693_v4  ;;  %v3850_v39 = vpop.f32.mrb[79].mxu0 }
 0x300   :  { %v2258_v40 = vpop.f32.mrb[90].mxu1 }
 0x301   :  { %v1985_v41 = vadd.f32 %v1971_v1, %v1839_v38  ;;  %v3928_v42 = vpop.f32.mrb[91].mxu1 }
 0x302   :  { %v1830_v43 = vpop.f32.mrb[80].mxu0 }
 0x303   :  { %v1840_v59 = vadd.f32 %v1830_v43, %v1694_v2  ;;  %v3853_v44 = vpop.f32.mrb[81].mxu0 }
 0x304   :  { %v2263_v45 = vpop.f32.mrb[92].mxu1 }
 0x305   :  { %v1986_v46 = vadd.f32 %v1976_v7, %v1840_v59  ;;  %v3931_v17 = vpop.f32.mrb[93].mxu1 }
 0x306   :  { %v2092_v47 = vpop.f32.mrb[82].mxu0 }
 0x307   :  { %v2126_v48 = vadd.f32 %v2092_v47, %v1980_v10  ;;  %v3889_v0 = vpop.f32.mrb[83].mxu0 }
 0x308   :  { %v2268_v50 = vpop.f32.mrb[94].mxu1 }
 0x309   :  { %v2272_v51 = vadd.f32 %v2238_v49, %v2126_v48  ;;  %v3934_v52 = vpop.f32.mrb[95].mxu1 }
 0x30a   :  { %v2097_v53 = vpop.f32.mrb[84].mxu0 }
 0x30b   :  { %v2127_v8 = vadd.f32 %v2097_v53, %v1981_v9  ;;  %v3892_v54 = vpop.f32.mrb[85].mxu0 }
 0x30c   :  { %v2530_v55 = vpop.f32.mrb[96].mxu1 }
 0x30d   :  { %v2273_v56 = vadd.f32 %v2243_v20, %v2127_v8  ;;  %v3970_v57 = vpop.f32.mrb[97].mxu1 }
 0x30e   :  { %v2102_v58 = vpop.f32.mrb[86].mxu0 }
 0x30f   :  { %v2128_v60 = vadd.f32 %v2102_v58, %v1982_v21  ;;  %v3895_v4 = vpop.f32.mrb[87].mxu0 }
 0x310   :  { %v2535_v25 = vpop.f32.mrb[98].mxu1 }
 0x311   :  { %v2274_v61 = vadd.f32 %v2248_v27, %v2128_v60  ;;  %v3973_v62 = vpop.f32.mrb[99].mxu1 }
 0x312   :  { %v2107_v63 = vpop.f32.mrb[88].mxu0 }
 0x313   :  { %v2129_v1 = vadd.f32 %v2107_v63, %v1983_v28  ;;  %v3898_v2 = vpop.f32.mrb[89].mxu0 }
 0x314   :  { %v2540_v11 = vpop.f32.mrb[100].mxu1 }
 0x315   :  { %v2275_v3 = vadd.f32 %v2253_v34, %v2129_v1  ;;  %v3976_v5 = vpop.f32.mrb[101].mxu1 }
 0x316   :  { %v2112_v6 = vpop.f32.mrb[90].mxu0 }
 0x317   :  { %v2130_v7 = vadd.f32 %v2112_v6, %v1984_v35  ;;  %v3901_v10 = vpop.f32.mrb[91].mxu0 }
 0x318   :  { %v2545_v15 = vpop.f32.mrb[102].mxu1 }
 0x319   :  { %v2276_v12 = vadd.f32 %v2258_v40, %v2130_v7  ;;  %v3979_v13 = vpop.f32.mrb[103].mxu1 }
 0x31a   :  { %v2117_v14 = vpop.f32.mrb[92].mxu0  ;;  %v2873_v13 = vpop.permute.xlu1 %2872 }
 0x31b   :  { %v2131_v49 = vadd.f32 %v2117_v14, %v1985_v41  ;;  %v3904_v9 = vpop.f32.mrb[93].mxu0 }
 0x31c   :  { %v2550_v22 = vpop.f32.mrb[104].mxu1  ;;  %v2878_v9 = vpop.permute.xlu0 %2877 }
 0x31d   :  { %v2277_v16 = vadd.f32 %v2263_v45, %v2131_v49  ;;  %v3982_v18 = vpop.f32.mrb[105].mxu1 }
 0x31e   :  { %v2122_v19 = vpop.f32.mrb[94].mxu0 }
 0x31f   :  { %v2132_v20 = vadd.f32 %v2122_v19, %v1986_v46  ;;  %v3907_v21 = vpop.f32.mrb[95].mxu0 }
 0x320   :  { %v2555_v30 = vpop.f32.mrb[106].mxu1 }
 0x321   :  { %v2278_v23 = vadd.f32 %v2268_v50, %v2132_v20  ;;  %v3985_v24 = vpop.f32.mrb[107].mxu1 }
 0x322   :  { %v2384_v26 = vpop.f32.mrb[96].mxu0 }
 0x323   :  { %v2418_v27 = vadd.f32 %v2384_v26, %v2272_v51  ;;  %v3943_v28 = vpop.f32.mrb[97].mxu0 }
 0x324   :  { %v2560_v29 = vpop.f32.mrb[108].mxu1  ;;  %v2883_v28 = vpop.permute.xlu1 %2882 }
 0x325   :  { %v2564_v31 = vadd.f32 %v2530_v55, %v2418_v27  ;;  %v3988_v32 = vpop.f32.mrb[109].mxu1 }
 0x326   :  { %v2389_v33 = vpop.f32.mrb[98].mxu0  ;;  %v2888_v32 = vpop.permute.xlu0 %2887 }
 0x327   :  { %v2419_v34 = vadd.f32 %v2389_v33, %v2273_v56  ;;  %v3946_v35 = vpop.f32.mrb[99].mxu0 }
 0x328   :  { %v2822_v36 = vpop.f32.mrb[110].mxu1 }
 0x329   :  { %v2565_v37 = vadd.f32 %v2535_v25, %v2419_v34  ;;  %v4024_v38 = vpop.f32.mrb[111].mxu1 }
 0x32a   :  { %v2394_v39 = vpop.f32.mrb[100].mxu0 }
 0x32b   :  { %v2420_v40 = vadd.f32 %v2394_v39, %v2274_v61  ;;  %v3949_v41 = vpop.f32.mrb[101].mxu0 }
 0x32c   :  { %v2827_v42 = vpop.f32.mrb[112].mxu1 }
 0x32d   :  { %v2566_v43 = vadd.f32 %v2540_v11, %v2420_v40  ;;  %v4027_v59 = vpop.f32.mrb[113].mxu1 }
 0x32e   :  { %v2399_v44 = vpop.f32.mrb[102].mxu0  ;;  %v2893_v59 = vpop.permute.xlu1 %2892 }
 0x32f   :  { %v2421_v45 = vadd.f32 %v2399_v44, %v2275_v3  ;;  %v3952_v46 = vpop.f32.mrb[103].mxu0 }
 0x330   :  { %v2832_v17 = vpop.f32.mrb[114].mxu1  ;;  %v2898_v46 = vpop.permute.xlu0 %2897 }
 0x331   :  { %v2567_v47 = vadd.f32 %v2545_v15, %v2421_v45  ;;  %v4030_v48 = vpop.f32.mrb[115].mxu1 }
 0x332   :  { %v2404_v0 = vpop.f32.mrb[104].mxu0 }
 0x333   :  { %v2422_v50 = vadd.f32 %v2404_v0, %v2276_v12  ;;  %v3955_v51 = vpop.f32.mrb[105].mxu0 }
 0x334   :  { %v2837_v52 = vpop.f32.mrb[116].mxu1 }
 0x335   :  { %v2568_v53 = vadd.f32 %v2550_v22, %v2422_v50  ;;  %v4033_v8 = vpop.f32.mrb[117].mxu1 }
 0x336   :  { %v2409_v54 = vpop.f32.mrb[106].mxu0 }
 0x337   :  { %v2423_v55 = vadd.f32 %v2409_v54, %v2277_v16  ;;  %v3958_v56 = vpop.f32.mrb[107].mxu0 }
 0x338   :  { %v2842_v57 = vpop.f32.mrb[118].mxu1  ;;  %v2920_v56 = vld [vmem:[%s5724_s8 + $0x8] sm:$0x3] }
 0x339   :  { %v2569_v58 = vadd.f32 %v2555_v30, %v2423_v55  ;;  %v4036_v60 = vpop.f32.mrb[119].mxu1 }
 0x33a   :  { %v2414_v4 = vpop.f32.mrb[108].mxu0  ;;  %v2926_v60 = vpop.permute.xlu0 %2925 }
 0x33b   :  { %v2424_v25 = vadd.f32 %v2414_v4, %v2278_v23  ;;  %v3961_v61 = vpop.f32.mrb[109].mxu0 }
 0x33c   :  { %v2847_v62 = vpop.f32.mrb[120].mxu1 }
 0x33d   :  { %v2570_v63 = vadd.f32 %v2560_v29, %v2424_v25  ;;  %v4039_v1 = vpop.f32.mrb[121].mxu1 }
 0x33e   :  { %v2676_v2 = vpop.f32.mrb[110].mxu0 }
 0x33f   :  { %v2710_v11 = vadd.f32 %v2676_v2, %v2564_v31  ;;  %v3997_v3 = vpop.f32.mrb[111].mxu0 }
 0x340   :  { %v2852_v5 = vpop.f32.mrb[122].mxu1 }
 0x341   :  { %v2856_v6 = vadd.f32 %v2822_v36, %v2710_v11  ;;  %v4042_v7 = vpop.f32.mrb[123].mxu1 }
 0x342   :  { %v2681_v10 = vpop.f32.mrb[112].mxu0 }
 0x343   :  { %v2711_v15 = vadd.f32 %v2681_v10, %v2565_v37  ;;  %v4000_v12 = vpop.f32.mrb[113].mxu0  ;;  %v2905_v14 = vadd.f32 %v2873_v13, %v2856_v6 }
 0x345   :  { %v2857_v49 = vadd.f32 %v2827_v42, %v2711_v15  ;;  %v2912_v20 = vmax.f32 %v2905_v14, 0.0 }
 0x346   :  { %v2686_v22 = vpop.f32.mrb[114].mxu0 }
 0x347   :  { %v2906_v16 = vadd.f32 %v2878_v9, %v2857_v49  ;;  %v2712_v18 = vadd.f32 %v2686_v22, %v2566_v43  ;;  %v4003_v19 = vpop.f32.mrb[115].mxu0 }
 0x349   :  { %v2913_v21 = vmax.f32 %v2906_v16, 0.0  ;;  %v2858_v30 = vadd.f32 %v2832_v17, %v2712_v18 }
 0x34a   :  { %v2691_v23 = vpop.f32.mrb[116].mxu0 }
 0x34b   :  { %v2713_v24 = vadd.f32 %v2691_v23, %v2567_v47  ;;  %v4006_v26 = vpop.f32.mrb[117].mxu0  ;;  %v4240_v27 = vpack.c.bf16 %v2913_v21, %v2912_v20  ;;  %v2907_v29 = vadd.f32 %v2883_v28, %v2858_v30 }
 0x34d   :  { %v2859_v31 = vadd.f32 %v2837_v52, %v2713_v24  ;;  %4241 = vmatprep.subr.bf16.mxu0 %v4240_v27  ;;  %v2914_v37 = vmax.f32 %v2907_v29, 0.0 }
 0x34e   :  { %v2696_v33 = vpop.f32.mrb[118].mxu0  ;;  %4243 = vmatpush3.bf16.msra.mxu0 %v4240_v27 }
 0x34f   :  { %v2908_v34 = vadd.f32 %v2888_v32, %v2859_v31  ;;  %v2714_v35 = vadd.f32 %v2696_v33, %v2568_v53  ;;  %v4009_v36 = vpop.f32.mrb[119].mxu0  ;;  %v2903_v53 = vpop.permute.xlu1 %2902 }
 0x351   :  { %v2915_v38 = vmax.f32 %v2908_v34, 0.0  ;;  %v2860_v39 = vadd.f32 %v2842_v57, %v2714_v35 }
 0x352   :  { %v2701_v40 = vpop.f32.mrb[120].mxu0 }
 0x353   :  { %v2715_v41 = vadd.f32 %v2701_v40, %v2569_v58  ;;  %v4012_v42 = vpop.f32.mrb[121].mxu0  ;;  %v4244_v43 = vpack.c.bf16 %v2915_v38, %v2914_v37  ;;  %v2909_v44 = vadd.f32 %v2893_v59, %v2860_v39  ;;  %v2931_v57 = vpop.permute.xlu1 %2930 }
 0x355   :  { %v2861_v45 = vadd.f32 %v2847_v62, %v2715_v41  ;;  %4245 = vmatprep.subr.bf16.mxu0 %v4244_v43  ;;  %v2916_v50 = vmax.f32 %v2909_v44, 0.0 }
 0x356   :  { %v2706_v17 = vpop.f32.mrb[122].mxu0  ;;  %4247 = vmatpush3.bf16.msra.mxu0 %v4244_v43 }
 0x357   :  { %v2910_v47 = vadd.f32 %v2898_v46, %v2861_v45  ;;  %v2716_v48 = vadd.f32 %v2706_v17, %v2570_v63  ;;  %v4015_v0 = vpop.f32.mrb[123].mxu0 }
 0x359   :  { %v2917_v51 = vmax.f32 %v2910_v47, 0.0  ;;  %v2862_v52 = vadd.f32 %v2852_v5, %v2716_v48 }
 0x35b   :  { %v2911_v8 = vadd.f32 %v2903_v53, %v2862_v52  ;;  %v4248_v54 = vpack.c.bf16 %v2917_v51, %v2916_v50 }
 0x35d   :  { %v2918_v55 = vmax.f32 %v2911_v8, 0.0  ;;  %4249 = vmatprep.subr.bf16.mxu0 %v4248_v54 }
 0x35e   :  { %4251 = vmatpush3.bf16.msra.mxu0 %v4248_v54 }
 0x35f   :  { %4055 = vmatprep.subr.msk.mxu0 %vm83_vm1, %v2918_v55 }
 0x362   :  { %4056 = vmatpush3.msk.msra.mxu0 %vm83_vm1, %v2918_v55 }
 0x363   :  { %4058 = vmatmul.mubr.msk.f32.vlgmr.msra.gmra.mrb[124].mxu0 %vm2933_vm7, %v2920_v56 }
 0x436   :  { %v4059_v58 = vpop.f32.mrb[124].mxu0 }
 0x437   :  { %v3015_v4 = vadd.f32 %v4059_v58, %v2931_v57  ;;  %v3009_v25 = vpop.f32.mrb[125].mxu0 }
 0x438   :  { %v3010_v61 = vadd.f32 %v3009_v25, %v2926_v60 }
 0x439   :  { %3021 = vst.msk [vmem:[%s5725_s10 + $0x8] sm:$0x3] %vm3020_vm8, %v3015_v4 }
 0x43a   :  { %3019 = vst.msk [vmem:[%s5725_s10] sm:$0xff] %vm3018_vm9, %v3010_v61 }

</bundles_post_ra>
